<compile_context>
chip_gen: v5e
topology: v5e:2x2
jax: 0.10.0
libtpu: 0.0.40
codegen_flags: <defaults>
</compile_context>

<pallas_src>
import functools

import jax
import jax.numpy as jnp
from jax import lax
from jax.experimental import pallas as pl
from jax.experimental.pallas import tpu as pltpu

FREQ_SIZE = 16      # mel/freq bins (small synthetic size)
HIDDEN_SIZE = 32
KERNEL_SIZE = 15
STRIDE = 4
NUM_LSTM_LAYERS = 2


# ---------------------------------------------------------------------------
# Fused forward kernel:
#   conv(im2col matmul)+ReLU -> wavefront 2-layer LSTM -> per-step head -> Sigmoid
# ---------------------------------------------------------------------------
def fused_forward_kernel(patches_ref, convw_ref, convb_ref,
                         wih0w_ref, biasw_ref, rhs_ref,
                         whpad_ref, headb_ref,
                         o_ref, gx_sc, *, batch, t_out, hidden):
    B, T, H = batch, t_out, hidden
    H2, H8 = 2 * H, 8 * H

    # ---- Conv1d (as im2col matmul) + bias + ReLU (one-time, off the recurrence path) ----
    conv = jnp.dot(patches_ref[...], convw_ref[...],
                   preferred_element_type=jnp.float32) + convb_ref[...]
    x_all = jnp.maximum(conv, 0.0)                            # (T*B, H), time-major rows
    # TODO(synk): Dropout(0.1) after ReLU is identity in inference mode.

    # ---- Hoisted input projection, interleaved gate-column layout [i0 i1 f0 f1 g0 g1 o0 o1] ----
    # layer-0 columns get x @ W_ih0 + b0; layer-1 columns carry just b1 (their data term comes
    # from the per-step fused recurrent matmul).  Stored to VMEM scratch, re-read per step.
    gx_sc[...] = jnp.dot(x_all, wih0w_ref[...],
                         preferred_element_type=jnp.float32) + biasw_ref[...]   # (T*B, 8H)

    rhs = rhs_ref[...]          # (2H, 8H) fused recurrent weights, loaded once
    bias_row = biasw_ref[...]   # (1, 8H) used for the last wavefront step
    wh = whpad_ref[...]         # (1, 2H): [0 ... 0 | head_w]

    # ---- hoisted lane-constant vectors (built ONCE, before the unrolled loop) ----
    lane8 = lax.broadcasted_iota(jnp.int32, (1, H8), 1)
    is_g = (lane8 >= 4 * H) & (lane8 < 6 * H)                 # cell-candidate (tanh) lanes
    gmul = jnp.where(is_g, 2.0, 1.0).astype(jnp.float32)
    gadd = jnp.where(is_g, -1.0, 0.0).astype(jnp.float32)
    lane2 = lax.broadcasted_iota(jnp.int32, (1, H2), 1)
    keep_l0 = (lane2 < H).astype(jnp.float32)                 # zeroes the layer-1 half (step 0)
    t_iota = lax.broadcasted_iota(jnp.int32, (1, T), 1)

    # Packed two-layer state: lanes 0:H = layer 0, lanes H:2H = layer 1.
    h_both = jnp.zeros((B, H2), jnp.float32)
    c_both = jnp.zeros((B, H2), jnp.float32)
    out_acc = jnp.zeros((B, T), jnp.float32)

    # ---- Wavefront recurrence: step s runs layer0[t=s] and layer1[t=s-1] together ----
    # Fully unrolled (17 static steps).  If bundle dumps show vreg spills, switch to
    # lax.fori_loop(..., unroll=4); at this size it fits comfortably.
    for s in range(T + 1):
        if s < T:
            gx_row = gx_sc[pl.ds(s * B, B), :]                # (B, 8H) small VMEM load
        else:
            gx_row = bias_row                                 # last step: layer-0 half discarded
        gates = gx_row + jnp.dot(h_both, rhs,
                                 preferred_element_type=jnp.float32)     # (B, 8H), one MXU op
        # One EUP sigmoid pass for all 8 gate blocks; tanh(x) = 2*sigmoid(2x) - 1 on g lanes.
        act = jax.nn.sigmoid(gates * gmul) * gmul + gadd
        i_b = act[:, 0 * H2:1 * H2]                           # [i0 | i1]
        f_b = act[:, 1 * H2:2 * H2]                           # [f0 | f1]
        g_b = act[:, 2 * H2:3 * H2]                           # [g0 | g1]
        o_b = act[:, 3 * H2:4 * H2]                           # [o0 | o1]
        c_both = f_b * c_both + i_b * g_b
        h_both = o_b * jnp.tanh(c_both)                       # single tanh pass for both layers
        if s == 0:
            # layer-1 "step -1" is spurious: reset its half of the packed state to zero.
            h_both = h_both * keep_l0
            c_both = c_both * keep_l0
        if s >= 1:
            # Head accumulation for layer-1 output at timestep s-1 (off the critical path).
            z = jnp.sum(h_both * wh, axis=1, keepdims=True)   # (B, 1)
            onehot = (t_iota == (s - 1)).astype(jnp.float32)  # (1, T)
            out_acc = out_acc + z * onehot

    # ---- Head bias + Sigmoid; one small store ----
    o_ref[...] = jax.nn.sigmoid(out_acc + headb_ref[...])
    # TODO(synk): Dropout(0.1) in the head is identity in inference mode.


# ---------------------------------------------------------------------------
# Wrapper: im2col + fused/interleaved weight prep (pure-JAX glue), one pallas_call
# ---------------------------------------------------------------------------
def _interleave_gate_cols(a, b, h):
    """a, b: (R, 4H), PyTorch gate blocks [i f g o] -> (R, 8H) = [i_a i_b f_a f_b g_a g_b o_a o_b]."""
    r = a.shape[0]
    return jnp.stack([a.reshape(r, 4, h), b.reshape(r, 4, h)], axis=2).reshape(r, 8 * h)


@jax.jit
def wake_word_forward(x, params):
    """x: (B, FREQ_SIZE, T) float32 (PyTorch NCL layout). Returns (B, T_out, 1)."""
    B, F, T = x.shape
    H, K = HIDDEN_SIZE, KERNEL_SIZE
    T_out = (T - K) // STRIDE + 1

    # im2col, time-major rows (row = t*B + b), cols = (F, K) flattened (matches conv_w.reshape(H, F*K))
    idx = STRIDE * jnp.arange(T_out)[:, None] + jnp.arange(K)[None, :]   # (T_out, K)
    patches = x[:, :, idx]                            # (B, F, T_out, K)
    patches = jnp.transpose(patches, (2, 0, 1, 3)).reshape(T_out * B, F * K)

    conv_w = params["conv_w"].reshape(H, F * K).T     # (F*K, H)
    conv_b = params["conv_b"].reshape(1, H)
    p0, p1 = params["lstm0"], params["lstm1"]
    wih0, whh0 = p0["w_ih"].T, p0["w_hh"].T           # (H, 4H), PyTorch gate order i,f,g,o
    wih1, whh1 = p1["w_ih"].T, p1["w_hh"].T
    b0 = (p0["b_ih"] + p0["b_hh"]).reshape(1, 4 * H)
    b1 = (p1["b_ih"] + p1["b_hh"]).reshape(1, 4 * H)

    zeros_h4h = jnp.zeros_like(wih0)
    wih0_wide = _interleave_gate_cols(wih0, zeros_h4h, H)            # (H, 8H), layer-1 cols = 0
    bias_wide = _interleave_gate_cols(b0, b1, H)                     # (1, 8H)
    rhs_fused = jnp.concatenate(
        [_interleave_gate_cols(whh0, wih1, H),                       # rows 0:H   (x h0_{t})
         _interleave_gate_cols(zeros_h4h, whh1, H)], axis=0)         # rows H:2H  (x h1_{t-1})

    wh_pad = jnp.concatenate([jnp.zeros((1, H), jnp.float32),
                              params["head_w"]], axis=1)             # (1, 2H)
    head_b = params["head_b"].reshape(1, 1)

    vmem = lambda: pl.BlockSpec(memory_space=pltpu.MemorySpace.VMEM)
    kernel = functools.partial(fused_forward_kernel, batch=B, t_out=T_out, hidden=H)

    out = pl.pallas_call(
        kernel,
        out_shape=jax.ShapeDtypeStruct((B, T_out), jnp.float32),
        in_specs=[vmem() for _ in range(8)],
        out_specs=vmem(),
        scratch_shapes=[pltpu.VMEM((T_out * B, 8 * H), jnp.float32)],   # hoisted input projection
    )(patches, conv_w, conv_b, wih0_wide, bias_wide, rhs_fused, wh_pad, head_b)

    return out[..., None]                             # (B, T_out, 1), batch_first like PyTorch


# ---------------------------------------------------------------------------
# Pure-JAX reference (mirrors the PyTorch module) and parameter init
# ---------------------------------------------------------------------------
def reference_forward(x, params):
    B, F, T = x.shape
    H, K = HIDDEN_SIZE, KERNEL_SIZE
    T_out = (T - K) // STRIDE + 1
    idx = STRIDE * jnp.arange(T_out)[:, None] + jnp.arange(K)[None, :]
    patches = x[:, :, idx]                                            # (B, F, T_out, K)
    y = jnp.einsum("bftk,hfk->bth", patches, params["conv_w"]) + params["conv_b"]
    y = jnp.maximum(y, 0.0)                                           # (B, T_out, H)

    def lstm_layer(xseq, p):
        wih, whh = p["w_ih"], p["w_hh"]
        b = p["b_ih"] + p["b_hh"]

        def step(carry, xt):
            h, c = carry
            g = xt @ wih.T + h @ whh.T + b
            i = jax.nn.sigmoid(g[:, 0:H])
            f = jax.nn.sigmoid(g[:, H:2 * H])
            gg = jnp.tanh(g[:, 2 * H:3 * H])
            o = jax.nn.sigmoid(g[:, 3 * H:4 * H])
            c = f * c + i * gg
            h = o * jnp.tanh(c)
            return (h, c), h

        init = (jnp.zeros((xseq.shape[0], H), jnp.float32),
                jnp.zeros((xseq.shape[0], H), jnp.float32))
        _, hs = lax.scan(step, init, jnp.swapaxes(xseq, 0, 1))
        return jnp.swapaxes(hs, 0, 1)

    y = lstm_layer(y, params["lstm0"])
    y = lstm_layer(y, params["lstm1"])
    z = y @ params["head_w"].T + params["head_b"]
    return jax.nn.sigmoid(z)


def init_params(key):
    H, F, K = HIDDEN_SIZE, FREQ_SIZE, KERNEL_SIZE
    keys = jax.random.split(key, 16)
    scale = 0.1
    params = {
        "conv_w": scale * jax.random.normal(keys[0], (H, F, K), jnp.float32),
        "conv_b": scale * jax.random.normal(keys[1], (H,), jnp.float32),
        "head_w": scale * jax.random.normal(keys[2], (1, H), jnp.float32),
        "head_b": scale * jax.random.normal(keys[3], (1,), jnp.float32),
    }
    for layer in range(NUM_LSTM_LAYERS):
        base = 4 + 4 * layer
        params[f"lstm{layer}"] = {
            "w_ih": scale * jax.random.normal(keys[base + 0], (4 * H, H), jnp.float32),
            "w_hh": scale * jax.random.normal(keys[base + 1], (4 * H, H), jnp.float32),
            "b_ih": scale * jax.random.normal(keys[base + 2], (4 * H,), jnp.float32),
            "b_hh": scale * jax.random.normal(keys[base + 3], (4 * H,), jnp.float32),
        }
    return params


if __name__ == "__main__":
    key = jax.random.PRNGKey(0)
    k_in, k_par = jax.random.split(key)

    B, T = 2, 75                       # T_out = (75 - 15) // 4 + 1 = 16
    x = jax.random.normal(k_in, (B, FREQ_SIZE, T), jnp.float32)   # PyTorch NCL layout
    params = init_params(k_par)

    out = jax.block_until_ready(wake_word_forward(x, params))

    T_out = (T - KERNEL_SIZE) // STRIDE + 1
    assert out.shape == (B, T_out, 1), out.shape
    assert bool(jnp.all(jnp.isfinite(out)))
    assert bool(jnp.all((out >= 0.0) & (out <= 1.0)))            # sigmoid range

    ref = reference_forward(x, params)
    max_err = float(jnp.max(jnp.abs(out - ref)))
    assert max_err < 1e-3, f"max abs error vs reference: {max_err}"
    print("KERNEL_OK")
</pallas_src>

<mosaic_0001>
module attributes {stable_mosaic.version = 11 : i64} {
  func.func @fused_forward_kernel(%arg0: memref<32x240xf32, #tpu.memory_space<vmem>>, %arg1: memref<240x32xf32, #tpu.memory_space<vmem>>, %arg2: memref<1x32xf32, #tpu.memory_space<vmem>>, %arg3: memref<32x256xf32, #tpu.memory_space<vmem>>, %arg4: memref<1x256xf32, #tpu.memory_space<vmem>>, %arg5: memref<64x256xf32, #tpu.memory_space<vmem>>, %arg6: memref<1x64xf32, #tpu.memory_space<vmem>>, %arg7: memref<1x1xf32, #tpu.memory_space<vmem>>, %arg8: memref<2x16xf32, #tpu.memory_space<vmem>>, %arg9: memref<32x256xf32, #tpu.memory_space<vmem>>) attributes {dimension_semantics = [], scalar_prefetch = 0 : i64, scratch_operands = 1 : i64, tpu.core_type = #tpu.core_type<tc>} {
    %c0 = arith.constant 0 : index
    %c0_0 = arith.constant 0 : index
    %0 = vector.load %arg0[%c0, %c0_0] : memref<32x240xf32, #tpu.memory_space<vmem>>, vector<32x240xf32>
    %c0_1 = arith.constant 0 : index
    %c0_2 = arith.constant 0 : index
    %1 = vector.load %arg1[%c0_1, %c0_2] : memref<240x32xf32, #tpu.memory_space<vmem>>, vector<240x32xf32>
    %cst = arith.constant dense<0.000000e+00> : vector<32x32xf32>
    %2 = tpu.matmul %0, %1, %cst {dimension_numbers = #tpu.dot_dimension_numbers<[1], [0], [0], [1], [0, 0, 1, 1], [], []>} : vector<32x240xf32>, vector<240x32xf32>, vector<32x32xf32> -> vector<32x32xf32>
    %c0_3 = arith.constant 0 : index
    %c0_4 = arith.constant 0 : index
    %3 = vector.load %arg2[%c0_3, %c0_4] : memref<1x32xf32, #tpu.memory_space<vmem>>, vector<1x32xf32>
    %4 = vector.broadcast %3 : vector<1x32xf32> to vector<32x32xf32>
    %5 = arith.addf %2, %4 : vector<32x32xf32>
    %cst_5 = arith.constant 0.000000e+00 : f32
    %6 = vector.broadcast %cst_5 : f32 to vector<32x32xf32>
    %7 = arith.maximumf %5, %6 : vector<32x32xf32>
    %c0_6 = arith.constant 0 : index
    %c0_7 = arith.constant 0 : index
    %8 = vector.load %arg3[%c0_6, %c0_7] : memref<32x256xf32, #tpu.memory_space<vmem>>, vector<32x256xf32>
    %cst_8 = arith.constant dense<0.000000e+00> : vector<32x256xf32>
    %9 = tpu.matmul %7, %8, %cst_8 {dimension_numbers = #tpu.dot_dimension_numbers<[1], [0], [0], [1], [0, 0, 1, 1], [], []>} : vector<32x32xf32>, vector<32x256xf32>, vector<32x256xf32> -> vector<32x256xf32>
    %c0_9 = arith.constant 0 : index
    %c0_10 = arith.constant 0 : index
    %10 = vector.load %arg4[%c0_9, %c0_10] : memref<1x256xf32, #tpu.memory_space<vmem>>, vector<1x256xf32>
    %11 = vector.broadcast %10 : vector<1x256xf32> to vector<32x256xf32>
    %12 = arith.addf %9, %11 : vector<32x256xf32>
    %c0_11 = arith.constant 0 : index
    %c0_12 = arith.constant 0 : index
    %13 = vector.load %arg9[%c0_11, %c0_12] : memref<32x256xf32, #tpu.memory_space<vmem>>, vector<32x256xf32>
    tpu.vector_store %arg9[%c0_11, %c0_12], %12 {strides = array<i32>} : memref<32x256xf32, #tpu.memory_space<vmem>>, vector<32x256xf32>,
    %c0_13 = arith.constant 0 : index
    %c0_14 = arith.constant 0 : index
    %14 = vector.load %arg5[%c0_13, %c0_14] : memref<64x256xf32, #tpu.memory_space<vmem>>, vector<64x256xf32>
    %c0_15 = arith.constant 0 : index
    %c0_16 = arith.constant 0 : index
    %15 = vector.load %arg4[%c0_15, %c0_16] : memref<1x256xf32, #tpu.memory_space<vmem>>, vector<1x256xf32>
    %c0_17 = arith.constant 0 : index
    %c0_18 = arith.constant 0 : index
    %16 = vector.load %arg6[%c0_17, %c0_18] : memref<1x64xf32, #tpu.memory_space<vmem>>, vector<1x64xf32>
    %17 = tpu.iota {dimensions = array<i32: 1>} : vector<1x256xi32>
    %c128_i32 = arith.constant 128 : i32
    %18 = vector.broadcast %c128_i32 : i32 to vector<1x256xi32>
    %19 = arith.cmpi sge, %17, %18 : vector<1x256xi32>
    %c192_i32 = arith.constant 192 : i32
    %20 = vector.broadcast %c192_i32 : i32 to vector<1x256xi32>
    %21 = arith.cmpi slt, %17, %20 : vector<1x256xi32>
    %22 = arith.andi %19, %21 : vector<1x256xi1>
    %cst_19 = arith.constant 2.000000e+00 : f32
    %cst_20 = arith.constant 1.000000e+00 : f32
    %23 = vector.broadcast %cst_19 : f32 to vector<1x256xf32>
    %24 = vector.broadcast %cst_20 : f32 to vector<1x256xf32>
    %25 = arith.select %22, %23, %24 : vector<1x256xi1>, vector<1x256xf32>
    %cst_21 = arith.constant -1.000000e+00 : f32
    %cst_22 = arith.constant 0.000000e+00 : f32
    %26 = vector.broadcast %cst_21 : f32 to vector<1x256xf32>
    %27 = vector.broadcast %cst_22 : f32 to vector<1x256xf32>
    %28 = arith.select %22, %26, %27 : vector<1x256xi1>, vector<1x256xf32>
    %29 = tpu.iota {dimensions = array<i32: 1>} : vector<1x64xi32>
    %c32_i32 = arith.constant 32 : i32
    %30 = vector.broadcast %c32_i32 : i32 to vector<1x64xi32>
    %31 = arith.cmpi slt, %29, %30 : vector<1x64xi32>
    %32 = arith.extui %31 : vector<1x64xi1> to vector<1x64xi32>
    %33 = arith.sitofp %32 : vector<1x64xi32> to vector<1x64xf32>
    %34 = tpu.iota {dimensions = array<i32: 1>} : vector<1x16xi32>
    %cst_23 = arith.constant 0.000000e+00 : f32
    %35 = vector.broadcast %cst_23 : f32 to vector<2x64xf32>
    %cst_24 = arith.constant 0.000000e+00 : f32
    %36 = vector.broadcast %cst_24 : f32 to vector<2x64xf32>
    %cst_25 = arith.constant 0.000000e+00 : f32
    %37 = vector.broadcast %cst_25 : f32 to vector<2x16xf32>
    %c0_26 = arith.constant 0 : index
    %c0_27 = arith.constant 0 : index
    %38 = vector.load %arg9[%c0_26, %c0_27] : memref<32x256xf32, #tpu.memory_space<vmem>>, vector<2x256xf32>
    %cst_28 = arith.constant dense<0.000000e+00> : vector<2x256xf32>
    %39 = tpu.matmul %35, %14, %cst_28 {dimension_numbers = #tpu.dot_dimension_numbers<[1], [0], [0], [1], [0, 0, 1, 1], [], []>} : vector<2x64xf32>, vector<64x256xf32>, vector<2x256xf32> -> vector<2x256xf32>
    %40 = arith.addf %38, %39 : vector<2x256xf32>
    %41 = vector.broadcast %25 : vector<1x256xf32> to vector<2x256xf32>
    %42 = arith.mulf %40, %41 : vector<2x256xf32>
    %43 = arith.negf %42 : vector<2x256xf32>
    %44 = math.exp %43 : vector<2x256xf32>
    %cst_29 = arith.constant 1.000000e+00 : f32
    %45 = vector.broadcast %cst_29 : f32 to vector<2x256xf32>
    %46 = arith.addf %45, %44 : vector<2x256xf32>
    %47 = arith.divf %45, %46 : vector<2x256xf32>
    %48 = vector.broadcast %25 : vector<1x256xf32> to vector<2x256xf32>
    %49 = arith.mulf %47, %48 : vector<2x256xf32>
    %50 = vector.broadcast %28 : vector<1x256xf32> to vector<2x256xf32>
    %51 = arith.addf %49, %50 : vector<2x256xf32>
    %52 = vector.extract_strided_slice %51 {offsets = [0, 0], sizes = [2, 64], strides = [1, 1]} : vector<2x256xf32> to vector<2x64xf32>
    %53 = vector.extract_strided_slice %51 {offsets = [0, 64], sizes = [2, 64], strides = [1, 1]} : vector<2x256xf32> to vector<2x64xf32>
    %54 = vector.extract_strided_slice %51 {offsets = [0, 128], sizes = [2, 64], strides = [1, 1]} : vector<2x256xf32> to vector<2x64xf32>
    %55 = vector.extract_strided_slice %51 {offsets = [0, 192], sizes = [2, 64], strides = [1, 1]} : vector<2x256xf32> to vector<2x64xf32>
    %56 = arith.mulf %53, %36 : vector<2x64xf32>
    %57 = arith.mulf %52, %54 : vector<2x64xf32>
    %58 = arith.addf %56, %57 : vector<2x64xf32>
    %59 = math.tanh %58 : vector<2x64xf32>
    %60 = arith.mulf %55, %59 : vector<2x64xf32>
    %61 = vector.broadcast %33 : vector<1x64xf32> to vector<2x64xf32>
    %62 = arith.mulf %60, %61 : vector<2x64xf32>
    %63 = vector.broadcast %33 : vector<1x64xf32> to vector<2x64xf32>
    %64 = arith.mulf %58, %63 : vector<2x64xf32>
    %c2 = arith.constant 2 : index
    %c0_30 = arith.constant 0 : index
    %65 = vector.load %arg9[%c2, %c0_30] : memref<32x256xf32, #tpu.memory_space<vmem>>, vector<2x256xf32>
    %cst_31 = arith.constant dense<0.000000e+00> : vector<2x256xf32>
    %66 = tpu.matmul %62, %14, %cst_31 {dimension_numbers = #tpu.dot_dimension_numbers<[1], [0], [0], [1], [0, 0, 1, 1], [], []>} : vector<2x64xf32>, vector<64x256xf32>, vector<2x256xf32> -> vector<2x256xf32>
    %67 = arith.addf %65, %66 : vector<2x256xf32>
    %68 = vector.broadcast %25 : vector<1x256xf32> to vector<2x256xf32>
    %69 = arith.mulf %67, %68 : vector<2x256xf32>
    %70 = arith.negf %69 : vector<2x256xf32>
    %71 = math.exp %70 : vector<2x256xf32>
    %cst_32 = arith.constant 1.000000e+00 : f32
    %72 = vector.broadcast %cst_32 : f32 to vector<2x256xf32>
    %73 = arith.addf %72, %71 : vector<2x256xf32>
    %74 = arith.divf %72, %73 : vector<2x256xf32>
    %75 = vector.broadcast %25 : vector<1x256xf32> to vector<2x256xf32>
    %76 = arith.mulf %74, %75 : vector<2x256xf32>
    %77 = vector.broadcast %28 : vector<1x256xf32> to vector<2x256xf32>
    %78 = arith.addf %76, %77 : vector<2x256xf32>
    %79 = vector.extract_strided_slice %78 {offsets = [0, 0], sizes = [2, 64], strides = [1, 1]} : vector<2x256xf32> to vector<2x64xf32>
    %80 = vector.extract_strided_slice %78 {offsets = [0, 64], sizes = [2, 64], strides = [1, 1]} : vector<2x256xf32> to vector<2x64xf32>
    %81 = vector.extract_strided_slice %78 {offsets = [0, 128], sizes = [2, 64], strides = [1, 1]} : vector<2x256xf32> to vector<2x64xf32>
    %82 = vector.extract_strided_slice %78 {offsets = [0, 192], sizes = [2, 64], strides = [1, 1]} : vector<2x256xf32> to vector<2x64xf32>
    %83 = arith.mulf %80, %64 : vector<2x64xf32>
    %84 = arith.mulf %79, %81 : vector<2x64xf32>
    %85 = arith.addf %83, %84 : vector<2x64xf32>
    %86 = math.tanh %85 : vector<2x64xf32>
    %87 = arith.mulf %82, %86 : vector<2x64xf32>
    %88 = vector.broadcast %16 : vector<1x64xf32> to vector<2x64xf32>
    %89 = arith.mulf %87, %88 : vector<2x64xf32>
    %cst_33 = arith.constant dense<0.000000e+00> : vector<2xf32>
    %90 = vector.multi_reduction <add>, %89, %cst_33 [1] : vector<2x64xf32> to vector<2xf32>
    %91 = vector.shape_cast %90 : vector<2xf32> to vector<2x1xf32>
    %c0_i32 = arith.constant 0 : i32
    %92 = vector.broadcast %c0_i32 : i32 to vector<1x16xi32>
    %93 = arith.cmpi eq, %34, %92 : vector<1x16xi32>
    %94 = arith.extui %93 : vector<1x16xi1> to vector<1x16xi32>
    %95 = arith.sitofp %94 : vector<1x16xi32> to vector<1x16xf32>
    %96 = vector.broadcast %91 : vector<2x1xf32> to vector<2x16xf32>
    %97 = vector.broadcast %95 : vector<1x16xf32> to vector<2x16xf32>
    %98 = arith.mulf %96, %97 : vector<2x16xf32>
    %99 = arith.addf %37, %98 : vector<2x16xf32>
    %c4 = arith.constant 4 : index
    %c0_34 = arith.constant 0 : index
    %100 = vector.load %arg9[%c4, %c0_34] : memref<32x256xf32, #tpu.memory_space<vmem>>, vector<2x256xf32>
    %cst_35 = arith.constant dense<0.000000e+00> : vector<2x256xf32>
    %101 = tpu.matmul %87, %14, %cst_35 {dimension_numbers = #tpu.dot_dimension_numbers<[1], [0], [0], [1], [0, 0, 1, 1], [], []>} : vector<2x64xf32>, vector<64x256xf32>, vector<2x256xf32> -> vector<2x256xf32>
    %102 = arith.addf %100, %101 : vector<2x256xf32>
    %103 = vector.broadcast %25 : vector<1x256xf32> to vector<2x256xf32>
    %104 = arith.mulf %102, %103 : vector<2x256xf32>
    %105 = arith.negf %104 : vector<2x256xf32>
    %106 = math.exp %105 : vector<2x256xf32>
    %cst_36 = arith.constant 1.000000e+00 : f32
    %107 = vector.broadcast %cst_36 : f32 to vector<2x256xf32>
    %108 = arith.addf %107, %106 : vector<2x256xf32>
    %109 = arith.divf %107, %108 : vector<2x256xf32>
    %110 = vector.broadcast %25 : vector<1x256xf32> to vector<2x256xf32>
    %111 = arith.mulf %109, %110 : vector<2x256xf32>
    %112 = vector.broadcast %28 : vector<1x256xf32> to vector<2x256xf32>
    %113 = arith.addf %111, %112 : vector<2x256xf32>
    %114 = vector.extract_strided_slice %113 {offsets = [0, 0], sizes = [2, 64], strides = [1, 1]} : vector<2x256xf32> to vector<2x64xf32>
    %115 = vector.extract_strided_slice %113 {offsets = [0, 64], sizes = [2, 64], strides = [1, 1]} : vector<2x256xf32> to vector<2x64xf32>
    %116 = vector.extract_strided_slice %113 {offsets = [0, 128], sizes = [2, 64], strides = [1, 1]} : vector<2x256xf32> to vector<2x64xf32>
    %117 = vector.extract_strided_slice %113 {offsets = [0, 192], sizes = [2, 64], strides = [1, 1]} : vector<2x256xf32> to vector<2x64xf32>
    %118 = arith.mulf %115, %85 : vector<2x64xf32>
    %119 = arith.mulf %114, %116 : vector<2x64xf32>
    %120 = arith.addf %118, %119 : vector<2x64xf32>
    %121 = math.tanh %120 : vector<2x64xf32>
    %122 = arith.mulf %117, %121 : vector<2x64xf32>
    %123 = vector.broadcast %16 : vector<1x64xf32> to vector<2x64xf32>
    %124 = arith.mulf %122, %123 : vector<2x64xf32>
    %cst_37 = arith.constant dense<0.000000e+00> : vector<2xf32>
    %125 = vector.multi_reduction <add>, %124, %cst_37 [1] : vector<2x64xf32> to vector<2xf32>
    %126 = vector.shape_cast %125 : vector<2xf32> to vector<2x1xf32>
    %c1_i32 = arith.constant 1 : i32
    %127 = vector.broadcast %c1_i32 : i32 to vector<1x16xi32>
    %128 = arith.cmpi eq, %34, %127 : vector<1x16xi32>
    %129 = arith.extui %128 : vector<1x16xi1> to vector<1x16xi32>
    %130 = arith.sitofp %129 : vector<1x16xi32> to vector<1x16xf32>
    %131 = vector.broadcast %126 : vector<2x1xf32> to vector<2x16xf32>
    %132 = vector.broadcast %130 : vector<1x16xf32> to vector<2x16xf32>
    %133 = arith.mulf %131, %132 : vector<2x16xf32>
    %134 = arith.addf %99, %133 : vector<2x16xf32>
    %c6 = arith.constant 6 : index
    %c0_38 = arith.constant 0 : index
    %135 = vector.load %arg9[%c6, %c0_38] : memref<32x256xf32, #tpu.memory_space<vmem>>, vector<2x256xf32>
    %cst_39 = arith.constant dense<0.000000e+00> : vector<2x256xf32>
    %136 = tpu.matmul %122, %14, %cst_39 {dimension_numbers = #tpu.dot_dimension_numbers<[1], [0], [0], [1], [0, 0, 1, 1], [], []>} : vector<2x64xf32>, vector<64x256xf32>, vector<2x256xf32> -> vector<2x256xf32>
    %137 = arith.addf %135, %136 : vector<2x256xf32>
    %138 = vector.broadcast %25 : vector<1x256xf32> to vector<2x256xf32>
    %139 = arith.mulf %137, %138 : vector<2x256xf32>
    %140 = arith.negf %139 : vector<2x256xf32>
    %141 = math.exp %140 : vector<2x256xf32>
    %cst_40 = arith.constant 1.000000e+00 : f32
    %142 = vector.broadcast %cst_40 : f32 to vector<2x256xf32>
    %143 = arith.addf %142, %141 : vector<2x256xf32>
    %144 = arith.divf %142, %143 : vector<2x256xf32>
    %145 = vector.broadcast %25 : vector<1x256xf32> to vector<2x256xf32>
    %146 = arith.mulf %144, %145 : vector<2x256xf32>
    %147 = vector.broadcast %28 : vector<1x256xf32> to vector<2x256xf32>
    %148 = arith.addf %146, %147 : vector<2x256xf32>
    %149 = vector.extract_strided_slice %148 {offsets = [0, 0], sizes = [2, 64], strides = [1, 1]} : vector<2x256xf32> to vector<2x64xf32>
    %150 = vector.extract_strided_slice %148 {offsets = [0, 64], sizes = [2, 64], strides = [1, 1]} : vector<2x256xf32> to vector<2x64xf32>
    %151 = vector.extract_strided_slice %148 {offsets = [0, 128], sizes = [2, 64], strides = [1, 1]} : vector<2x256xf32> to vector<2x64xf32>
    %152 = vector.extract_strided_slice %148 {offsets = [0, 192], sizes = [2, 64], strides = [1, 1]} : vector<2x256xf32> to vector<2x64xf32>
    %153 = arith.mulf %150, %120 : vector<2x64xf32>
    %154 = arith.mulf %149, %151 : vector<2x64xf32>
    %155 = arith.addf %153, %154 : vector<2x64xf32>
    %156 = math.tanh %155 : vector<2x64xf32>
    %157 = arith.mulf %152, %156 : vector<2x64xf32>
    %158 = vector.broadcast %16 : vector<1x64xf32> to vector<2x64xf32>
    %159 = arith.mulf %157, %158 : vector<2x64xf32>
    %cst_41 = arith.constant dense<0.000000e+00> : vector<2xf32>
    %160 = vector.multi_reduction <add>, %159, %cst_41 [1] : vector<2x64xf32> to vector<2xf32>
    %161 = vector.shape_cast %160 : vector<2xf32> to vector<2x1xf32>
    %c2_i32 = arith.constant 2 : i32
    %162 = vector.broadcast %c2_i32 : i32 to vector<1x16xi32>
    %163 = arith.cmpi eq, %34, %162 : vector<1x16xi32>
    %164 = arith.extui %163 : vector<1x16xi1> to vector<1x16xi32>
    %165 = arith.sitofp %164 : vector<1x16xi32> to vector<1x16xf32>
    %166 = vector.broadcast %161 : vector<2x1xf32> to vector<2x16xf32>
    %167 = vector.broadcast %165 : vector<1x16xf32> to vector<2x16xf32>
    %168 = arith.mulf %166, %167 : vector<2x16xf32>
    %169 = arith.addf %134, %168 : vector<2x16xf32>
    %c8 = arith.constant 8 : index
    %c0_42 = arith.constant 0 : index
    %170 = vector.load %arg9[%c8, %c0_42] : memref<32x256xf32, #tpu.memory_space<vmem>>, vector<2x256xf32>
    %cst_43 = arith.constant dense<0.000000e+00> : vector<2x256xf32>
    %171 = tpu.matmul %157, %14, %cst_43 {dimension_numbers = #tpu.dot_dimension_numbers<[1], [0], [0], [1], [0, 0, 1, 1], [], []>} : vector<2x64xf32>, vector<64x256xf32>, vector<2x256xf32> -> vector<2x256xf32>
    %172 = arith.addf %170, %171 : vector<2x256xf32>
    %173 = vector.broadcast %25 : vector<1x256xf32> to vector<2x256xf32>
    %174 = arith.mulf %172, %173 : vector<2x256xf32>
    %175 = arith.negf %174 : vector<2x256xf32>
    %176 = math.exp %175 : vector<2x256xf32>
    %cst_44 = arith.constant 1.000000e+00 : f32
    %177 = vector.broadcast %cst_44 : f32 to vector<2x256xf32>
    %178 = arith.addf %177, %176 : vector<2x256xf32>
    %179 = arith.divf %177, %178 : vector<2x256xf32>
    %180 = vector.broadcast %25 : vector<1x256xf32> to vector<2x256xf32>
    %181 = arith.mulf %179, %180 : vector<2x256xf32>
    %182 = vector.broadcast %28 : vector<1x256xf32> to vector<2x256xf32>
    %183 = arith.addf %181, %182 : vector<2x256xf32>
    %184 = vector.extract_strided_slice %183 {offsets = [0, 0], sizes = [2, 64], strides = [1, 1]} : vector<2x256xf32> to vector<2x64xf32>
    %185 = vector.extract_strided_slice %183 {offsets = [0, 64], sizes = [2, 64], strides = [1, 1]} : vector<2x256xf32> to vector<2x64xf32>
    %186 = vector.extract_strided_slice %183 {offsets = [0, 128], sizes = [2, 64], strides = [1, 1]} : vector<2x256xf32> to vector<2x64xf32>
    %187 = vector.extract_strided_slice %183 {offsets = [0, 192], sizes = [2, 64], strides = [1, 1]} : vector<2x256xf32> to vector<2x64xf32>
    %188 = arith.mulf %185, %155 : vector<2x64xf32>
    %189 = arith.mulf %184, %186 : vector<2x64xf32>
    %190 = arith.addf %188, %189 : vector<2x64xf32>
    %191 = math.tanh %190 : vector<2x64xf32>
    %192 = arith.mulf %187, %191 : vector<2x64xf32>
    %193 = vector.broadcast %16 : vector<1x64xf32> to vector<2x64xf32>
    %194 = arith.mulf %192, %193 : vector<2x64xf32>
    %cst_45 = arith.constant dense<0.000000e+00> : vector<2xf32>
    %195 = vector.multi_reduction <add>, %194, %cst_45 [1] : vector<2x64xf32> to vector<2xf32>
    %196 = vector.shape_cast %195 : vector<2xf32> to vector<2x1xf32>
    %c3_i32 = arith.constant 3 : i32
    %197 = vector.broadcast %c3_i32 : i32 to vector<1x16xi32>
    %198 = arith.cmpi eq, %34, %197 : vector<1x16xi32>
    %199 = arith.extui %198 : vector<1x16xi1> to vector<1x16xi32>
    %200 = arith.sitofp %199 : vector<1x16xi32> to vector<1x16xf32>
    %201 = vector.broadcast %196 : vector<2x1xf32> to vector<2x16xf32>
    %202 = vector.broadcast %200 : vector<1x16xf32> to vector<2x16xf32>
    %203 = arith.mulf %201, %202 : vector<2x16xf32>
    %204 = arith.addf %169, %203 : vector<2x16xf32>
    %c10 = arith.constant 10 : index
    %c0_46 = arith.constant 0 : index
    %205 = vector.load %arg9[%c10, %c0_46] : memref<32x256xf32, #tpu.memory_space<vmem>>, vector<2x256xf32>
    %cst_47 = arith.constant dense<0.000000e+00> : vector<2x256xf32>
    %206 = tpu.matmul %192, %14, %cst_47 {dimension_numbers = #tpu.dot_dimension_numbers<[1], [0], [0], [1], [0, 0, 1, 1], [], []>} : vector<2x64xf32>, vector<64x256xf32>, vector<2x256xf32> -> vector<2x256xf32>
    %207 = arith.addf %205, %206 : vector<2x256xf32>
    %208 = vector.broadcast %25 : vector<1x256xf32> to vector<2x256xf32>
    %209 = arith.mulf %207, %208 : vector<2x256xf32>
    %210 = arith.negf %209 : vector<2x256xf32>
    %211 = math.exp %210 : vector<2x256xf32>
    %cst_48 = arith.constant 1.000000e+00 : f32
    %212 = vector.broadcast %cst_48 : f32 to vector<2x256xf32>
    %213 = arith.addf %212, %211 : vector<2x256xf32>
    %214 = arith.divf %212, %213 : vector<2x256xf32>
    %215 = vector.broadcast %25 : vector<1x256xf32> to vector<2x256xf32>
    %216 = arith.mulf %214, %215 : vector<2x256xf32>
    %217 = vector.broadcast %28 : vector<1x256xf32> to vector<2x256xf32>
    %218 = arith.addf %216, %217 : vector<2x256xf32>
    %219 = vector.extract_strided_slice %218 {offsets = [0, 0], sizes = [2, 64], strides = [1, 1]} : vector<2x256xf32> to vector<2x64xf32>
    %220 = vector.extract_strided_slice %218 {offsets = [0, 64], sizes = [2, 64], strides = [1, 1]} : vector<2x256xf32> to vector<2x64xf32>
    %221 = vector.extract_strided_slice %218 {offsets = [0, 128], sizes = [2, 64], strides = [1, 1]} : vector<2x256xf32> to vector<2x64xf32>
    %222 = vector.extract_strided_slice %218 {offsets = [0, 192], sizes = [2, 64], strides = [1, 1]} : vector<2x256xf32> to vector<2x64xf32>
    %223 = arith.mulf %220, %190 : vector<2x64xf32>
    %224 = arith.mulf %219, %221 : vector<2x64xf32>
    %225 = arith.addf %223, %224 : vector<2x64xf32>
    %226 = math.tanh %225 : vector<2x64xf32>
    %227 = arith.mulf %222, %226 : vector<2x64xf32>
    %228 = vector.broadcast %16 : vector<1x64xf32> to vector<2x64xf32>
    %229 = arith.mulf %227, %228 : vector<2x64xf32>
    %cst_49 = arith.constant dense<0.000000e+00> : vector<2xf32>
    %230 = vector.multi_reduction <add>, %229, %cst_49 [1] : vector<2x64xf32> to vector<2xf32>
    %231 = vector.shape_cast %230 : vector<2xf32> to vector<2x1xf32>
    %c4_i32 = arith.constant 4 : i32
    %232 = vector.broadcast %c4_i32 : i32 to vector<1x16xi32>
    %233 = arith.cmpi eq, %34, %232 : vector<1x16xi32>
    %234 = arith.extui %233 : vector<1x16xi1> to vector<1x16xi32>
    %235 = arith.sitofp %234 : vector<1x16xi32> to vector<1x16xf32>
    %236 = vector.broadcast %231 : vector<2x1xf32> to vector<2x16xf32>
    %237 = vector.broadcast %235 : vector<1x16xf32> to vector<2x16xf32>
    %238 = arith.mulf %236, %237 : vector<2x16xf32>
    %239 = arith.addf %204, %238 : vector<2x16xf32>
    %c12 = arith.constant 12 : index
    %c0_50 = arith.constant 0 : index
    %240 = vector.load %arg9[%c12, %c0_50] : memref<32x256xf32, #tpu.memory_space<vmem>>, vector<2x256xf32>
    %cst_51 = arith.constant dense<0.000000e+00> : vector<2x256xf32>
    %241 = tpu.matmul %227, %14, %cst_51 {dimension_numbers = #tpu.dot_dimension_numbers<[1], [0], [0], [1], [0, 0, 1, 1], [], []>} : vector<2x64xf32>, vector<64x256xf32>, vector<2x256xf32> -> vector<2x256xf32>
    %242 = arith.addf %240, %241 : vector<2x256xf32>
    %243 = vector.broadcast %25 : vector<1x256xf32> to vector<2x256xf32>
    %244 = arith.mulf %242, %243 : vector<2x256xf32>
    %245 = arith.negf %244 : vector<2x256xf32>
    %246 = math.exp %245 : vector<2x256xf32>
    %cst_52 = arith.constant 1.000000e+00 : f32
    %247 = vector.broadcast %cst_52 : f32 to vector<2x256xf32>
    %248 = arith.addf %247, %246 : vector<2x256xf32>
    %249 = arith.divf %247, %248 : vector<2x256xf32>
    %250 = vector.broadcast %25 : vector<1x256xf32> to vector<2x256xf32>
    %251 = arith.mulf %249, %250 : vector<2x256xf32>
    %252 = vector.broadcast %28 : vector<1x256xf32> to vector<2x256xf32>
    %253 = arith.addf %251, %252 : vector<2x256xf32>
    %254 = vector.extract_strided_slice %253 {offsets = [0, 0], sizes = [2, 64], strides = [1, 1]} : vector<2x256xf32> to vector<2x64xf32>
    %255 = vector.extract_strided_slice %253 {offsets = [0, 64], sizes = [2, 64], strides = [1, 1]} : vector<2x256xf32> to vector<2x64xf32>
    %256 = vector.extract_strided_slice %253 {offsets = [0, 128], sizes = [2, 64], strides = [1, 1]} : vector<2x256xf32> to vector<2x64xf32>
    %257 = vector.extract_strided_slice %253 {offsets = [0, 192], sizes = [2, 64], strides = [1, 1]} : vector<2x256xf32> to vector<2x64xf32>
    %258 = arith.mulf %255, %225 : vector<2x64xf32>
    %259 = arith.mulf %254, %256 : vector<2x64xf32>
    %260 = arith.addf %258, %259 : vector<2x64xf32>
    %261 = math.tanh %260 : vector<2x64xf32>
    %262 = arith.mulf %257, %261 : vector<2x64xf32>
    %263 = vector.broadcast %16 : vector<1x64xf32> to vector<2x64xf32>
    %264 = arith.mulf %262, %263 : vector<2x64xf32>
    %cst_53 = arith.constant dense<0.000000e+00> : vector<2xf32>
    %265 = vector.multi_reduction <add>, %264, %cst_53 [1] : vector<2x64xf32> to vector<2xf32>
    %266 = vector.shape_cast %265 : vector<2xf32> to vector<2x1xf32>
    %c5_i32 = arith.constant 5 : i32
    %267 = vector.broadcast %c5_i32 : i32 to vector<1x16xi32>
    %268 = arith.cmpi eq, %34, %267 : vector<1x16xi32>
    %269 = arith.extui %268 : vector<1x16xi1> to vector<1x16xi32>
    %270 = arith.sitofp %269 : vector<1x16xi32> to vector<1x16xf32>
    %271 = vector.broadcast %266 : vector<2x1xf32> to vector<2x16xf32>
    %272 = vector.broadcast %270 : vector<1x16xf32> to vector<2x16xf32>
    %273 = arith.mulf %271, %272 : vector<2x16xf32>
    %274 = arith.addf %239, %273 : vector<2x16xf32>
    %c14 = arith.constant 14 : index
    %c0_54 = arith.constant 0 : index
    %275 = vector.load %arg9[%c14, %c0_54] : memref<32x256xf32, #tpu.memory_space<vmem>>, vector<2x256xf32>
    %cst_55 = arith.constant dense<0.000000e+00> : vector<2x256xf32>
    %276 = tpu.matmul %262, %14, %cst_55 {dimension_numbers = #tpu.dot_dimension_numbers<[1], [0], [0], [1], [0, 0, 1, 1], [], []>} : vector<2x64xf32>, vector<64x256xf32>, vector<2x256xf32> -> vector<2x256xf32>
    %277 = arith.addf %275, %276 : vector<2x256xf32>
    %278 = vector.broadcast %25 : vector<1x256xf32> to vector<2x256xf32>
    %279 = arith.mulf %277, %278 : vector<2x256xf32>
    %280 = arith.negf %279 : vector<2x256xf32>
    %281 = math.exp %280 : vector<2x256xf32>
    %cst_56 = arith.constant 1.000000e+00 : f32
    %282 = vector.broadcast %cst_56 : f32 to vector<2x256xf32>
    %283 = arith.addf %282, %281 : vector<2x256xf32>
    %284 = arith.divf %282, %283 : vector<2x256xf32>
    %285 = vector.broadcast %25 : vector<1x256xf32> to vector<2x256xf32>
    %286 = arith.mulf %284, %285 : vector<2x256xf32>
    %287 = vector.broadcast %28 : vector<1x256xf32> to vector<2x256xf32>
    %288 = arith.addf %286, %287 : vector<2x256xf32>
    %289 = vector.extract_strided_slice %288 {offsets = [0, 0], sizes = [2, 64], strides = [1, 1]} : vector<2x256xf32> to vector<2x64xf32>
    %290 = vector.extract_strided_slice %288 {offsets = [0, 64], sizes = [2, 64], strides = [1, 1]} : vector<2x256xf32> to vector<2x64xf32>
    %291 = vector.extract_strided_slice %288 {offsets = [0, 128], sizes = [2, 64], strides = [1, 1]} : vector<2x256xf32> to vector<2x64xf32>
    %292 = vector.extract_strided_slice %288 {offsets = [0, 192], sizes = [2, 64], strides = [1, 1]} : vector<2x256xf32> to vector<2x64xf32>
    %293 = arith.mulf %290, %260 : vector<2x64xf32>
    %294 = arith.mulf %289, %291 : vector<2x64xf32>
    %295 = arith.addf %293, %294 : vector<2x64xf32>
    %296 = math.tanh %295 : vector<2x64xf32>
    %297 = arith.mulf %292, %296 : vector<2x64xf32>
    %298 = vector.broadcast %16 : vector<1x64xf32> to vector<2x64xf32>
    %299 = arith.mulf %297, %298 : vector<2x64xf32>
    %cst_57 = arith.constant dense<0.000000e+00> : vector<2xf32>
    %300 = vector.multi_reduction <add>, %299, %cst_57 [1] : vector<2x64xf32> to vector<2xf32>
    %301 = vector.shape_cast %300 : vector<2xf32> to vector<2x1xf32>
    %c6_i32 = arith.constant 6 : i32
    %302 = vector.broadcast %c6_i32 : i32 to vector<1x16xi32>
    %303 = arith.cmpi eq, %34, %302 : vector<1x16xi32>
    %304 = arith.extui %303 : vector<1x16xi1> to vector<1x16xi32>
    %305 = arith.sitofp %304 : vector<1x16xi32> to vector<1x16xf32>
    %306 = vector.broadcast %301 : vector<2x1xf32> to vector<2x16xf32>
    %307 = vector.broadcast %305 : vector<1x16xf32> to vector<2x16xf32>
    %308 = arith.mulf %306, %307 : vector<2x16xf32>
    %309 = arith.addf %274, %308 : vector<2x16xf32>
    %c16 = arith.constant 16 : index
    %c0_58 = arith.constant 0 : index
    %310 = vector.load %arg9[%c16, %c0_58] : memref<32x256xf32, #tpu.memory_space<vmem>>, vector<2x256xf32>
    %cst_59 = arith.constant dense<0.000000e+00> : vector<2x256xf32>
    %311 = tpu.matmul %297, %14, %cst_59 {dimension_numbers = #tpu.dot_dimension_numbers<[1], [0], [0], [1], [0, 0, 1, 1], [], []>} : vector<2x64xf32>, vector<64x256xf32>, vector<2x256xf32> -> vector<2x256xf32>
    %312 = arith.addf %310, %311 : vector<2x256xf32>
    %313 = vector.broadcast %25 : vector<1x256xf32> to vector<2x256xf32>
    %314 = arith.mulf %312, %313 : vector<2x256xf32>
    %315 = arith.negf %314 : vector<2x256xf32>
    %316 = math.exp %315 : vector<2x256xf32>
    %cst_60 = arith.constant 1.000000e+00 : f32
    %317 = vector.broadcast %cst_60 : f32 to vector<2x256xf32>
    %318 = arith.addf %317, %316 : vector<2x256xf32>
    %319 = arith.divf %317, %318 : vector<2x256xf32>
    %320 = vector.broadcast %25 : vector<1x256xf32> to vector<2x256xf32>
    %321 = arith.mulf %319, %320 : vector<2x256xf32>
    %322 = vector.broadcast %28 : vector<1x256xf32> to vector<2x256xf32>
    %323 = arith.addf %321, %322 : vector<2x256xf32>
    %324 = vector.extract_strided_slice %323 {offsets = [0, 0], sizes = [2, 64], strides = [1, 1]} : vector<2x256xf32> to vector<2x64xf32>
    %325 = vector.extract_strided_slice %323 {offsets = [0, 64], sizes = [2, 64], strides = [1, 1]} : vector<2x256xf32> to vector<2x64xf32>
    %326 = vector.extract_strided_slice %323 {offsets = [0, 128], sizes = [2, 64], strides = [1, 1]} : vector<2x256xf32> to vector<2x64xf32>
    %327 = vector.extract_strided_slice %323 {offsets = [0, 192], sizes = [2, 64], strides = [1, 1]} : vector<2x256xf32> to vector<2x64xf32>
    %328 = arith.mulf %325, %295 : vector<2x64xf32>
    %329 = arith.mulf %324, %326 : vector<2x64xf32>
    %330 = arith.addf %328, %329 : vector<2x64xf32>
    %331 = math.tanh %330 : vector<2x64xf32>
    %332 = arith.mulf %327, %331 : vector<2x64xf32>
    %333 = vector.broadcast %16 : vector<1x64xf32> to vector<2x64xf32>
    %334 = arith.mulf %332, %333 : vector<2x64xf32>
    %cst_61 = arith.constant dense<0.000000e+00> : vector<2xf32>
    %335 = vector.multi_reduction <add>, %334, %cst_61 [1] : vector<2x64xf32> to vector<2xf32>
    %336 = vector.shape_cast %335 : vector<2xf32> to vector<2x1xf32>
    %c7_i32 = arith.constant 7 : i32
    %337 = vector.broadcast %c7_i32 : i32 to vector<1x16xi32>
    %338 = arith.cmpi eq, %34, %337 : vector<1x16xi32>
    %339 = arith.extui %338 : vector<1x16xi1> to vector<1x16xi32>
    %340 = arith.sitofp %339 : vector<1x16xi32> to vector<1x16xf32>
    %341 = vector.broadcast %336 : vector<2x1xf32> to vector<2x16xf32>
    %342 = vector.broadcast %340 : vector<1x16xf32> to vector<2x16xf32>
    %343 = arith.mulf %341, %342 : vector<2x16xf32>
    %344 = arith.addf %309, %343 : vector<2x16xf32>
    %c18 = arith.constant 18 : index
    %c0_62 = arith.constant 0 : index
    %345 = vector.load %arg9[%c18, %c0_62] : memref<32x256xf32, #tpu.memory_space<vmem>>, vector<2x256xf32>
    %cst_63 = arith.constant dense<0.000000e+00> : vector<2x256xf32>
    %346 = tpu.matmul %332, %14, %cst_63 {dimension_numbers = #tpu.dot_dimension_numbers<[1], [0], [0], [1], [0, 0, 1, 1], [], []>} : vector<2x64xf32>, vector<64x256xf32>, vector<2x256xf32> -> vector<2x256xf32>
    %347 = arith.addf %345, %346 : vector<2x256xf32>
    %348 = vector.broadcast %25 : vector<1x256xf32> to vector<2x256xf32>
    %349 = arith.mulf %347, %348 : vector<2x256xf32>
    %350 = arith.negf %349 : vector<2x256xf32>
    %351 = math.exp %350 : vector<2x256xf32>
    %cst_64 = arith.constant 1.000000e+00 : f32
    %352 = vector.broadcast %cst_64 : f32 to vector<2x256xf32>
    %353 = arith.addf %352, %351 : vector<2x256xf32>
    %354 = arith.divf %352, %353 : vector<2x256xf32>
    %355 = vector.broadcast %25 : vector<1x256xf32> to vector<2x256xf32>
    %356 = arith.mulf %354, %355 : vector<2x256xf32>
    %357 = vector.broadcast %28 : vector<1x256xf32> to vector<2x256xf32>
    %358 = arith.addf %356, %357 : vector<2x256xf32>
    %359 = vector.extract_strided_slice %358 {offsets = [0, 0], sizes = [2, 64], strides = [1, 1]} : vector<2x256xf32> to vector<2x64xf32>
    %360 = vector.extract_strided_slice %358 {offsets = [0, 64], sizes = [2, 64], strides = [1, 1]} : vector<2x256xf32> to vector<2x64xf32>
    %361 = vector.extract_strided_slice %358 {offsets = [0, 128], sizes = [2, 64], strides = [1, 1]} : vector<2x256xf32> to vector<2x64xf32>
    %362 = vector.extract_strided_slice %358 {offsets = [0, 192], sizes = [2, 64], strides = [1, 1]} : vector<2x256xf32> to vector<2x64xf32>
    %363 = arith.mulf %360, %330 : vector<2x64xf32>
    %364 = arith.mulf %359, %361 : vector<2x64xf32>
    %365 = arith.addf %363, %364 : vector<2x64xf32>
    %366 = math.tanh %365 : vector<2x64xf32>
    %367 = arith.mulf %362, %366 : vector<2x64xf32>
    %368 = vector.broadcast %16 : vector<1x64xf32> to vector<2x64xf32>
    %369 = arith.mulf %367, %368 : vector<2x64xf32>
    %cst_65 = arith.constant dense<0.000000e+00> : vector<2xf32>
    %370 = vector.multi_reduction <add>, %369, %cst_65 [1] : vector<2x64xf32> to vector<2xf32>
    %371 = vector.shape_cast %370 : vector<2xf32> to vector<2x1xf32>
    %c8_i32 = arith.constant 8 : i32
    %372 = vector.broadcast %c8_i32 : i32 to vector<1x16xi32>
    %373 = arith.cmpi eq, %34, %372 : vector<1x16xi32>
    %374 = arith.extui %373 : vector<1x16xi1> to vector<1x16xi32>
    %375 = arith.sitofp %374 : vector<1x16xi32> to vector<1x16xf32>
    %376 = vector.broadcast %371 : vector<2x1xf32> to vector<2x16xf32>
    %377 = vector.broadcast %375 : vector<1x16xf32> to vector<2x16xf32>
    %378 = arith.mulf %376, %377 : vector<2x16xf32>
    %379 = arith.addf %344, %378 : vector<2x16xf32>
    %c20 = arith.constant 20 : index
    %c0_66 = arith.constant 0 : index
    %380 = vector.load %arg9[%c20, %c0_66] : memref<32x256xf32, #tpu.memory_space<vmem>>, vector<2x256xf32>
    %cst_67 = arith.constant dense<0.000000e+00> : vector<2x256xf32>
    %381 = tpu.matmul %367, %14, %cst_67 {dimension_numbers = #tpu.dot_dimension_numbers<[1], [0], [0], [1], [0, 0, 1, 1], [], []>} : vector<2x64xf32>, vector<64x256xf32>, vector<2x256xf32> -> vector<2x256xf32>
    %382 = arith.addf %380, %381 : vector<2x256xf32>
    %383 = vector.broadcast %25 : vector<1x256xf32> to vector<2x256xf32>
    %384 = arith.mulf %382, %383 : vector<2x256xf32>
    %385 = arith.negf %384 : vector<2x256xf32>
    %386 = math.exp %385 : vector<2x256xf32>
    %cst_68 = arith.constant 1.000000e+00 : f32
    %387 = vector.broadcast %cst_68 : f32 to vector<2x256xf32>
    %388 = arith.addf %387, %386 : vector<2x256xf32>
    %389 = arith.divf %387, %388 : vector<2x256xf32>
    %390 = vector.broadcast %25 : vector<1x256xf32> to vector<2x256xf32>
    %391 = arith.mulf %389, %390 : vector<2x256xf32>
    %392 = vector.broadcast %28 : vector<1x256xf32> to vector<2x256xf32>
    %393 = arith.addf %391, %392 : vector<2x256xf32>
    %394 = vector.extract_strided_slice %393 {offsets = [0, 0], sizes = [2, 64], strides = [1, 1]} : vector<2x256xf32> to vector<2x64xf32>
    %395 = vector.extract_strided_slice %393 {offsets = [0, 64], sizes = [2, 64], strides = [1, 1]} : vector<2x256xf32> to vector<2x64xf32>
    %396 = vector.extract_strided_slice %393 {offsets = [0, 128], sizes = [2, 64], strides = [1, 1]} : vector<2x256xf32> to vector<2x64xf32>
    %397 = vector.extract_strided_slice %393 {offsets = [0, 192], sizes = [2, 64], strides = [1, 1]} : vector<2x256xf32> to vector<2x64xf32>
    %398 = arith.mulf %395, %365 : vector<2x64xf32>
    %399 = arith.mulf %394, %396 : vector<2x64xf32>
    %400 = arith.addf %398, %399 : vector<2x64xf32>
    %401 = math.tanh %400 : vector<2x64xf32>
    %402 = arith.mulf %397, %401 : vector<2x64xf32>
    %403 = vector.broadcast %16 : vector<1x64xf32> to vector<2x64xf32>
    %404 = arith.mulf %402, %403 : vector<2x64xf32>
    %cst_69 = arith.constant dense<0.000000e+00> : vector<2xf32>
    %405 = vector.multi_reduction <add>, %404, %cst_69 [1] : vector<2x64xf32> to vector<2xf32>
    %406 = vector.shape_cast %405 : vector<2xf32> to vector<2x1xf32>
    %c9_i32 = arith.constant 9 : i32
    %407 = vector.broadcast %c9_i32 : i32 to vector<1x16xi32>
    %408 = arith.cmpi eq, %34, %407 : vector<1x16xi32>
    %409 = arith.extui %408 : vector<1x16xi1> to vector<1x16xi32>
    %410 = arith.sitofp %409 : vector<1x16xi32> to vector<1x16xf32>
    %411 = vector.broadcast %406 : vector<2x1xf32> to vector<2x16xf32>
    %412 = vector.broadcast %410 : vector<1x16xf32> to vector<2x16xf32>
    %413 = arith.mulf %411, %412 : vector<2x16xf32>
    %414 = arith.addf %379, %413 : vector<2x16xf32>
    %c22 = arith.constant 22 : index
    %c0_70 = arith.constant 0 : index
    %415 = vector.load %arg9[%c22, %c0_70] : memref<32x256xf32, #tpu.memory_space<vmem>>, vector<2x256xf32>
    %cst_71 = arith.constant dense<0.000000e+00> : vector<2x256xf32>
    %416 = tpu.matmul %402, %14, %cst_71 {dimension_numbers = #tpu.dot_dimension_numbers<[1], [0], [0], [1], [0, 0, 1, 1], [], []>} : vector<2x64xf32>, vector<64x256xf32>, vector<2x256xf32> -> vector<2x256xf32>
    %417 = arith.addf %415, %416 : vector<2x256xf32>
    %418 = vector.broadcast %25 : vector<1x256xf32> to vector<2x256xf32>
    %419 = arith.mulf %417, %418 : vector<2x256xf32>
    %420 = arith.negf %419 : vector<2x256xf32>
    %421 = math.exp %420 : vector<2x256xf32>
    %cst_72 = arith.constant 1.000000e+00 : f32
    %422 = vector.broadcast %cst_72 : f32 to vector<2x256xf32>
    %423 = arith.addf %422, %421 : vector<2x256xf32>
    %424 = arith.divf %422, %423 : vector<2x256xf32>
    %425 = vector.broadcast %25 : vector<1x256xf32> to vector<2x256xf32>
    %426 = arith.mulf %424, %425 : vector<2x256xf32>
    %427 = vector.broadcast %28 : vector<1x256xf32> to vector<2x256xf32>
    %428 = arith.addf %426, %427 : vector<2x256xf32>
    %429 = vector.extract_strided_slice %428 {offsets = [0, 0], sizes = [2, 64], strides = [1, 1]} : vector<2x256xf32> to vector<2x64xf32>
    %430 = vector.extract_strided_slice %428 {offsets = [0, 64], sizes = [2, 64], strides = [1, 1]} : vector<2x256xf32> to vector<2x64xf32>
    %431 = vector.extract_strided_slice %428 {offsets = [0, 128], sizes = [2, 64], strides = [1, 1]} : vector<2x256xf32> to vector<2x64xf32>
    %432 = vector.extract_strided_slice %428 {offsets = [0, 192], sizes = [2, 64], strides = [1, 1]} : vector<2x256xf32> to vector<2x64xf32>
    %433 = arith.mulf %430, %400 : vector<2x64xf32>
    %434 = arith.mulf %429, %431 : vector<2x64xf32>
    %435 = arith.addf %433, %434 : vector<2x64xf32>
    %436 = math.tanh %435 : vector<2x64xf32>
    %437 = arith.mulf %432, %436 : vector<2x64xf32>
    %438 = vector.broadcast %16 : vector<1x64xf32> to vector<2x64xf32>
    %439 = arith.mulf %437, %438 : vector<2x64xf32>
    %cst_73 = arith.constant dense<0.000000e+00> : vector<2xf32>
    %440 = vector.multi_reduction <add>, %439, %cst_73 [1] : vector<2x64xf32> to vector<2xf32>
    %441 = vector.shape_cast %440 : vector<2xf32> to vector<2x1xf32>
    %c10_i32 = arith.constant 10 : i32
    %442 = vector.broadcast %c10_i32 : i32 to vector<1x16xi32>
    %443 = arith.cmpi eq, %34, %442 : vector<1x16xi32>
    %444 = arith.extui %443 : vector<1x16xi1> to vector<1x16xi32>
    %445 = arith.sitofp %444 : vector<1x16xi32> to vector<1x16xf32>
    %446 = vector.broadcast %441 : vector<2x1xf32> to vector<2x16xf32>
    %447 = vector.broadcast %445 : vector<1x16xf32> to vector<2x16xf32>
    %448 = arith.mulf %446, %447 : vector<2x16xf32>
    %449 = arith.addf %414, %448 : vector<2x16xf32>
    %c24 = arith.constant 24 : index
    %c0_74 = arith.constant 0 : index
    %450 = vector.load %arg9[%c24, %c0_74] : memref<32x256xf32, #tpu.memory_space<vmem>>, vector<2x256xf32>
    %cst_75 = arith.constant dense<0.000000e+00> : vector<2x256xf32>
    %451 = tpu.matmul %437, %14, %cst_75 {dimension_numbers = #tpu.dot_dimension_numbers<[1], [0], [0], [1], [0, 0, 1, 1], [], []>} : vector<2x64xf32>, vector<64x256xf32>, vector<2x256xf32> -> vector<2x256xf32>
    %452 = arith.addf %450, %451 : vector<2x256xf32>
    %453 = vector.broadcast %25 : vector<1x256xf32> to vector<2x256xf32>
    %454 = arith.mulf %452, %453 : vector<2x256xf32>
    %455 = arith.negf %454 : vector<2x256xf32>
    %456 = math.exp %455 : vector<2x256xf32>
    %cst_76 = arith.constant 1.000000e+00 : f32
    %457 = vector.broadcast %cst_76 : f32 to vector<2x256xf32>
    %458 = arith.addf %457, %456 : vector<2x256xf32>
    %459 = arith.divf %457, %458 : vector<2x256xf32>
    %460 = vector.broadcast %25 : vector<1x256xf32> to vector<2x256xf32>
    %461 = arith.mulf %459, %460 : vector<2x256xf32>
    %462 = vector.broadcast %28 : vector<1x256xf32> to vector<2x256xf32>
    %463 = arith.addf %461, %462 : vector<2x256xf32>
    %464 = vector.extract_strided_slice %463 {offsets = [0, 0], sizes = [2, 64], strides = [1, 1]} : vector<2x256xf32> to vector<2x64xf32>
    %465 = vector.extract_strided_slice %463 {offsets = [0, 64], sizes = [2, 64], strides = [1, 1]} : vector<2x256xf32> to vector<2x64xf32>
    %466 = vector.extract_strided_slice %463 {offsets = [0, 128], sizes = [2, 64], strides = [1, 1]} : vector<2x256xf32> to vector<2x64xf32>
    %467 = vector.extract_strided_slice %463 {offsets = [0, 192], sizes = [2, 64], strides = [1, 1]} : vector<2x256xf32> to vector<2x64xf32>
    %468 = arith.mulf %465, %435 : vector<2x64xf32>
    %469 = arith.mulf %464, %466 : vector<2x64xf32>
    %470 = arith.addf %468, %469 : vector<2x64xf32>
    %471 = math.tanh %470 : vector<2x64xf32>
    %472 = arith.mulf %467, %471 : vector<2x64xf32>
    %473 = vector.broadcast %16 : vector<1x64xf32> to vector<2x64xf32>
    %474 = arith.mulf %472, %473 : vector<2x64xf32>
    %cst_77 = arith.constant dense<0.000000e+00> : vector<2xf32>
    %475 = vector.multi_reduction <add>, %474, %cst_77 [1] : vector<2x64xf32> to vector<2xf32>
    %476 = vector.shape_cast %475 : vector<2xf32> to vector<2x1xf32>
    %c11_i32 = arith.constant 11 : i32
    %477 = vector.broadcast %c11_i32 : i32 to vector<1x16xi32>
    %478 = arith.cmpi eq, %34, %477 : vector<1x16xi32>
    %479 = arith.extui %478 : vector<1x16xi1> to vector<1x16xi32>
    %480 = arith.sitofp %479 : vector<1x16xi32> to vector<1x16xf32>
    %481 = vector.broadcast %476 : vector<2x1xf32> to vector<2x16xf32>
    %482 = vector.broadcast %480 : vector<1x16xf32> to vector<2x16xf32>
    %483 = arith.mulf %481, %482 : vector<2x16xf32>
    %484 = arith.addf %449, %483 : vector<2x16xf32>
    %c26 = arith.constant 26 : index
    %c0_78 = arith.constant 0 : index
    %485 = vector.load %arg9[%c26, %c0_78] : memref<32x256xf32, #tpu.memory_space<vmem>>, vector<2x256xf32>
    %cst_79 = arith.constant dense<0.000000e+00> : vector<2x256xf32>
    %486 = tpu.matmul %472, %14, %cst_79 {dimension_numbers = #tpu.dot_dimension_numbers<[1], [0], [0], [1], [0, 0, 1, 1], [], []>} : vector<2x64xf32>, vector<64x256xf32>, vector<2x256xf32> -> vector<2x256xf32>
    %487 = arith.addf %485, %486 : vector<2x256xf32>
    %488 = vector.broadcast %25 : vector<1x256xf32> to vector<2x256xf32>
    %489 = arith.mulf %487, %488 : vector<2x256xf32>
    %490 = arith.negf %489 : vector<2x256xf32>
    %491 = math.exp %490 : vector<2x256xf32>
    %cst_80 = arith.constant 1.000000e+00 : f32
    %492 = vector.broadcast %cst_80 : f32 to vector<2x256xf32>
    %493 = arith.addf %492, %491 : vector<2x256xf32>
    %494 = arith.divf %492, %493 : vector<2x256xf32>
    %495 = vector.broadcast %25 : vector<1x256xf32> to vector<2x256xf32>
    %496 = arith.mulf %494, %495 : vector<2x256xf32>
    %497 = vector.broadcast %28 : vector<1x256xf32> to vector<2x256xf32>
    %498 = arith.addf %496, %497 : vector<2x256xf32>
    %499 = vector.extract_strided_slice %498 {offsets = [0, 0], sizes = [2, 64], strides = [1, 1]} : vector<2x256xf32> to vector<2x64xf32>
    %500 = vector.extract_strided_slice %498 {offsets = [0, 64], sizes = [2, 64], strides = [1, 1]} : vector<2x256xf32> to vector<2x64xf32>
    %501 = vector.extract_strided_slice %498 {offsets = [0, 128], sizes = [2, 64], strides = [1, 1]} : vector<2x256xf32> to vector<2x64xf32>
    %502 = vector.extract_strided_slice %498 {offsets = [0, 192], sizes = [2, 64], strides = [1, 1]} : vector<2x256xf32> to vector<2x64xf32>
    %503 = arith.mulf %500, %470 : vector<2x64xf32>
    %504 = arith.mulf %499, %501 : vector<2x64xf32>
    %505 = arith.addf %503, %504 : vector<2x64xf32>
    %506 = math.tanh %505 : vector<2x64xf32>
    %507 = arith.mulf %502, %506 : vector<2x64xf32>
    %508 = vector.broadcast %16 : vector<1x64xf32> to vector<2x64xf32>
    %509 = arith.mulf %507, %508 : vector<2x64xf32>
    %cst_81 = arith.constant dense<0.000000e+00> : vector<2xf32>
    %510 = vector.multi_reduction <add>, %509, %cst_81 [1] : vector<2x64xf32> to vector<2xf32>
    %511 = vector.shape_cast %510 : vector<2xf32> to vector<2x1xf32>
    %c12_i32 = arith.constant 12 : i32
    %512 = vector.broadcast %c12_i32 : i32 to vector<1x16xi32>
    %513 = arith.cmpi eq, %34, %512 : vector<1x16xi32>
    %514 = arith.extui %513 : vector<1x16xi1> to vector<1x16xi32>
    %515 = arith.sitofp %514 : vector<1x16xi32> to vector<1x16xf32>
    %516 = vector.broadcast %511 : vector<2x1xf32> to vector<2x16xf32>
    %517 = vector.broadcast %515 : vector<1x16xf32> to vector<2x16xf32>
    %518 = arith.mulf %516, %517 : vector<2x16xf32>
    %519 = arith.addf %484, %518 : vector<2x16xf32>
    %c28 = arith.constant 28 : index
    %c0_82 = arith.constant 0 : index
    %520 = vector.load %arg9[%c28, %c0_82] : memref<32x256xf32, #tpu.memory_space<vmem>>, vector<2x256xf32>
    %cst_83 = arith.constant dense<0.000000e+00> : vector<2x256xf32>
    %521 = tpu.matmul %507, %14, %cst_83 {dimension_numbers = #tpu.dot_dimension_numbers<[1], [0], [0], [1], [0, 0, 1, 1], [], []>} : vector<2x64xf32>, vector<64x256xf32>, vector<2x256xf32> -> vector<2x256xf32>
    %522 = arith.addf %520, %521 : vector<2x256xf32>
    %523 = vector.broadcast %25 : vector<1x256xf32> to vector<2x256xf32>
    %524 = arith.mulf %522, %523 : vector<2x256xf32>
    %525 = arith.negf %524 : vector<2x256xf32>
    %526 = math.exp %525 : vector<2x256xf32>
    %cst_84 = arith.constant 1.000000e+00 : f32
    %527 = vector.broadcast %cst_84 : f32 to vector<2x256xf32>
    %528 = arith.addf %527, %526 : vector<2x256xf32>
    %529 = arith.divf %527, %528 : vector<2x256xf32>
    %530 = vector.broadcast %25 : vector<1x256xf32> to vector<2x256xf32>
    %531 = arith.mulf %529, %530 : vector<2x256xf32>
    %532 = vector.broadcast %28 : vector<1x256xf32> to vector<2x256xf32>
    %533 = arith.addf %531, %532 : vector<2x256xf32>
    %534 = vector.extract_strided_slice %533 {offsets = [0, 0], sizes = [2, 64], strides = [1, 1]} : vector<2x256xf32> to vector<2x64xf32>
    %535 = vector.extract_strided_slice %533 {offsets = [0, 64], sizes = [2, 64], strides = [1, 1]} : vector<2x256xf32> to vector<2x64xf32>
    %536 = vector.extract_strided_slice %533 {offsets = [0, 128], sizes = [2, 64], strides = [1, 1]} : vector<2x256xf32> to vector<2x64xf32>
    %537 = vector.extract_strided_slice %533 {offsets = [0, 192], sizes = [2, 64], strides = [1, 1]} : vector<2x256xf32> to vector<2x64xf32>
    %538 = arith.mulf %535, %505 : vector<2x64xf32>
    %539 = arith.mulf %534, %536 : vector<2x64xf32>
    %540 = arith.addf %538, %539 : vector<2x64xf32>
    %541 = math.tanh %540 : vector<2x64xf32>
    %542 = arith.mulf %537, %541 : vector<2x64xf32>
    %543 = vector.broadcast %16 : vector<1x64xf32> to vector<2x64xf32>
    %544 = arith.mulf %542, %543 : vector<2x64xf32>
    %cst_85 = arith.constant dense<0.000000e+00> : vector<2xf32>
    %545 = vector.multi_reduction <add>, %544, %cst_85 [1] : vector<2x64xf32> to vector<2xf32>
    %546 = vector.shape_cast %545 : vector<2xf32> to vector<2x1xf32>
    %c13_i32 = arith.constant 13 : i32
    %547 = vector.broadcast %c13_i32 : i32 to vector<1x16xi32>
    %548 = arith.cmpi eq, %34, %547 : vector<1x16xi32>
    %549 = arith.extui %548 : vector<1x16xi1> to vector<1x16xi32>
    %550 = arith.sitofp %549 : vector<1x16xi32> to vector<1x16xf32>
    %551 = vector.broadcast %546 : vector<2x1xf32> to vector<2x16xf32>
    %552 = vector.broadcast %550 : vector<1x16xf32> to vector<2x16xf32>
    %553 = arith.mulf %551, %552 : vector<2x16xf32>
    %554 = arith.addf %519, %553 : vector<2x16xf32>
    %c30 = arith.constant 30 : index
    %c0_86 = arith.constant 0 : index
    %555 = vector.load %arg9[%c30, %c0_86] : memref<32x256xf32, #tpu.memory_space<vmem>>, vector<2x256xf32>
    %cst_87 = arith.constant dense<0.000000e+00> : vector<2x256xf32>
    %556 = tpu.matmul %542, %14, %cst_87 {dimension_numbers = #tpu.dot_dimension_numbers<[1], [0], [0], [1], [0, 0, 1, 1], [], []>} : vector<2x64xf32>, vector<64x256xf32>, vector<2x256xf32> -> vector<2x256xf32>
    %557 = arith.addf %555, %556 : vector<2x256xf32>
    %558 = vector.broadcast %25 : vector<1x256xf32> to vector<2x256xf32>
    %559 = arith.mulf %557, %558 : vector<2x256xf32>
    %560 = arith.negf %559 : vector<2x256xf32>
    %561 = math.exp %560 : vector<2x256xf32>
    %cst_88 = arith.constant 1.000000e+00 : f32
    %562 = vector.broadcast %cst_88 : f32 to vector<2x256xf32>
    %563 = arith.addf %562, %561 : vector<2x256xf32>
    %564 = arith.divf %562, %563 : vector<2x256xf32>
    %565 = vector.broadcast %25 : vector<1x256xf32> to vector<2x256xf32>
    %566 = arith.mulf %564, %565 : vector<2x256xf32>
    %567 = vector.broadcast %28 : vector<1x256xf32> to vector<2x256xf32>
    %568 = arith.addf %566, %567 : vector<2x256xf32>
    %569 = vector.extract_strided_slice %568 {offsets = [0, 0], sizes = [2, 64], strides = [1, 1]} : vector<2x256xf32> to vector<2x64xf32>
    %570 = vector.extract_strided_slice %568 {offsets = [0, 64], sizes = [2, 64], strides = [1, 1]} : vector<2x256xf32> to vector<2x64xf32>
    %571 = vector.extract_strided_slice %568 {offsets = [0, 128], sizes = [2, 64], strides = [1, 1]} : vector<2x256xf32> to vector<2x64xf32>
    %572 = vector.extract_strided_slice %568 {offsets = [0, 192], sizes = [2, 64], strides = [1, 1]} : vector<2x256xf32> to vector<2x64xf32>
    %573 = arith.mulf %570, %540 : vector<2x64xf32>
    %574 = arith.mulf %569, %571 : vector<2x64xf32>
    %575 = arith.addf %573, %574 : vector<2x64xf32>
    %576 = math.tanh %575 : vector<2x64xf32>
    %577 = arith.mulf %572, %576 : vector<2x64xf32>
    %578 = vector.broadcast %16 : vector<1x64xf32> to vector<2x64xf32>
    %579 = arith.mulf %577, %578 : vector<2x64xf32>
    %cst_89 = arith.constant dense<0.000000e+00> : vector<2xf32>
    %580 = vector.multi_reduction <add>, %579, %cst_89 [1] : vector<2x64xf32> to vector<2xf32>
    %581 = vector.shape_cast %580 : vector<2xf32> to vector<2x1xf32>
    %c14_i32 = arith.constant 14 : i32
    %582 = vector.broadcast %c14_i32 : i32 to vector<1x16xi32>
    %583 = arith.cmpi eq, %34, %582 : vector<1x16xi32>
    %584 = arith.extui %583 : vector<1x16xi1> to vector<1x16xi32>
    %585 = arith.sitofp %584 : vector<1x16xi32> to vector<1x16xf32>
    %586 = vector.broadcast %581 : vector<2x1xf32> to vector<2x16xf32>
    %587 = vector.broadcast %585 : vector<1x16xf32> to vector<2x16xf32>
    %588 = arith.mulf %586, %587 : vector<2x16xf32>
    %589 = arith.addf %554, %588 : vector<2x16xf32>
    %cst_90 = arith.constant dense<0.000000e+00> : vector<2x256xf32>
    %590 = tpu.matmul %577, %14, %cst_90 {dimension_numbers = #tpu.dot_dimension_numbers<[1], [0], [0], [1], [0, 0, 1, 1], [], []>} : vector<2x64xf32>, vector<64x256xf32>, vector<2x256xf32> -> vector<2x256xf32>
    %591 = vector.broadcast %15 : vector<1x256xf32> to vector<2x256xf32>
    %592 = arith.addf %591, %590 : vector<2x256xf32>
    %593 = vector.broadcast %25 : vector<1x256xf32> to vector<2x256xf32>
    %594 = arith.mulf %592, %593 : vector<2x256xf32>
    %595 = arith.negf %594 : vector<2x256xf32>
    %596 = math.exp %595 : vector<2x256xf32>
    %cst_91 = arith.constant 1.000000e+00 : f32
    %597 = vector.broadcast %cst_91 : f32 to vector<2x256xf32>
    %598 = arith.addf %597, %596 : vector<2x256xf32>
    %599 = arith.divf %597, %598 : vector<2x256xf32>
    %600 = vector.broadcast %25 : vector<1x256xf32> to vector<2x256xf32>
    %601 = arith.mulf %599, %600 : vector<2x256xf32>
    %602 = vector.broadcast %28 : vector<1x256xf32> to vector<2x256xf32>
    %603 = arith.addf %601, %602 : vector<2x256xf32>
    %604 = vector.extract_strided_slice %603 {offsets = [0, 0], sizes = [2, 64], strides = [1, 1]} : vector<2x256xf32> to vector<2x64xf32>
    %605 = vector.extract_strided_slice %603 {offsets = [0, 64], sizes = [2, 64], strides = [1, 1]} : vector<2x256xf32> to vector<2x64xf32>
    %606 = vector.extract_strided_slice %603 {offsets = [0, 128], sizes = [2, 64], strides = [1, 1]} : vector<2x256xf32> to vector<2x64xf32>
    %607 = vector.extract_strided_slice %603 {offsets = [0, 192], sizes = [2, 64], strides = [1, 1]} : vector<2x256xf32> to vector<2x64xf32>
    %608 = arith.mulf %605, %575 : vector<2x64xf32>
    %609 = arith.mulf %604, %606 : vector<2x64xf32>
    %610 = arith.addf %608, %609 : vector<2x64xf32>
    %611 = math.tanh %610 : vector<2x64xf32>
    %612 = arith.mulf %607, %611 : vector<2x64xf32>
    %613 = vector.broadcast %16 : vector<1x64xf32> to vector<2x64xf32>
    %614 = arith.mulf %612, %613 : vector<2x64xf32>
    %cst_92 = arith.constant dense<0.000000e+00> : vector<2xf32>
    %615 = vector.multi_reduction <add>, %614, %cst_92 [1] : vector<2x64xf32> to vector<2xf32>
    %616 = vector.shape_cast %615 : vector<2xf32> to vector<2x1xf32>
    %c15_i32 = arith.constant 15 : i32
    %617 = vector.broadcast %c15_i32 : i32 to vector<1x16xi32>
    %618 = arith.cmpi eq, %34, %617 : vector<1x16xi32>
    %619 = arith.extui %618 : vector<1x16xi1> to vector<1x16xi32>
    %620 = arith.sitofp %619 : vector<1x16xi32> to vector<1x16xf32>
    %621 = vector.broadcast %616 : vector<2x1xf32> to vector<2x16xf32>
    %622 = vector.broadcast %620 : vector<1x16xf32> to vector<2x16xf32>
    %623 = arith.mulf %621, %622 : vector<2x16xf32>
    %624 = arith.addf %589, %623 : vector<2x16xf32>
    %c0_93 = arith.constant 0 : index
    %c0_94 = arith.constant 0 : index
    %625 = vector.load %arg7[%c0_93, %c0_94] : memref<1x1xf32, #tpu.memory_space<vmem>>, vector<1x1xf32>
    %626 = vector.broadcast %625 : vector<1x1xf32> to vector<2x16xf32>
    %627 = arith.addf %624, %626 : vector<2x16xf32>
    %628 = arith.negf %627 : vector<2x16xf32>
    %629 = math.exp %628 : vector<2x16xf32>
    %cst_95 = arith.constant 1.000000e+00 : f32
    %630 = vector.broadcast %cst_95 : f32 to vector<2x16xf32>
    %631 = arith.addf %630, %629 : vector<2x16xf32>
    %632 = arith.divf %630, %631 : vector<2x16xf32>
    %c0_96 = arith.constant 0 : index
    %c0_97 = arith.constant 0 : index
    %633 = vector.load %arg8[%c0_96, %c0_97] : memref<2x16xf32, #tpu.memory_space<vmem>>, vector<2x16xf32>
    tpu.vector_store %arg8[%c0_96, %c0_97], %632 {strides = array<i32>} : memref<2x16xf32, #tpu.memory_space<vmem>>, vector<2x16xf32>,
    return
  }
}

</mosaic_0001>

<bundles_post_ra>
// kernel: wake_word_forward.1
= control target key start
LH: loop header
LB: loop body
LE: loop exit
PB: predicated region body
PF: predicated region fallthrough
CT: control target
= control target key end

     0   :  { %s3806_s0 = inlined_call_operand.vmem [shape: f32[32,240], index: 0, kind: input, shape index: {}]   ;;  %s3807_s1 = inlined_call_operand.vmem [shape: f32[240,32], index: 1, kind: input, shape index: {}]   ;;  %s3808_s2 = inlined_call_operand.vmem [shape: f32[1,32], index: 2, kind: input, shape index: {}]   ;;  %s3809_s3 = inlined_call_operand.vmem [shape: f32[32,256], index: 3, kind: input, shape index: {}]   ;;  %s3810_s4 = inlined_call_operand.vmem [shape: f32[1,256], index: 4, kind: input, shape index: {}]   ;;  %s3811_s5 = inlined_call_operand.vmem [shape: f32[64,256], index: 5, kind: input, shape index: {}]   ;;  %s3812_s6 = inlined_call_operand.vmem [shape: f32[1,64], index: 6, kind: input, shape index: {}]   ;;  %s3813_s7 = inlined_call_operand.<no memory space> [shape: f32[1,1], index: 7, kind: input, shape index: {}]   ;;  %s3814_s8 = inlined_call_operand.hbm [shape: f32[2,16], index: 8, kind: output, shape index: {}]  }
   0x1   :  { %v13_v0 = vstv %s3813_s7 }
   0x2   :  { %14 = vst [vmem:[#allocation3] sm:$0x1] %v13_v0 }
   0x3   :  { %v55_v1 = vld [vmem:[%s3807_s1 + $0x78] sm:$0xff]  ;;  %v54_v2 = vld [vmem:[%s3807_s1 + $0x70] sm:$0xff]  ;;  %v69_v3 = vld [vmem:[%s3807_s1 + $0xe8] sm:$0xff] }
   0x4   :  { %87 = vmatpush.msra.mxu0 %v55_v1  ;;  %v53_v4 = vld [vmem:[%s3807_s1 + $0x68] sm:$0xff]  ;;  %118 = vmatpush.msra.mxu1 %v69_v3  ;;  %v68_v5 = vld [vmem:[%s3807_s1 + $0xe0] sm:$0xff]  ;;  %v67_v6 = vld [vmem:[%s3807_s1 + $0xd8] sm:$0xff] }
   0x5   :  { %v52_v7 = vld [vmem:[%s3807_s1 + $0x60] sm:$0xff]  ;;  %v66_v8 = vld [vmem:[%s3807_s1 + $0xd0] sm:$0xff]  ;;  %v51_v9 = vld [vmem:[%s3807_s1 + $0x58] sm:$0xff] }
   0x6   :  { %88 = vmatpush.msra.mxu0 %v54_v2  ;;  %119 = vmatpush.msra.mxu1 %v68_v5  ;;  %v65_v10 = vld [vmem:[%s3807_s1 + $0xc8] sm:$0xff]  ;;  %v50_v11 = vld [vmem:[%s3807_s1 + $0x50] sm:$0xff]  ;;  %v64_v12 = vld [vmem:[%s3807_s1 + $0xc0] sm:$0xff] }
   0x7   :  { %v49_v13 = vld [vmem:[%s3807_s1 + $0x48] sm:$0xff]  ;;  %v48_v14 = vld [vmem:[%s3807_s1 + $0x40] sm:$0xff]  ;;  %v63_v15 = vld [vmem:[%s3807_s1 + $0xb8] sm:$0xff] }
   0x8   :  { %89 = vmatpush.msra.mxu0 %v53_v4  ;;  %120 = vmatpush.msra.mxu1 %v67_v6 }
   0xa   :  { %90 = vmatpush.msra.mxu0 %v52_v7  ;;  %121 = vmatpush.msra.mxu1 %v66_v8 }
   0xc   :  { %91 = vmatpush.msra.mxu0 %v51_v9  ;;  %122 = vmatpush.msra.mxu1 %v65_v10 }
   0xe   :  { %92 = vmatpush.msra.mxu0 %v50_v11  ;;  %123 = vmatpush.msra.mxu1 %v64_v12 }
   0xf   :  { %15 = vsyncpa [#allocation5], 0  ;;  %v62_v16 = vld [vmem:[%s3807_s1 + $0xb0] sm:$0xff]  ;;  %v47_v17 = vld [vmem:[%s3807_s1 + $0x38] sm:$0xff]  ;;  %vm74_vm0 = vcmask 916480   ;;  %vm163_vm1 = vcmask 261120  }
  0x10   :  { %93 = vmatpush.msra.mxu0 %v49_v13  ;;  %124 = vmatpush.msra.mxu1 %v63_v15  ;;  %v61_v18 = vld [vmem:[%s3807_s1 + $0xa8] sm:$0xff]  ;;  %v46_v19 = vld [vmem:[%s3807_s1 + $0x30] sm:$0xff]  ;;  %v60_v20 = vld [vmem:[%s3807_s1 + $0xa0] sm:$0xff]  ;;  %s2788_s12 = smov 64   ;;  %vm278_vm12 = vcmask 523264  }
  0x11   :  { %v45_v21 = vld [vmem:[%s3807_s1 + $0x28] sm:$0xff]  ;;  %v59_v22 = vld [vmem:[%s3807_s1 + $0x98] sm:$0xff]  ;;  %v44_v23 = vld [vmem:[%s3807_s1 + $0x20] sm:$0xff] }
  0x12   :  { %94 = vmatpush.msra.mxu0 %v48_v14  ;;  %125 = vmatpush.msra.mxu1 %v62_v16  ;;  %v58_v24 = vld [vmem:[%s3807_s1 + $0x90] sm:$0xff]  ;;  %v43_v25 = vld [vmem:[%s3807_s1 + $0x18] sm:$0xff]  ;;  %v57_v26 = vld [vmem:[%s3807_s1 + $0x88] sm:$0xff] }
  0x13   :  { %v42_v27 = vld [vmem:[%s3807_s1 + $0x10] sm:$0xff]  ;;  %v56_v28 = vld [vmem:[%s3807_s1 + $0x80] sm:$0xff]  ;;  %v41_v29 = vld [vmem:[%s3807_s1 + $0x8] sm:$0xff] }
  0x14   :  { %95 = vmatpush.msra.mxu0 %v47_v17  ;;  %126 = vmatpush.msra.mxu1 %v61_v18  ;;  %v33_v30 = vld [vmem:[%s3806_s0 + $0x8] sm:$0xff]  ;;  %v40_v31 = vld [vmem:[%s3807_s1] sm:$0xff]  ;;  %v35_v33 = vld [vmem:[%s3806_s0 + $0x18] sm:$0xff] }
  0x15   :  { %v32_v32 = vld [vmem:[%s3806_s0] sm:$0xff]  ;;  %v34_v34 = vld [vmem:[%s3806_s0 + $0x10] sm:$0xff]  ;;  %v37_v35 = vld [vmem:[%s3806_s0 + $0x28] sm:$0xff] }
  0x16   :  { %96 = vmatpush.msra.mxu0 %v46_v19  ;;  %127 = vmatpush.msra.mxu1 %v60_v20  ;;  %v36_v36 = vld [vmem:[%s3806_s0 + $0x20] sm:$0xff]  ;;  %v39_v37 = vld [vmem:[%s3806_s0 + $0x38] sm:$0xff]  ;;  %v38_v38 = vld [vmem:[%s3806_s0 + $0x30] sm:$0xff]  ;;  %v2786_v20 = vmov 0.0  }
  0x17   :  { %v155_v39 = vld [vmem:[%s3809_s3 + $0x30] sm:$0xff]  ;;  %v156_v40 = vld [vmem:[%s3809_s3 + $0x38] sm:$0xff]  ;;  %v153_v41 = vld [vmem:[%s3809_s3 + $0x20] sm:$0xff] }
  0x18   :  { %97 = vmatpush.msra.mxu0 %v45_v21  ;;  %128 = vmatpush.msra.mxu1 %v59_v22  ;;  %v154_v42 = vld [vmem:[%s3809_s3 + $0x28] sm:$0xff]  ;;  %v151_v43 = vld [vmem:[%s3809_s3 + $0x10] sm:$0xff]  ;;  %v152_v44 = vld [vmem:[%s3809_s3 + $0x18] sm:$0xff] }
  0x19   :  { %188 = vmatpush.msra.mxu2 %v155_v39  ;;  %217 = vmatpush.msra.mxu3 %v156_v40  ;;  %v149_v45 = vld [vmem:[%s3809_s3] sm:$0xff]  ;;  %v150_v46 = vld [vmem:[%s3809_s3 + $0x8] sm:$0xff]  ;;  %v2984_v47 = vld [vmem:[%s3811_s5 + $0x78] sm:$0xff] }
  0x1a   :  { %98 = vmatpush.msra.mxu0 %v44_v23  ;;  %129 = vmatpush.msra.mxu1 %v58_v24  ;;  %v2991_v48 = vld [vmem:[%s3811_s5 + $0x68] sm:$0xff]  ;;  %v2996_v49 = vld [vmem:[%s3811_s5 + $0x70] sm:$0xff]  ;;  %v3003_v50 = vld [vmem:[%s3811_s5 + $0x58] sm:$0xff] }
  0x1b   :  { %189 = vmatpush.msra.mxu2 %v153_v41  ;;  %218 = vmatpush.msra.mxu3 %v154_v42  ;;  %v3011_v51 = vld [vmem:[%s3811_s5 + $0x60] sm:$0xff]  ;;  %v3019_v52 = vld [vmem:[%s3811_s5 + $0x48] sm:$0xff]  ;;  %v3024_v53 = vld [vmem:[%s3811_s5 + $0x50] sm:$0xff] }
  0x1c   :  { %99 = vmatpush.msra.mxu0 %v43_v25  ;;  %130 = vmatpush.msra.mxu1 %v57_v26  ;;  %v3031_v54 = vld [vmem:[%s3811_s5 + $0x38] sm:$0xff]  ;;  %v3039_v55 = vld [vmem:[%s3811_s5 + $0x40] sm:$0xff]  ;;  %v3052_v58 = vld [vmem:[%s3811_s5 + $0x28] sm:$0xff] }
  0x1d   :  { %190 = vmatpush.msra.mxu2 %v151_v43  ;;  %219 = vmatpush.msra.mxu3 %v152_v44  ;;  %v3047_v56 = vld [vmem:[%s3808_s2] ss:$0 sm:$0xff]  ;;  %v3057_v59 = vld [vmem:[%s3811_s5 + $0x30] sm:$0xff]  ;;  %v3064_v60 = vld [vmem:[%s3811_s5 + $0x18] sm:$0xff]  ;;  %s2439_s2 = sshll.u32 %s3814_s8, 4  ;;  %s2440_s2 = int_to_ptr.hbm [resolvable:$true] %s2439_s2 }
  0x1e   :  { %100 = vmatpush.msra.mxu0 %v42_v27  ;;  %131 = vmatpush.msra.mxu1 %v56_v28  ;;  %v3069_v61 = vld [vmem:[%s3811_s5 + $0x20] sm:$0xff]  ;;  %v3074_v62 = vld [vmem:[%s3811_s5 + $0x8] sm:$0xff]  ;;  %v3083_v0 = vld [vmem:[%s3811_s5 + $0x10] sm:$0xff] }
  0x1f   :  { %2448 = vmatmul.msk.f32.vlgmr.msra.gmra.mxu1 %vm74_vm0, %v33_v30  ;;  %191 = vmatpush.msra.mxu2 %v149_v45  ;;  %v3089_v2 = vld [vmem:[%s3811_s5] sm:$0xff]  ;;  %v2787_v45 = vmov 1.0  }
  0x20   :  { %101 = vmatpush.msra.mxu0 %v41_v29  ;;  %220 = vmatpush.msra.mxu3 %v150_v46  ;;  %v157_v21 = vld [vmem:[%s3810_s4] sm:$0x3] }
  0x21   :  { %290 = vmatpush.msrb.mxu2 %v2996_v49  ;;  %529 = vmatpush.msrb.mxu1 %v2996_v49  ;;  %v159_v22 = vperm.slane %v157_v21, 0  ;;  %v160_v23 = vperm.slane %v157_v21, 1 }
  0x22   :  { %102 = vmatpush.msra.mxu0 %v40_v31  ;;  %310 = vmatpush.msrb.mxu3 %v2984_v47 }
  0x23   :  { %103 = vmatmul.f32.vlgmr.msra.gmra.mxu0 %v32_v32  ;;  %291 = vmatpush.msrb.mxu2 %v3011_v51 }
  0x24   :  { %549 = vmatpush.msrb.mxu0 %v2984_v47  ;;  %311 = vmatpush.msrb.mxu3 %v2991_v48 }
  0x25   :  { %530 = vmatpush.msrb.mxu1 %v3011_v51  ;;  %292 = vmatpush.msrb.mxu2 %v3024_v53 }
  0x26   :  { %550 = vmatpush.msrb.mxu0 %v2991_v48  ;;  %312 = vmatpush.msrb.mxu3 %v3003_v50 }
  0x27   :  { %2449 = vmatmul.msk.f32.gmra.mxu1 %vm74_vm0, %v35_v33  ;;  %293 = vmatpush.msrb.mxu2 %v3039_v55 }
  0x28   :  { %551 = vmatpush.msrb.mxu0 %v3003_v50  ;;  %313 = vmatpush.msrb.mxu3 %v3019_v52 }
  0x29   :  { %531 = vmatpush.msrb.mxu1 %v3024_v53  ;;  %294 = vmatpush.msrb.mxu2 %v3057_v59 }
  0x2a   :  { %552 = vmatpush.msrb.mxu0 %v3019_v52  ;;  %314 = vmatpush.msrb.mxu3 %v3031_v54 }
  0x2b   :  { %106 = vmatmul.f32.gmra.mxu0 %v34_v34  ;;  %532 = vmatpush.msrb.mxu1 %v3039_v55 }
  0x2c   :  { %553 = vmatpush.msrb.mxu0 %v3031_v54  ;;  %315 = vmatpush.msrb.mxu3 %v3052_v58 }
  0x2d   :  { %533 = vmatpush.msrb.mxu1 %v3057_v59  ;;  %295 = vmatpush.msrb.mxu2 %v3069_v61 }
  0x2e   :  { %554 = vmatpush.msrb.mxu0 %v3052_v58  ;;  %316 = vmatpush.msrb.mxu3 %v3064_v60 }
  0x2f   :  { %2450 = vmatmul.msk.f32.gmra.mxu1 %vm74_vm0, %v37_v35  ;;  %296 = vmatpush.msrb.mxu2 %v3083_v0 }
  0x30   :  { %555 = vmatpush.msrb.mxu0 %v3064_v60  ;;  %534 = vmatpush.msrb.mxu1 %v3069_v61 }
  0x31   :  { %317 = vmatpush.msrb.mxu3 %v3074_v62  ;;  %297 = vmatpush.msrb.mxu2 %v3089_v2 }
  0x32   :  { %556 = vmatpush.msrb.mxu0 %v3074_v62  ;;  %535 = vmatpush.msrb.mxu1 %v3083_v0 }
  0x33   :  { %109 = vmatmul.f32.gmra.mxu0 %v36_v36  ;;  %v260_v36 = vlaneseq }
  0x34   :  { %807 = vmatpush.msra.mxu0 %v2984_v47  ;;  %536 = vmatpush.msrb.mxu1 %v3089_v2 }
  0x36   :  { %787 = vmatpush.msra.mxu1 %v2996_v49  ;;  %808 = vmatpush.msra.mxu0 %v2991_v48 }
  0x37   :  { %2451 = vmatmul.msk.f32.gmra.mxu1 %vm74_vm0, %v39_v37  ;;  %v3163_v37 = vand.u32 127, %v260_v36 }
  0x38   :  { %788 = vmatpush.msra.mxu1 %v3011_v51  ;;  %809 = vmatpush.msra.mxu0 %v3003_v50 }
  0x39   :  { %v262_v42 = vadd.s32 128, %v3163_v37  ;;  %vm273_vm11 = vcmp.lt.s32.totalorder %v3163_v37, 32 }
  0x3a   :  { %789 = vmatpush.msra.mxu1 %v3024_v53  ;;  %810 = vmatpush.msra.mxu0 %v3019_v52 }
  0x3b   :  { %112 = vmatmul.f32.gmra.mxu0 %v38_v38  ;;  %vm266_vm2 = vcmp.lt.s32.totalorder %v262_v42, 192 }
  0x3c   :  { %790 = vmatpush.msra.mxu1 %v3039_v55  ;;  %811 = vmatpush.msra.mxu0 %v3031_v54  ;;  %v3167_v46 = vsel %vm266_vm2, 2.0, %v2787_v45 }
  0x3e   :  { %791 = vmatpush.msra.mxu1 %v3057_v59  ;;  %812 = vmatpush.msra.mxu0 %v3052_v58 }
  0x40   :  { %792 = vmatpush.msra.mxu1 %v3069_v61  ;;  %813 = vmatpush.msra.mxu0 %v3064_v60 }
  0x42   :  { %793 = vmatpush.msra.mxu1 %v3083_v0  ;;  %814 = vmatpush.msra.mxu0 %v3074_v62 }
  0x44   :  { %794 = vmatpush.msra.mxu1 %v3089_v2 }
  0x9c   :  { %v133_v57 = vpop.f32.mrf.mxu1 }
  0xa0   :  { %v104_v63 = vpop.f32.mrf.mxu0 }
  0xa1   :  { %v105_v1 = vadd.f32 %v3047_v56, %v104_v63 }
  0xa3   :  { %v134_v3 = vadd.f32 %v133_v57, %v105_v1 }
  0xa4   :  { %v136_v5 = vpop.f32.mrf.mxu1 }
  0xa5   :  { %v145_v4 = vmax.f32 %v134_v3, 0.0 }
  0xa7   :  { %2452 = vmatmul.msk.f32.vlgmr.msra.gmra.mxu2 %vm163_vm1, %v145_v4  ;;  %2456 = vmatmul.msk.f32.vlgmr.msra.gmra.mxu3 %vm163_vm1, %v145_v4 }
  0xa8   :  { %v107_v6 = vpop.f32.mrf.mxu0  ;;  %398 = vmatpush.msra.mxu2 %v2996_v49  ;;  %418 = vmatpush.msra.mxu3 %v2984_v47 }
  0xa9   :  { %v108_v7 = vadd.f32 %v3047_v56, %v107_v6 }
  0xaa   :  { %399 = vmatpush.msra.mxu2 %v3011_v51  ;;  %419 = vmatpush.msra.mxu3 %v2991_v48 }
  0xab   :  { %v137_v8 = vadd.f32 %v136_v5, %v108_v7 }
  0xac   :  { %400 = vmatpush.msra.mxu2 %v3024_v53  ;;  %420 = vmatpush.msra.mxu3 %v3003_v50  ;;  %v139_v10 = vpop.f32.mrf.mxu1 }
  0xad   :  { %v146_v9 = vmax.f32 %v137_v8, 0.0 }
  0xae   :  { %401 = vmatpush.msra.mxu2 %v3039_v55  ;;  %421 = vmatpush.msra.mxu3 %v3019_v52 }
  0xaf   :  { %2453 = vmatmul.msk.f32.gmra.mxu2 %vm163_vm1, %v146_v9  ;;  %2457 = vmatmul.msk.f32.gmra.mxu3 %vm163_vm1, %v146_v9 }
  0xb0   :  { %v110_v11 = vpop.f32.mrf.mxu0  ;;  %402 = vmatpush.msra.mxu2 %v3057_v59  ;;  %422 = vmatpush.msra.mxu3 %v3031_v54 }
  0xb1   :  { %v111_v12 = vadd.f32 %v3047_v56, %v110_v11 }
  0xb2   :  { %403 = vmatpush.msra.mxu2 %v3069_v61  ;;  %423 = vmatpush.msra.mxu3 %v3052_v58 }
  0xb3   :  { %v140_v13 = vadd.f32 %v139_v10, %v111_v12 }
  0xb4   :  { %404 = vmatpush.msra.mxu2 %v3083_v0  ;;  %424 = vmatpush.msra.mxu3 %v3064_v60  ;;  %v142_v16 = vpop.f32.mrf.mxu1 }
  0xb5   :  { %v147_v14 = vmax.f32 %v140_v13, 0.0 }
  0xb6   :  { %405 = vmatpush.msra.mxu2 %v3089_v2  ;;  %425 = vmatpush.msra.mxu3 %v3074_v62 }
  0xb7   :  { %2454 = vmatmul.msk.f32.gmra.mxu2 %vm163_vm1, %v147_v14  ;;  %2458 = vmatmul.msk.f32.gmra.mxu3 %vm163_vm1, %v147_v14 }
  0xb8   :  { %v113_v15 = vpop.f32.mrf.mxu0 }
  0xb9   :  { %v114_v17 = vadd.f32 %v3047_v56, %v113_v15 }
  0xbb   :  { %v143_v18 = vadd.f32 %v142_v16, %v114_v17 }
  0xbd   :  { %v148_v19 = vmax.f32 %v143_v18, 0.0 }
  0xbf   :  { %2455 = vmatmul.msk.f32.gmra.mxu2 %vm163_vm1, %v148_v19  ;;  %2459 = vmatmul.msk.f32.gmra.mxu3 %vm163_vm1, %v148_v19 }
  0xc7   :  { %298 = vmatmul.f32.vlgmr.msrb.gmra.mxu2 %v2786_v20  ;;  %318 = vmatmul.f32.vlgmr.msrb.gmra.mxu3 %v2786_v20 }
  0xc8   :  { %658 = vmatpush.msrb.mxu2 %v2996_v49  ;;  %678 = vmatpush.msrb.mxu3 %v2984_v47 }
  0xca   :  { %659 = vmatpush.msrb.mxu2 %v3011_v51  ;;  %679 = vmatpush.msrb.mxu3 %v2991_v48 }
  0xcc   :  { %660 = vmatpush.msrb.mxu2 %v3024_v53  ;;  %680 = vmatpush.msrb.mxu3 %v3003_v50 }
  0xce   :  { %661 = vmatpush.msrb.mxu2 %v3039_v55  ;;  %681 = vmatpush.msrb.mxu3 %v3019_v52 }
  0xd0   :  { %662 = vmatpush.msrb.mxu2 %v3057_v59  ;;  %682 = vmatpush.msrb.mxu3 %v3031_v54 }
  0xd2   :  { %663 = vmatpush.msrb.mxu2 %v3069_v61  ;;  %683 = vmatpush.msrb.mxu3 %v3052_v58 }
  0xd4   :  { %664 = vmatpush.msrb.mxu2 %v3083_v0  ;;  %684 = vmatpush.msrb.mxu3 %v3064_v60 }
  0xd6   :  { %665 = vmatpush.msrb.mxu2 %v3089_v2  ;;  %685 = vmatpush.msrb.mxu3 %v3074_v62 }
 0x12a   :  { %v193_v24 = vpop.f32.mrf.mxu2  ;;  %v222_v25 = vpop.f32.mrf.mxu3 }
 0x12b   :  { %v194_v26 = vadd.f32 %v193_v24, %v159_v22  ;;  %v223_v27 = vadd.f32 %v222_v25, %v160_v23 }
 0x12d   :  { %234 = vst [vmem:[#allocation2 + $0x30] sm:$0xff] %v194_v26 }
 0x12e   :  { %235 = vst [vmem:[#allocation2] sm:$0xff] %v223_v27  ;;  %v3172_v27 = vsel %vm266_vm2, -1.0, %v2786_v20 }
 0x132   :  { %v196_v28 = vpop.f32.mrf.mxu2  ;;  %v225_v29 = vpop.f32.mrf.mxu3 }
 0x133   :  { %v197_v30 = vadd.f32 %v196_v28, %v159_v22  ;;  %v226_v31 = vadd.f32 %v225_v29, %v160_v23 }
 0x134   :  { %v276_v43 = vld [vmem:[#allocation2 + $0x30] sm:$0x3] }
 0x135   :  { %236 = vst [vmem:[#allocation2 + $0x18] sm:$0xff] %v197_v30  ;;  %v277_v56 = vld [vmem:[#allocation2] sm:$0x3] }
 0x136   :  { %237 = vst [vmem:[#allocation2 + $0x10] sm:$0xff] %v226_v31 }
 0x13a   :  { %v199_v32 = vpop.f32.mrf.mxu2  ;;  %v228_v33 = vpop.f32.mrf.mxu3 }
 0x13b   :  { %v200_v34 = vadd.f32 %v199_v32, %v159_v22  ;;  %v229_v35 = vadd.f32 %v228_v33, %v160_v23 }
 0x13d   :  { %238 = vst [vmem:[#allocation2 + $0x8] sm:$0xff] %v200_v34 }
 0x13e   :  { %239 = vst [vmem:[#allocation2 + $0x20] sm:$0xff] %v229_v35  ;;  %v2460_v35 = vsel %vm273_vm11, 1.0, %v2786_v20 }
 0x142   :  { %v202_v38 = vpop.f32.mrf.mxu2  ;;  %v231_v39 = vpop.f32.mrf.mxu3 }
 0x143   :  { %v203_v40 = vadd.f32 %v202_v38, %v159_v22  ;;  %v232_v41 = vadd.f32 %v231_v39, %v160_v23 }
 0x145   :  { %240 = vst [vmem:[#allocation2 + $0x28] sm:$0xff] %v203_v40 }
 0x146   :  { %241 = vst [vmem:[#allocation2 + $0x38] sm:$0xff] %v232_v41 }
 0x14a   :  { %v299_v44 = vpop.f32.mrf.mxu2  ;;  %v319_v57 = vpop.f32.mrf.mxu3 }
 0x14b   :  { %v322_v63 = vadd.f32 %v299_v44, %v276_v43  ;;  %v323_v1 = vadd.f32 %v319_v57, %v277_v56 }
 0x14d   :  { %v2461_v3 = vmul.f32 -1.442695, %v322_v63  ;;  %v325_v4 = vmul.f32 %v323_v1, %v3167_v46  ;;  %v383_v1 = vld [vmem:[#allocation2 + $0x30] sm:$0xc] }
 0x14f   :  { %2554 = vpow2.f32 %v2461_v3  ;;  %v2462_v5 = vmul.f32 -1.442695, %v325_v4  ;;  %v384_v3 = vld [vmem:[#allocation2] sm:$0xc] }
 0x151   :  { %2556 = vpow2.f32 %v2462_v5 }
 0x155   :  { %v2555_v6 = vpop.eup %2554 }
 0x156   :  { %v332_v7 = vadd.f32 1.0, %v2555_v6 }
 0x157   :  { %v2557_v8 = vpop.eup %2556 }
 0x158   :  { %2558 = vrcp.f32 %v332_v7  ;;  %v333_v9 = vadd.f32 1.0, %v2557_v8  ;;  %v345_v23 = vand.u32 2147483648, %v332_v7  ;;  %vm339_vm7 = vweird.f32 %v332_v7 }
 0x159   :  { %v343_v25 = vand.u32 2147483647, %v332_v7 }
 0x15a   :  { %2560 = vrcp.f32 %v333_v9  ;;  %v360_v17 = vand.u32 2147483648, %v333_v9  ;;  %v358_v19 = vand.u32 2147483647, %v333_v9  ;;  %vm354_vm5 = vweird.f32 %v333_v9 }
 0x15b   :  { %v346_v31 = vor.u32 1.1754944e-38, %v345_v23  ;;  %vm344_vm10 = vcmp.eq.f32.partialorder %v343_v25, 8.507059e+37 }
 0x15c   :  { %v361_v24 = vor.u32 1.1754944e-38, %v360_v17  ;;  %vm359_vm8 = vcmp.eq.f32.partialorder %v358_v19, 8.507059e+37 }
 0x15e   :  { %v2559_v10 = vpop.eup %2558 }
 0x15f   :  { %v335_v11 = vmul.f32 %v2559_v10, %v332_v7  ;;  %vm340_vm4 = vweird.f32 %v2559_v10 }
 0x160   :  { %v2561_v12 = vpop.eup %2560  ;;  %vm341_vm9 = vmor %vm339_vm7, %vm340_vm4 }
 0x161   :  { %v336_v13 = vsub.f32 1.0, %v335_v11  ;;  %v350_v14 = vmul.f32 %v2561_v12, %v333_v9  ;;  %vm355_vm3 = vweird.f32 %v2561_v12 }
 0x162   :  { %vm356_vm6 = vmor %vm354_vm5, %vm355_vm3 }
 0x163   :  { %v337_v15 = vmul.f32 %v2559_v10, %v336_v13  ;;  %v351_v16 = vsub.f32 1.0, %v350_v14 }
 0x165   :  { %v352_v18 = vmul.f32 %v2561_v12, %v351_v16  ;;  %v338_v21 = vadd.f32 %v2559_v10, %v337_v15 }
 0x167   :  { %v353_v22 = vadd.f32 %v2561_v12, %v352_v18  ;;  %v342_v29 = vsel %vm341_vm9, %v2559_v10, %v338_v21 }
 0x168   :  { %v347_v33 = vsel %vm344_vm10, %v346_v31, %v342_v29 }
 0x169   :  { %v357_v26 = vsel %vm356_vm6, %v2561_v12, %v353_v22  ;;  %v368_v36 = vmul.f32 0.0, %v347_v33 }
 0x16a   :  { %v362_v28 = vsel %vm359_vm8, %v361_v24, %v357_v26 }
 0x16b   :  { %v365_v30 = vmul.f32 %v362_v28, %v3167_v46 }
 0x16d   :  { %v367_v32 = vadd.f32 %v365_v30, %v3172_v27 }
 0x16f   :  { %v369_v34 = vmul.f32 %v367_v32, %v347_v33 }
 0x171   :  { %371 = vrot.lane.b32.xlu0 %v369_v34, %s2788_s12 }
 0x179   :  { %378 = vrot.lane.b32.xlu0 %v2460_v35, %s2788_s12 }
 0x1e3   :  { %v372_v38 = vpop.permute.xlu0 %371 }
 0x1e4   :  { %v374_v39 = vadd.f32 %v372_v38, %v368_v36 }
 0x1e6   :  { %2562 = vtanh.f32 %v374_v39 }
 0x1eb   :  { %v379_v42 = vpop.permute.xlu0 %378 }
 0x1ec   :  { %v2563_v40 = vpop.eup %2562  ;;  %v382_v18 = vmul.f32 %v379_v42, %v374_v39 }
 0x1ed   :  { %v376_v41 = vmul.f32 %v2563_v40, %v367_v32 }
 0x1ee   :  { %v483_v29 = vrot.slane %v382_v18, 6 }
 0x1ef   :  { %v381_v43 = vmul.f32 %v379_v42, %v376_v41 }
 0x1f1   :  { %386 = vrot.lane.b32.xlu1 %v381_v43, %s2788_s12 }
 0x263   :  { %v387_v44 = vpop.permute.xlu1 %386 }
 0x264   :  { %2463 = vmatmul.msk.f32.vlgmr.msra.gmra.mxu2 %vm278_vm12, %v387_v44  ;;  %2464 = vmatmul.msk.f32.vlgmr.msra.gmra.mxu3 %vm278_vm12, %v387_v44 }
 0x265   :  { %909 = vmatpush.msra.mxu2 %v2996_v49  ;;  %929 = vmatpush.msra.mxu3 %v2984_v47 }
 0x267   :  { %910 = vmatpush.msra.mxu2 %v3011_v51  ;;  %930 = vmatpush.msra.mxu3 %v2991_v48 }
 0x269   :  { %911 = vmatpush.msra.mxu2 %v3024_v53  ;;  %931 = vmatpush.msra.mxu3 %v3003_v50 }
 0x26b   :  { %912 = vmatpush.msra.mxu2 %v3039_v55  ;;  %932 = vmatpush.msra.mxu3 %v3019_v52 }
 0x26d   :  { %913 = vmatpush.msra.mxu2 %v3057_v59  ;;  %933 = vmatpush.msra.mxu3 %v3031_v54 }
 0x26f   :  { %914 = vmatpush.msra.mxu2 %v3069_v61  ;;  %934 = vmatpush.msra.mxu3 %v3052_v58 }
 0x271   :  { %915 = vmatpush.msra.mxu2 %v3083_v0  ;;  %935 = vmatpush.msra.mxu3 %v3064_v60 }
 0x273   :  { %916 = vmatpush.msra.mxu2 %v3089_v2  ;;  %936 = vmatpush.msra.mxu3 %v3074_v62 }
 0x2e7   :  { %v407_v45 = vpop.f32.mrf.mxu2  ;;  %v427_v56 = vpop.f32.mrf.mxu3 }
 0x2e8   :  { %v432_v57 = vrot.slane %v407_v45, 6  ;;  %v433_v63 = vrot.slane %v427_v56, 6 }
 0x2ea   :  { %v436_v4 = vadd.f32 %v432_v57, %v383_v1  ;;  %v437_v5 = vadd.f32 %v433_v63, %v384_v3 }
 0x2ec   :  { %v2465_v6 = vmul.f32 -1.442695, %v436_v4  ;;  %v439_v7 = vmul.f32 %v437_v5, %v3167_v46  ;;  %v513_v5 = vld [vmem:[#allocation2 + $0x30] sm:$0x30] }
 0x2ee   :  { %2564 = vpow2.f32 %v2465_v6  ;;  %v2466_v8 = vmul.f32 -1.442695, %v439_v7  ;;  %v514_v6 = vld [vmem:[#allocation2] sm:$0x30] }
 0x2f0   :  { %2566 = vpow2.f32 %v2466_v8 }
 0x2f4   :  { %v2565_v9 = vpop.eup %2564 }
 0x2f5   :  { %v446_v10 = vadd.f32 1.0, %v2565_v9 }
 0x2f6   :  { %v2567_v11 = vpop.eup %2566 }
 0x2f7   :  { %2568 = vrcp.f32 %v446_v10  ;;  %v447_v12 = vadd.f32 1.0, %v2567_v11  ;;  %v459_v19 = vand.u32 2147483648, %v446_v10  ;;  %v457_v22 = vand.u32 2147483647, %v446_v10 }
 0x2f8   :  { %vm453_vm14 = vweird.f32 %v446_v10 }
 0x2f9   :  { %2570 = vrcp.f32 %v447_v12  ;;  %v474_v24 = vand.u32 2147483648, %v447_v12  ;;  %v472_v28 = vand.u32 2147483647, %v447_v12  ;;  %v460_v30 = vor.u32 1.1754944e-38, %v459_v19 }
 0x2fa   :  { %vm458_vm1 = vcmp.eq.f32.partialorder %v457_v22, 8.507059e+37  ;;  %vm468_vm2 = vweird.f32 %v447_v12 }
 0x2fb   :  { %v475_v34 = vor.u32 1.1754944e-38, %v474_v24  ;;  %vm473_vm4 = vcmp.eq.f32.partialorder %v472_v28, 8.507059e+37 }
 0x2fd   :  { %v2569_v13 = vpop.eup %2568 }
 0x2fe   :  { %v449_v14 = vmul.f32 %v2569_v13, %v446_v10  ;;  %vm454_vm13 = vweird.f32 %v2569_v13 }
 0x2ff   :  { %v2571_v15 = vpop.eup %2570  ;;  %vm455_vm0 = vmor %vm453_vm14, %vm454_vm13 }
 0x300   :  { %v464_v16 = vmul.f32 %v2571_v15, %v447_v12  ;;  %v450_v17 = vsub.f32 1.0, %v449_v14  ;;  %vm469_vm15 = vweird.f32 %v2571_v15 }
 0x301   :  { %vm470_vm3 = vmor %vm468_vm2, %vm469_vm15 }
 0x302   :  { %v451_v21 = vmul.f32 %v2569_v13, %v450_v17  ;;  %v465_v23 = vsub.f32 1.0, %v464_v16 }
 0x304   :  { %v452_v25 = vadd.f32 %v2569_v13, %v451_v21  ;;  %v466_v26 = vmul.f32 %v2571_v15, %v465_v23 }
 0x306   :  { %v456_v31 = vsel %vm455_vm0, %v2569_v13, %v452_v25  ;;  %v467_v32 = vadd.f32 %v2571_v15, %v466_v26 }
 0x307   :  { %v461_v33 = vsel %vm458_vm1, %v460_v30, %v456_v31 }
 0x308   :  { %v471_v35 = vsel %vm470_vm3, %v2571_v15, %v467_v32  ;;  %v485_v36 = vmul.f32 %v483_v29, %v461_v33 }
 0x309   :  { %v476_v38 = vsel %vm473_vm4, %v475_v34, %v471_v35 }
 0x30a   :  { %v479_v39 = vmul.f32 %v476_v38, %v3167_v46 }
 0x30c   :  { %v481_v40 = vadd.f32 %v479_v39, %v3172_v27 }
 0x30e   :  { %v486_v41 = vmul.f32 %v481_v40, %v461_v33 }
 0x310   :  { %488 = vrot.lane.b32.xlu1 %v486_v41, %s2788_s12 }
 0x382   :  { %v489_v42 = vpop.permute.xlu1 %488 }
 0x383   :  { %v3203_v43 = vadd.f32 %v489_v42, %v485_v36 }
 0x385   :  { %2572 = vtanh.f32 %v3203_v43  ;;  %v614_v31 = vrot.slane %v3203_v43, 6 }
 0x38b   :  { %v2573_v44 = vpop.eup %2572 }
 0x38c   :  { %v3206_v45 = vmul.f32 %v2573_v44, %v481_v40 }
 0x38e   :  { %v516_v56 = vrot.slane %v3206_v45, 2 }
 0x390   :  { %517 = vrot.lane.b32.xlu2 %v516_v56, %s2788_s12 }
 0x3ea   :  { %v518_v57 = vpop.permute.xlu2 %517 }
 0x3eb   :  { %2468 = vmatmul.msk.f32.vlgmr.msrb.gmra.mxu1 %vm278_vm12, %v518_v57  ;;  %2469 = vmatmul.msk.f32.vlgmr.msrb.gmra.mxu0 %vm278_vm12, %v518_v57 }
 0x3ec   :  { %1034 = vmatpush.msrb.mxu1 %v2996_v49  ;;  %1054 = vmatpush.msrb.mxu0 %v2984_v47 }
 0x3ee   :  { %1035 = vmatpush.msrb.mxu1 %v3011_v51  ;;  %1055 = vmatpush.msrb.mxu0 %v2991_v48 }
 0x3f0   :  { %1036 = vmatpush.msrb.mxu1 %v3024_v53  ;;  %1056 = vmatpush.msrb.mxu0 %v3003_v50 }
 0x3f2   :  { %1037 = vmatpush.msrb.mxu1 %v3039_v55  ;;  %1057 = vmatpush.msrb.mxu0 %v3019_v52 }
 0x3f4   :  { %1038 = vmatpush.msrb.mxu1 %v3057_v59  ;;  %1058 = vmatpush.msrb.mxu0 %v3031_v54 }
 0x3f6   :  { %1039 = vmatpush.msrb.mxu1 %v3069_v61  ;;  %1059 = vmatpush.msrb.mxu0 %v3052_v58 }
 0x3f8   :  { %1040 = vmatpush.msrb.mxu1 %v3083_v0  ;;  %1060 = vmatpush.msrb.mxu0 %v3064_v60 }
 0x3fa   :  { %1041 = vmatpush.msrb.mxu1 %v3089_v2  ;;  %1061 = vmatpush.msrb.mxu0 %v3074_v62 }
 0x468   :  { %v538_v63 = vpop.f32.mrf.mxu1  ;;  %v558_v1 = vpop.f32.mrf.mxu0 }
 0x469   :  { %v563_v3 = vrot.slane %v538_v63, 4  ;;  %v564_v4 = vrot.slane %v558_v1, 4 }
 0x46b   :  { %v567_v7 = vadd.f32 %v563_v3, %v513_v5  ;;  %v568_v8 = vadd.f32 %v564_v4, %v514_v6 }
 0x46d   :  { %v2470_v9 = vmul.f32 -1.442695, %v567_v7  ;;  %v570_v10 = vmul.f32 %v568_v8, %v3167_v46  ;;  %v642_v8 = vld [vmem:[#allocation2 + $0x30] sm:$0xc0] }
 0x46f   :  { %2574 = vpow2.f32 %v2470_v9  ;;  %v2471_v11 = vmul.f32 -1.442695, %v570_v10  ;;  %v643_v9 = vld [vmem:[#allocation2] sm:$0xc0] }
 0x471   :  { %2576 = vpow2.f32 %v2471_v11 }
 0x475   :  { %v2575_v12 = vpop.eup %2574 }
 0x476   :  { %v577_v13 = vadd.f32 1.0, %v2575_v12 }
 0x477   :  { %v2577_v14 = vpop.eup %2576 }
 0x478   :  { %2578 = vrcp.f32 %v577_v13  ;;  %v578_v15 = vadd.f32 1.0, %v2577_v14  ;;  %v590_v22 = vand.u32 2147483648, %v577_v13  ;;  %v588_v24 = vand.u32 2147483647, %v577_v13 }
 0x479   :  { %vm584_vm6 = vweird.f32 %v577_v13 }
 0x47a   :  { %2580 = vrcp.f32 %v578_v15  ;;  %v605_v26 = vand.u32 2147483648, %v578_v15  ;;  %v603_v30 = vand.u32 2147483647, %v578_v15  ;;  %v591_v32 = vor.u32 1.1754944e-38, %v590_v22 }
 0x47b   :  { %vm589_vm9 = vcmp.eq.f32.partialorder %v588_v24, 8.507059e+37  ;;  %vm599_vm10 = vweird.f32 %v578_v15 }
 0x47c   :  { %v606_v36 = vor.u32 1.1754944e-38, %v605_v26  ;;  %vm604_vm13 = vcmp.eq.f32.partialorder %v603_v30, 8.507059e+37 }
 0x47e   :  { %v2579_v16 = vpop.eup %2578 }
 0x47f   :  { %v580_v17 = vmul.f32 %v2579_v16, %v577_v13  ;;  %vm585_vm5 = vweird.f32 %v2579_v16 }
 0x480   :  { %v2581_v18 = vpop.eup %2580  ;;  %vm586_vm8 = vmor %vm584_vm6, %vm585_vm5 }
 0x481   :  { %v595_v19 = vmul.f32 %v2581_v18, %v578_v15  ;;  %v581_v21 = vsub.f32 1.0, %v580_v17  ;;  %vm600_vm7 = vweird.f32 %v2581_v18 }
 0x482   :  { %vm601_vm11 = vmor %vm599_vm10, %vm600_vm7 }
 0x483   :  { %v582_v23 = vmul.f32 %v2579_v16, %v581_v21  ;;  %v596_v25 = vsub.f32 1.0, %v595_v19 }
 0x485   :  { %v583_v28 = vadd.f32 %v2579_v16, %v582_v23  ;;  %v597_v29 = vmul.f32 %v2581_v18, %v596_v25 }
 0x487   :  { %v587_v33 = vsel %vm586_vm8, %v2579_v16, %v583_v28  ;;  %v598_v34 = vadd.f32 %v2581_v18, %v597_v29 }
 0x488   :  { %v592_v35 = vsel %vm589_vm9, %v591_v32, %v587_v33 }
 0x489   :  { %v602_v38 = vsel %vm601_vm11, %v2581_v18, %v598_v34  ;;  %v616_v39 = vmul.f32 %v614_v31, %v592_v35 }
 0x48a   :  { %v607_v40 = vsel %vm604_vm13, %v606_v36, %v602_v38 }
 0x48b   :  { %v610_v41 = vmul.f32 %v607_v40, %v3167_v46 }
 0x48d   :  { %v612_v42 = vadd.f32 %v610_v41, %v3172_v27 }
 0x48f   :  { %v617_v44 = vmul.f32 %v612_v42, %v592_v35 }
 0x491   :  { %619 = vrot.lane.b32.xlu2 %v617_v44, %s2788_s12 }
 0x4eb   :  { %v620_v43 = vpop.permute.xlu2 %619 }
 0x4ec   :  { %v3233_v56 = vadd.f32 %v620_v43, %v616_v39 }
 0x4ee   :  { %2582 = vtanh.f32 %v3233_v56  ;;  %v743_v34 = vrot.slane %v3233_v56, 6 }
 0x4f4   :  { %v2583_v57 = vpop.eup %2582 }
 0x4f5   :  { %v3236_v63 = vmul.f32 %v2583_v57, %v612_v42 }
 0x4f7   :  { %v645_v1 = vrot.slane %v3236_v63, 4 }
 0x4f9   :  { %646 = vrot.lane.b32.xlu0 %v645_v1, %s2788_s12 }
 0x56b   :  { %v647_v3 = vpop.permute.xlu0 %646 }
 0x56c   :  { %2473 = vmatmul.msk.f32.vlgmr.msrb.gmra.mxu2 %vm278_vm12, %v647_v3  ;;  %2474 = vmatmul.msk.f32.vlgmr.msrb.gmra.mxu3 %vm278_vm12, %v647_v3 }
 0x56d   :  { %1162 = vmatpush.msrb.mxu2 %v2996_v49  ;;  %1182 = vmatpush.msrb.mxu3 %v2984_v47 }
 0x56f   :  { %1163 = vmatpush.msrb.mxu2 %v3011_v51  ;;  %1183 = vmatpush.msrb.mxu3 %v2991_v48 }
 0x571   :  { %1164 = vmatpush.msrb.mxu2 %v3024_v53  ;;  %1184 = vmatpush.msrb.mxu3 %v3003_v50 }
 0x573   :  { %1165 = vmatpush.msrb.mxu2 %v3039_v55  ;;  %1185 = vmatpush.msrb.mxu3 %v3019_v52 }
 0x575   :  { %1166 = vmatpush.msrb.mxu2 %v3057_v59  ;;  %1186 = vmatpush.msrb.mxu3 %v3031_v54 }
 0x577   :  { %1167 = vmatpush.msrb.mxu2 %v3069_v61  ;;  %1187 = vmatpush.msrb.mxu3 %v3052_v58 }
 0x579   :  { %1168 = vmatpush.msrb.mxu2 %v3083_v0  ;;  %1188 = vmatpush.msrb.mxu3 %v3064_v60 }
 0x57b   :  { %1169 = vmatpush.msrb.mxu2 %v3089_v2  ;;  %1189 = vmatpush.msrb.mxu3 %v3074_v62 }
 0x5ef   :  { %v667_v4 = vpop.f32.mrf.mxu2  ;;  %v687_v5 = vpop.f32.mrf.mxu3 }
 0x5f0   :  { %v692_v6 = vrot.slane %v667_v4, 2  ;;  %v693_v7 = vrot.slane %v687_v5, 2 }
 0x5f2   :  { %v696_v10 = vadd.f32 %v692_v6, %v642_v8  ;;  %v697_v11 = vadd.f32 %v693_v7, %v643_v9 }
 0x5f4   :  { %v2475_v12 = vmul.f32 -1.442695, %v696_v10  ;;  %v699_v13 = vmul.f32 %v697_v11, %v3167_v46 }
 0x5f6   :  { %2584 = vpow2.f32 %v2475_v12  ;;  %v2476_v14 = vmul.f32 -1.442695, %v699_v13 }
 0x5f8   :  { %2586 = vpow2.f32 %v2476_v14 }
 0x5fc   :  { %v2585_v15 = vpop.eup %2584 }
 0x5fd   :  { %v706_v16 = vadd.f32 1.0, %v2585_v15 }
 0x5fe   :  { %v2587_v17 = vpop.eup %2586 }
 0x5ff   :  { %2588 = vrcp.f32 %v706_v16  ;;  %v707_v18 = vadd.f32 1.0, %v2587_v17  ;;  %v719_v25 = vand.u32 2147483648, %v706_v16  ;;  %v717_v28 = vand.u32 2147483647, %v706_v16 }
 0x600   :  { %vm713_vm15 = vweird.f32 %v706_v16 }
 0x601   :  { %2590 = vrcp.f32 %v707_v18  ;;  %v734_v30 = vand.u32 2147483648, %v707_v18  ;;  %v732_v33 = vand.u32 2147483647, %v707_v18  ;;  %v720_v35 = vor.u32 1.1754944e-38, %v719_v25 }
 0x602   :  { %vm718_vm2 = vcmp.eq.f32.partialorder %v717_v28, 8.507059e+37  ;;  %vm728_vm3 = vweird.f32 %v707_v18 }
 0x603   :  { %v735_v40 = vor.u32 1.1754944e-38, %v734_v30  ;;  %vm733_vm5 = vcmp.eq.f32.partialorder %v732_v33, 8.507059e+37 }
 0x605   :  { %v2589_v19 = vpop.eup %2588 }
 0x606   :  { %v709_v21 = vmul.f32 %v2589_v19, %v706_v16  ;;  %vm714_vm14 = vweird.f32 %v2589_v19 }
 0x607   :  { %v2591_v22 = vpop.eup %2590  ;;  %vm715_vm1 = vmor %vm713_vm15, %vm714_vm14 }
 0x608   :  { %v724_v23 = vmul.f32 %v2591_v22, %v707_v18  ;;  %v710_v24 = vsub.f32 1.0, %v709_v21  ;;  %vm729_vm0 = vweird.f32 %v2591_v22 }
 0x609   :  { %vm730_vm4 = vmor %vm728_vm3, %vm729_vm0 }
 0x60a   :  { %v711_v26 = vmul.f32 %v2589_v19, %v710_v24  ;;  %v725_v29 = vsub.f32 1.0, %v724_v23 }
 0x60c   :  { %v712_v31 = vadd.f32 %v2589_v19, %v711_v26  ;;  %v726_v32 = vmul.f32 %v2591_v22, %v725_v29 }
 0x60e   :  { %v716_v36 = vsel %vm715_vm1, %v2589_v19, %v712_v31  ;;  %v727_v38 = vadd.f32 %v2591_v22, %v726_v32 }
 0x60f   :  { %v721_v39 = vsel %vm718_vm2, %v720_v35, %v716_v36 }
 0x610   :  { %v731_v41 = vsel %vm730_vm4, %v2591_v22, %v727_v38  ;;  %v745_v42 = vmul.f32 %v743_v34, %v721_v39  ;;  %v3305_v38 = vld [vmem:[%s3811_s5 + $0x70] sm:$0xff] }
 0x611   :  { %v736_v44 = vsel %vm733_vm5, %v735_v40, %v731_v41  ;;  %v3317_v40 = vld [vmem:[%s3811_s5 + $0x60] sm:$0xff]  ;;  %v3323_v41 = vld [vmem:[%s3811_s5 + $0x68] sm:$0xff] }
 0x612   :  { %v739_v43 = vmul.f32 %v736_v44, %v3167_v46  ;;  %v3335_v44 = vld [vmem:[%s3811_s5 + $0x58] sm:$0xff] }
 0x614   :  { %v741_v57 = vadd.f32 %v739_v43, %v3172_v27  ;;  %v3341_v43 = vld [vmem:[%s3811_s5 + $0x40] sm:$0xff] }
 0x616   :  { %v746_v1 = vmul.f32 %v741_v57, %v721_v39  ;;  %v3311_v39 = vld [vmem:[%s3811_s5 + $0x78] sm:$0xff] }
 0x618   :  { %748 = vrot.lane.b32.xlu1 %v746_v1, %s2788_s12  ;;  %v3353_v1 = vld [vmem:[%s3811_s5 + $0x30] sm:$0xff] }
 0x68a   :  { %v749_v56 = vpop.permute.xlu1 %748 }
 0x68b   :  { %v3263_v3 = vadd.f32 %v749_v56, %v745_v42  ;;  %v3329_v42 = vld [vmem:[%s3811_s5 + $0x50] sm:$0xff]  ;;  %v3359_v56 = vld [vmem:[%s3811_s5 + $0x38] sm:$0xff] }
 0x68d   :  { %2592 = vtanh.f32 %v3263_v3  ;;  %v866_v18 = vrot.slane %v3263_v3, 6  ;;  %v3365_v3 = vld [vmem:[%s3811_s5 + $0x20] sm:$0xff] }
 0x693   :  { %v2593_v4 = vpop.eup %2592 }
 0x694   :  { %v3266_v5 = vmul.f32 %v2593_v4, %v741_v57  ;;  %v3347_v57 = vld [vmem:[%s3811_s5 + $0x48] sm:$0xff] }
 0x695   :  { %v3371_v4 = vld [vmem:[%s3811_s5 + $0x28] sm:$0xff] }
 0x696   :  { %v774_v6 = vrot.slane %v3266_v5, 6 }
 0x698   :  { %775 = vrot.lane.b32.xlu2 %v774_v6, %s2788_s12  ;;  %v3377_v6 = vld [vmem:[%s3811_s5 + $0x10] sm:$0xff] }
 0x6f2   :  { %v776_v7 = vpop.permute.xlu2 %775 }
 0x6f3   :  { %2478 = vmatmul.msk.f32.vlgmr.msra.gmra.mxu1 %vm278_vm12, %v776_v7  ;;  %2479 = vmatmul.msk.f32.vlgmr.msra.gmra.mxu0 %vm278_vm12, %v776_v7  ;;  %v3383_v7 = vld [vmem:[%s3811_s5 + $0x18] sm:$0xff] }
 0x6f4   :  { %1290 = vmatpush.msra.mxu1 %v2996_v49  ;;  %1310 = vmatpush.msra.mxu0 %v2984_v47  ;;  %v771_v47 = vld [vmem:[#allocation2 + $0x18] sm:$0x3]  ;;  %v772_v49 = vld [vmem:[#allocation2 + $0x10] sm:$0x3] }
 0x6f6   :  { %1291 = vmatpush.msra.mxu1 %v3011_v51  ;;  %1311 = vmatpush.msra.mxu0 %v2991_v48 }
 0x6f8   :  { %1292 = vmatpush.msra.mxu1 %v3024_v53  ;;  %1312 = vmatpush.msra.mxu0 %v3003_v50 }
 0x6fa   :  { %1293 = vmatpush.msra.mxu1 %v3039_v55  ;;  %1313 = vmatpush.msra.mxu0 %v3019_v52 }
 0x6fc   :  { %1294 = vmatpush.msra.mxu1 %v3057_v59  ;;  %1314 = vmatpush.msra.mxu0 %v3031_v54 }
 0x6fe   :  { %1295 = vmatpush.msra.mxu1 %v3069_v61  ;;  %1315 = vmatpush.msra.mxu0 %v3052_v58 }
 0x700   :  { %1296 = vmatpush.msra.mxu1 %v3083_v0  ;;  %1316 = vmatpush.msra.mxu0 %v3064_v60 }
 0x702   :  { %1297 = vmatpush.msra.mxu1 %v3089_v2  ;;  %1317 = vmatpush.msra.mxu0 %v3074_v62 }
 0x770   :  { %v796_v48 = vpop.f32.mrf.mxu1  ;;  %v816_v50 = vpop.f32.mrf.mxu0 }
 0x771   :  { %v819_v51 = vadd.f32 %v796_v48, %v771_v47  ;;  %v820_v52 = vadd.f32 %v816_v50, %v772_v49  ;;  %v3389_v47 = vld [vmem:[%s3811_s5] sm:$0xff]  ;;  %v3395_v48 = vld [vmem:[%s3811_s5 + $0x8] sm:$0xff] }
 0x773   :  { %v2480_v53 = vmul.f32 -1.442695, %v819_v51  ;;  %v822_v54 = vmul.f32 %v820_v52, %v3167_v46 }
 0x775   :  { %2594 = vpow2.f32 %v2480_v53  ;;  %v2481_v55 = vmul.f32 -1.442695, %v822_v54  ;;  %v894_v53 = vld [vmem:[#allocation2 + $0x18] sm:$0xc]  ;;  %v895_v54 = vld [vmem:[#allocation2 + $0x10] sm:$0xc] }
 0x777   :  { %2596 = vpow2.f32 %v2481_v55 }
 0x77b   :  { %v2595_v58 = vpop.eup %2594 }
 0x77c   :  { %v829_v59 = vadd.f32 1.0, %v2595_v58 }
 0x77d   :  { %v2597_v61 = vpop.eup %2596 }
 0x77e   :  { %2598 = vrcp.f32 %v829_v59  ;;  %v830_v60 = vadd.f32 1.0, %v2597_v61  ;;  %v842_v10 = vand.u32 2147483648, %v829_v59  ;;  %v840_v13 = vand.u32 2147483647, %v829_v59 }
 0x77f   :  { %vm836_vm7 = vweird.f32 %v829_v59 }
 0x780   :  { %2600 = vrcp.f32 %v830_v60  ;;  %v857_v14 = vand.u32 2147483648, %v830_v60  ;;  %v855_v17 = vand.u32 2147483647, %v830_v60  ;;  %v843_v19 = vor.u32 1.1754944e-38, %v842_v10 }
 0x781   :  { %vm841_vm10 = vcmp.eq.f32.partialorder %v840_v13, 8.507059e+37  ;;  %vm851_vm11 = vweird.f32 %v830_v60 }
 0x782   :  { %v858_v24 = vor.u32 1.1754944e-38, %v857_v14  ;;  %vm856_vm14 = vcmp.eq.f32.partialorder %v855_v17, 8.507059e+37 }
 0x784   :  { %v2599_v0 = vpop.eup %2598 }
 0x785   :  { %v832_v62 = vmul.f32 %v2599_v0, %v829_v59  ;;  %vm837_vm6 = vweird.f32 %v2599_v0 }
 0x786   :  { %v2601_v2 = vpop.eup %2600  ;;  %vm838_vm9 = vmor %vm836_vm7, %vm837_vm6 }
 0x787   :  { %v847_v8 = vmul.f32 %v2601_v2, %v830_v60  ;;  %v833_v9 = vsub.f32 1.0, %v832_v62  ;;  %vm852_vm8 = vweird.f32 %v2601_v2 }
 0x788   :  { %vm853_vm13 = vmor %vm851_vm11, %vm852_vm8 }
 0x789   :  { %v848_v11 = vsub.f32 1.0, %v847_v8  ;;  %v834_v12 = vmul.f32 %v2599_v0, %v833_v9 }
 0x78b   :  { %v835_v15 = vadd.f32 %v2599_v0, %v834_v12  ;;  %v849_v16 = vmul.f32 %v2601_v2, %v848_v11 }
 0x78d   :  { %v839_v21 = vsel %vm838_vm9, %v2599_v0, %v835_v15  ;;  %v850_v22 = vadd.f32 %v2601_v2, %v849_v16 }
 0x78e   :  { %v844_v23 = vsel %vm841_vm10, %v843_v19, %v839_v21 }
 0x78f   :  { %v854_v25 = vsel %vm853_vm13, %v2601_v2, %v850_v22  ;;  %v868_v26 = vmul.f32 %v866_v18, %v844_v23 }
 0x790   :  { %v859_v28 = vsel %vm856_vm14, %v858_v24, %v854_v25 }
 0x791   :  { %v862_v29 = vmul.f32 %v859_v28, %v3167_v46 }
 0x793   :  { %v864_v30 = vadd.f32 %v862_v29, %v3172_v27 }
 0x795   :  { %v869_v31 = vmul.f32 %v864_v30, %v844_v23 }
 0x797   :  { %871 = vrot.lane.b32.xlu0 %v869_v31, %s2788_s12 }
 0x809   :  { %v872_v32 = vpop.permute.xlu0 %871 }
 0x80a   :  { %v3293_v33 = vadd.f32 %v872_v32, %v868_v26 }
 0x80c   :  { %2602 = vtanh.f32 %v3293_v33  ;;  %v994_v23 = vrot.slane %v3293_v33, 6 }
 0x812   :  { %v2603_v34 = vpop.eup %2602 }
 0x813   :  { %v3296_v35 = vmul.f32 %v2603_v34, %v864_v30 }
 0x815   :  { %897 = vrot.lane.b32.xlu1 %v3296_v35, %s2788_s12 }
 0x887   :  { %v898_v36 = vpop.permute.xlu1 %897 }
 0x888   :  { %2483 = vmatmul.msk.f32.vlgmr.msra.gmra.mxu2 %vm278_vm12, %v898_v36  ;;  %2484 = vmatmul.msk.f32.vlgmr.msra.gmra.mxu3 %vm278_vm12, %v898_v36 }
 0x889   :  { %1411 = vmatpush.msra.mxu2 %v3305_v38  ;;  %1431 = vmatpush.msra.mxu3 %v3311_v39 }
 0x88b   :  { %1412 = vmatpush.msra.mxu2 %v3317_v40  ;;  %1432 = vmatpush.msra.mxu3 %v3323_v41 }
 0x88d   :  { %1413 = vmatpush.msra.mxu2 %v3329_v42  ;;  %1433 = vmatpush.msra.mxu3 %v3335_v44 }
 0x88f   :  { %1414 = vmatpush.msra.mxu2 %v3341_v43  ;;  %1434 = vmatpush.msra.mxu3 %v3347_v57 }
 0x891   :  { %1415 = vmatpush.msra.mxu2 %v3353_v1  ;;  %1435 = vmatpush.msra.mxu3 %v3359_v56 }
 0x893   :  { %1416 = vmatpush.msra.mxu2 %v3365_v3  ;;  %1436 = vmatpush.msra.mxu3 %v3371_v4 }
 0x895   :  { %1417 = vmatpush.msra.mxu2 %v3377_v6  ;;  %1437 = vmatpush.msra.mxu3 %v3383_v7 }
 0x897   :  { %1418 = vmatpush.msra.mxu2 %v3389_v47  ;;  %1438 = vmatpush.msra.mxu3 %v3395_v48 }
 0x90b   :  { %v918_v49 = vpop.f32.mrf.mxu2  ;;  %v938_v50 = vpop.f32.mrf.mxu3 }
 0x90c   :  { %v943_v51 = vrot.slane %v918_v49, 6  ;;  %v944_v52 = vrot.slane %v938_v50, 6 }
 0x90e   :  { %v947_v55 = vadd.f32 %v943_v51, %v894_v53  ;;  %v948_v58 = vadd.f32 %v944_v52, %v895_v54 }
 0x910   :  { %v2485_v59 = vmul.f32 -1.442695, %v947_v55  ;;  %v950_v61 = vmul.f32 %v948_v58, %v3167_v46 }
 0x912   :  { %2604 = vpow2.f32 %v2485_v59  ;;  %v2486_v60 = vmul.f32 -1.442695, %v950_v61 }
 0x914   :  { %2606 = vpow2.f32 %v2486_v60  ;;  %v1018_v60 = vld [vmem:[#allocation2 + $0x18] sm:$0x30] }
 0x918   :  { %v2605_v0 = vpop.eup %2604 }
 0x919   :  { %v957_v62 = vadd.f32 1.0, %v2605_v0  ;;  %v1019_v0 = vld [vmem:[#allocation2 + $0x10] sm:$0x30] }
 0x91a   :  { %v2607_v2 = vpop.eup %2606 }
 0x91b   :  { %2608 = vrcp.f32 %v957_v62  ;;  %v958_v8 = vadd.f32 1.0, %v2607_v2  ;;  %v970_v14 = vand.u32 2147483648, %v957_v62  ;;  %v968_v16 = vand.u32 2147483647, %v957_v62 }
 0x91c   :  { %vm964_vm0 = vweird.f32 %v957_v62 }
 0x91d   :  { %2610 = vrcp.f32 %v958_v8  ;;  %v985_v18 = vand.u32 2147483648, %v958_v8  ;;  %v983_v22 = vand.u32 2147483647, %v958_v8  ;;  %v971_v24 = vor.u32 1.1754944e-38, %v970_v14 }
 0x91e   :  { %vm969_vm3 = vcmp.eq.f32.partialorder %v968_v16, 8.507059e+37  ;;  %vm979_vm4 = vweird.f32 %v958_v8 }
 0x91f   :  { %v986_v29 = vor.u32 1.1754944e-38, %v985_v18  ;;  %vm984_vm6 = vcmp.eq.f32.partialorder %v983_v22, 8.507059e+37 }
 0x921   :  { %v2609_v9 = vpop.eup %2608 }
 0x922   :  { %v960_v10 = vmul.f32 %v2609_v9, %v957_v62  ;;  %vm965_vm15 = vweird.f32 %v2609_v9 }
 0x923   :  { %v2611_v11 = vpop.eup %2610  ;;  %vm966_vm2 = vmor %vm964_vm0, %vm965_vm15 }
 0x924   :  { %v975_v12 = vmul.f32 %v2611_v11, %v958_v8  ;;  %v961_v13 = vsub.f32 1.0, %v960_v10  ;;  %vm980_vm1 = vweird.f32 %v2611_v11 }
 0x925   :  { %vm981_vm5 = vmor %vm979_vm4, %vm980_vm1 }
 0x926   :  { %v962_v15 = vmul.f32 %v2609_v9, %v961_v13  ;;  %v976_v17 = vsub.f32 1.0, %v975_v12 }
 0x928   :  { %v963_v19 = vadd.f32 %v2609_v9, %v962_v15  ;;  %v977_v21 = vmul.f32 %v2611_v11, %v976_v17 }
 0x92a   :  { %v967_v25 = vsel %vm966_vm2, %v2609_v9, %v963_v19  ;;  %v978_v26 = vadd.f32 %v2611_v11, %v977_v21 }
 0x92b   :  { %v972_v28 = vsel %vm969_vm3, %v971_v24, %v967_v25 }
 0x92c   :  { %v982_v30 = vsel %vm981_vm5, %v2611_v11, %v978_v26  ;;  %v996_v31 = vmul.f32 %v994_v23, %v972_v28 }
 0x92d   :  { %v987_v32 = vsel %vm984_vm6, %v986_v29, %v982_v30 }
 0x92e   :  { %v990_v34 = vmul.f32 %v987_v32, %v3167_v46 }
 0x930   :  { %v992_v36 = vadd.f32 %v990_v34, %v3172_v27 }
 0x932   :  { %v997_v49 = vmul.f32 %v992_v36, %v972_v28 }
 0x934   :  { %999 = vrot.lane.b32.xlu2 %v997_v49, %s2788_s12 }
 0x98e   :  { %v1000_v33 = vpop.permute.xlu2 %999 }
 0x98f   :  { %v3403_v50 = vadd.f32 %v1000_v33, %v996_v31 }
 0x991   :  { %2612 = vtanh.f32 %v3403_v50  ;;  %v1119_v30 = vrot.slane %v3403_v50, 6 }
 0x997   :  { %v2613_v51 = vpop.eup %2612 }
 0x998   :  { %v3406_v52 = vmul.f32 %v2613_v51, %v992_v36 }
 0x99a   :  { %v1021_v53 = vrot.slane %v3406_v52, 2 }
 0x99c   :  { %1022 = vrot.lane.b32.xlu0 %v1021_v53, %s2788_s12 }
 0xa0e   :  { %v1023_v54 = vpop.permute.xlu0 %1022 }
 0xa0f   :  { %2488 = vmatmul.msk.f32.vlgmr.msrb.gmra.mxu1 %vm278_vm12, %v1023_v54  ;;  %2489 = vmatmul.msk.f32.vlgmr.msrb.gmra.mxu0 %vm278_vm12, %v1023_v54 }
 0xa10   :  { %1536 = vmatpush.msrb.mxu1 %v3305_v38  ;;  %1556 = vmatpush.msrb.mxu0 %v3311_v39 }
 0xa12   :  { %1537 = vmatpush.msrb.mxu1 %v3317_v40  ;;  %1557 = vmatpush.msrb.mxu0 %v3323_v41 }
 0xa14   :  { %1538 = vmatpush.msrb.mxu1 %v3329_v42  ;;  %1558 = vmatpush.msrb.mxu0 %v3335_v44 }
 0xa16   :  { %1539 = vmatpush.msrb.mxu1 %v3341_v43  ;;  %1559 = vmatpush.msrb.mxu0 %v3347_v57 }
 0xa18   :  { %1540 = vmatpush.msrb.mxu1 %v3353_v1  ;;  %1560 = vmatpush.msrb.mxu0 %v3359_v56 }
 0xa1a   :  { %1541 = vmatpush.msrb.mxu1 %v3365_v3  ;;  %1561 = vmatpush.msrb.mxu0 %v3371_v4 }
 0xa1c   :  { %1542 = vmatpush.msrb.mxu1 %v3377_v6  ;;  %1562 = vmatpush.msrb.mxu0 %v3383_v7 }
 0xa1e   :  { %1543 = vmatpush.msrb.mxu1 %v3389_v47  ;;  %1563 = vmatpush.msrb.mxu0 %v3395_v48 }
 0xa8c   :  { %v1043_v55 = vpop.f32.mrf.mxu1  ;;  %v1063_v58 = vpop.f32.mrf.mxu0 }
 0xa8d   :  { %v1068_v59 = vrot.slane %v1043_v55, 4  ;;  %v1069_v61 = vrot.slane %v1063_v58, 4 }
 0xa8f   :  { %v1072_v62 = vadd.f32 %v1068_v59, %v1018_v60  ;;  %v1073_v2 = vadd.f32 %v1069_v61, %v1019_v0 }
 0xa91   :  { %v2490_v8 = vmul.f32 -1.442695, %v1072_v62  ;;  %v1075_v9 = vmul.f32 %v1073_v2, %v3167_v46 }
 0xa93   :  { %2614 = vpow2.f32 %v2490_v8  ;;  %v2491_v10 = vmul.f32 -1.442695, %v1075_v9 }
 0xa95   :  { %2616 = vpow2.f32 %v2491_v10 }
 0xa99   :  { %v2615_v11 = vpop.eup %2614 }
 0xa9a   :  { %v1082_v12 = vadd.f32 1.0, %v2615_v11  ;;  %v1146_v11 = vld [vmem:[#allocation2 + $0x18] sm:$0xc0] }
 0xa9b   :  { %v2617_v13 = vpop.eup %2616 }
 0xa9c   :  { %2618 = vrcp.f32 %v1082_v12  ;;  %v1083_v14 = vadd.f32 1.0, %v2617_v13  ;;  %v1095_v21 = vand.u32 2147483648, %v1082_v12  ;;  %v1093_v23 = vand.u32 2147483647, %v1082_v12 }
 0xa9d   :  { %vm1089_vm8 = vweird.f32 %v1082_v12 }
 0xa9e   :  { %2620 = vrcp.f32 %v1083_v14  ;;  %v1110_v25 = vand.u32 2147483648, %v1083_v14  ;;  %v1108_v29 = vand.u32 2147483647, %v1083_v14  ;;  %v1096_v31 = vor.u32 1.1754944e-38, %v1095_v21 }
 0xa9f   :  { %vm1094_vm11 = vcmp.eq.f32.partialorder %v1093_v23, 8.507059e+37  ;;  %vm1104_vm13 = vweird.f32 %v1083_v14 }
 0xaa0   :  { %v1111_v49 = vor.u32 1.1754944e-38, %v1110_v25  ;;  %vm1109_vm15 = vcmp.eq.f32.partialorder %v1108_v29, 8.507059e+37 }
 0xaa2   :  { %v2619_v15 = vpop.eup %2618 }
 0xaa3   :  { %v1085_v16 = vmul.f32 %v2619_v15, %v1082_v12  ;;  %vm1090_vm7 = vweird.f32 %v2619_v15  ;;  %v1147_v12 = vld [vmem:[#allocation2 + $0x10] sm:$0xc0] }
 0xaa4   :  { %v2621_v17 = vpop.eup %2620  ;;  %vm1091_vm10 = vmor %vm1089_vm8, %vm1090_vm7 }
 0xaa5   :  { %v1100_v18 = vmul.f32 %v2621_v17, %v1083_v14  ;;  %v1086_v19 = vsub.f32 1.0, %v1085_v16  ;;  %vm1105_vm9 = vweird.f32 %v2621_v17 }
 0xaa6   :  { %vm1106_vm14 = vmor %vm1104_vm13, %vm1105_vm9 }
 0xaa7   :  { %v1087_v22 = vmul.f32 %v2619_v15, %v1086_v19  ;;  %v1101_v24 = vsub.f32 1.0, %v1100_v18 }
 0xaa9   :  { %v1088_v26 = vadd.f32 %v2619_v15, %v1087_v22  ;;  %v1102_v28 = vmul.f32 %v2621_v17, %v1101_v24 }
 0xaab   :  { %v1092_v32 = vsel %vm1091_vm10, %v2619_v15, %v1088_v26  ;;  %v1103_v34 = vadd.f32 %v2621_v17, %v1102_v28 }
 0xaac   :  { %v1097_v36 = vsel %vm1094_vm11, %v1096_v31, %v1092_v32 }
 0xaad   :  { %v1107_v33 = vsel %vm1106_vm14, %v2621_v17, %v1103_v34  ;;  %v1121_v51 = vmul.f32 %v1119_v30, %v1097_v36 }
 0xaae   :  { %v1112_v53 = vsel %vm1109_vm15, %v1111_v49, %v1107_v33 }
 0xaaf   :  { %v1115_v54 = vmul.f32 %v1112_v53, %v3167_v46 }
 0xab1   :  { %v1117_v55 = vadd.f32 %v1115_v54, %v3172_v27 }
 0xab3   :  { %v1122_v58 = vmul.f32 %v1117_v55, %v1097_v36 }
 0xab5   :  { %1124 = vrot.lane.b32.xlu1 %v1122_v58, %s2788_s12 }
 0xb27   :  { %v1125_v50 = vpop.permute.xlu1 %1124 }
 0xb28   :  { %v3433_v59 = vadd.f32 %v1125_v50, %v1121_v51 }
 0xb2a   :  { %2622 = vtanh.f32 %v3433_v59  ;;  %v1247_v51 = vrot.slane %v3433_v59, 6 }
 0xb30   :  { %v2623_v61 = vpop.eup %2622 }
 0xb31   :  { %v3436_v60 = vmul.f32 %v2623_v61, %v1117_v55 }
 0xb33   :  { %v1149_v0 = vrot.slane %v3436_v60, 4 }
 0xb35   :  { %1150 = vrot.lane.b32.xlu2 %v1149_v0, %s2788_s12 }
 0xb8f   :  { %v1151_v62 = vpop.permute.xlu2 %1150 }
 0xb90   :  { %2493 = vmatmul.msk.f32.vlgmr.msrb.gmra.mxu2 %vm278_vm12, %v1151_v62  ;;  %2494 = vmatmul.msk.f32.vlgmr.msrb.gmra.mxu3 %vm278_vm12, %v1151_v62 }
 0xb91   :  { %1664 = vmatpush.msrb.mxu2 %v3305_v38  ;;  %1684 = vmatpush.msrb.mxu3 %v3311_v39 }
 0xb93   :  { %1665 = vmatpush.msrb.mxu2 %v3317_v40  ;;  %1685 = vmatpush.msrb.mxu3 %v3323_v41 }
 0xb95   :  { %1666 = vmatpush.msrb.mxu2 %v3329_v42  ;;  %1686 = vmatpush.msrb.mxu3 %v3335_v44 }
 0xb97   :  { %1667 = vmatpush.msrb.mxu2 %v3341_v43  ;;  %1687 = vmatpush.msrb.mxu3 %v3347_v57 }
 0xb99   :  { %1668 = vmatpush.msrb.mxu2 %v3353_v1  ;;  %1688 = vmatpush.msrb.mxu3 %v3359_v56 }
 0xb9b   :  { %1669 = vmatpush.msrb.mxu2 %v3365_v3  ;;  %1689 = vmatpush.msrb.mxu3 %v3371_v4 }
 0xb9d   :  { %1670 = vmatpush.msrb.mxu2 %v3377_v6  ;;  %1690 = vmatpush.msrb.mxu3 %v3383_v7 }
 0xb9f   :  { %1671 = vmatpush.msrb.mxu2 %v3389_v47  ;;  %1691 = vmatpush.msrb.mxu3 %v3395_v48 }
 0xc13   :  { %v1171_v2 = vpop.f32.mrf.mxu2  ;;  %v1191_v8 = vpop.f32.mrf.mxu3 }
 0xc14   :  { %v1196_v9 = vrot.slane %v1171_v2, 2  ;;  %v1197_v10 = vrot.slane %v1191_v8, 2 }
 0xc16   :  { %v1200_v13 = vadd.f32 %v1196_v9, %v1146_v11  ;;  %v1201_v14 = vadd.f32 %v1197_v10, %v1147_v12 }
 0xc18   :  { %v2495_v15 = vmul.f32 -1.442695, %v1200_v13  ;;  %v1203_v16 = vmul.f32 %v1201_v14, %v3167_v46 }
 0xc1a   :  { %2624 = vpow2.f32 %v2495_v15  ;;  %v2496_v17 = vmul.f32 -1.442695, %v1203_v16  ;;  %v1274_v15 = vld [vmem:[#allocation2 + $0x8] sm:$0x3] }
 0xc1c   :  { %2626 = vpow2.f32 %v2496_v17  ;;  %v1275_v17 = vld [vmem:[#allocation2 + $0x20] sm:$0x3] }
 0xc20   :  { %v2625_v18 = vpop.eup %2624 }
 0xc21   :  { %v1210_v19 = vadd.f32 1.0, %v2625_v18 }
 0xc22   :  { %v2627_v21 = vpop.eup %2626 }
 0xc23   :  { %2628 = vrcp.f32 %v1210_v19  ;;  %v1211_v22 = vadd.f32 1.0, %v2627_v21  ;;  %v1223_v29 = vand.u32 2147483648, %v1210_v19  ;;  %v1221_v31 = vand.u32 2147483647, %v1210_v19 }
 0xc24   :  { %vm1217_vm1 = vweird.f32 %v1210_v19 }
 0xc25   :  { %2630 = vrcp.f32 %v1211_v22  ;;  %v1238_v34 = vand.u32 2147483648, %v1211_v22  ;;  %v1236_v33 = vand.u32 2147483647, %v1211_v22  ;;  %v1224_v53 = vor.u32 1.1754944e-38, %v1223_v29 }
 0xc26   :  { %vm1222_vm4 = vcmp.eq.f32.partialorder %v1221_v31, 8.507059e+37  ;;  %vm1232_vm5 = vweird.f32 %v1211_v22 }
 0xc27   :  { %v1239_v50 = vor.u32 1.1754944e-38, %v1238_v34  ;;  %vm1237_vm7 = vcmp.eq.f32.partialorder %v1236_v33, 8.507059e+37 }
 0xc29   :  { %v2629_v23 = vpop.eup %2628 }
 0xc2a   :  { %v1213_v24 = vmul.f32 %v2629_v23, %v1210_v19  ;;  %vm1218_vm0 = vweird.f32 %v2629_v23 }
 0xc2b   :  { %v2631_v25 = vpop.eup %2630  ;;  %vm1219_vm3 = vmor %vm1217_vm1, %vm1218_vm0 }
 0xc2c   :  { %v1228_v26 = vmul.f32 %v2631_v25, %v1211_v22  ;;  %v1214_v28 = vsub.f32 1.0, %v1213_v24  ;;  %vm1233_vm2 = vweird.f32 %v2631_v25 }
 0xc2d   :  { %vm1234_vm6 = vmor %vm1232_vm5, %vm1233_vm2 }
 0xc2e   :  { %v1215_v30 = vmul.f32 %v2629_v23, %v1214_v28  ;;  %v1229_v32 = vsub.f32 1.0, %v1228_v26 }
 0xc30   :  { %v1216_v36 = vadd.f32 %v2629_v23, %v1215_v30  ;;  %v1230_v49 = vmul.f32 %v2631_v25, %v1229_v32 }
 0xc32   :  { %v1220_v54 = vsel %vm1219_vm3, %v2629_v23, %v1216_v36  ;;  %v1231_v55 = vadd.f32 %v2631_v25, %v1230_v49 }
 0xc33   :  { %v1225_v58 = vsel %vm1222_vm4, %v1224_v53, %v1220_v54 }
 0xc34   :  { %v1235_v61 = vsel %vm1234_vm6, %v2631_v25, %v1231_v55  ;;  %v1249_v0 = vmul.f32 %v1247_v51, %v1225_v58 }
 0xc35   :  { %v1240_v62 = vsel %vm1237_vm7, %v1239_v50, %v1235_v61 }
 0xc36   :  { %v1243_v2 = vmul.f32 %v1240_v62, %v3167_v46 }
 0xc38   :  { %v1245_v8 = vadd.f32 %v1243_v2, %v3172_v27 }
 0xc3a   :  { %v1250_v9 = vmul.f32 %v1245_v8, %v1225_v58 }
 0xc3c   :  { %1252 = vrot.lane.b32.xlu0 %v1250_v9, %s2788_s12 }
 0xcae   :  { %v1253_v59 = vpop.permute.xlu0 %1252 }
 0xcaf   :  { %v3463_v10 = vadd.f32 %v1253_v59, %v1249_v0 }
 0xcb1   :  { %2632 = vtanh.f32 %v3463_v10  ;;  %v1369_v61 = vrot.slane %v3463_v10, 6 }
 0xcb7   :  { %v2633_v11 = vpop.eup %2632 }
 0xcb8   :  { %v3466_v12 = vmul.f32 %v2633_v11, %v1245_v8 }
 0xcba   :  { %v1277_v13 = vrot.slane %v3466_v12, 6 }
 0xcbc   :  { %1278 = vrot.lane.b32.xlu1 %v1277_v13, %s2788_s12 }
 0xd2e   :  { %v1279_v14 = vpop.permute.xlu1 %1278 }
 0xd2f   :  { %2498 = vmatmul.msk.f32.vlgmr.msra.gmra.mxu1 %vm278_vm12, %v1279_v14  ;;  %2499 = vmatmul.msk.f32.vlgmr.msra.gmra.mxu0 %vm278_vm12, %v1279_v14 }
 0xd30   :  { %1792 = vmatpush.msra.mxu1 %v3305_v38  ;;  %1812 = vmatpush.msra.mxu0 %v3311_v39 }
 0xd32   :  { %1793 = vmatpush.msra.mxu1 %v3317_v40  ;;  %1813 = vmatpush.msra.mxu0 %v3323_v41 }
 0xd34   :  { %1794 = vmatpush.msra.mxu1 %v3329_v42  ;;  %1814 = vmatpush.msra.mxu0 %v3335_v44 }
 0xd36   :  { %1795 = vmatpush.msra.mxu1 %v3341_v43  ;;  %1815 = vmatpush.msra.mxu0 %v3347_v57 }
 0xd38   :  { %1796 = vmatpush.msra.mxu1 %v3353_v1  ;;  %1816 = vmatpush.msra.mxu0 %v3359_v56 }
 0xd3a   :  { %1797 = vmatpush.msra.mxu1 %v3365_v3  ;;  %1817 = vmatpush.msra.mxu0 %v3371_v4 }
 0xd3c   :  { %1798 = vmatpush.msra.mxu1 %v3377_v6  ;;  %1818 = vmatpush.msra.mxu0 %v3383_v7 }
 0xd3e   :  { %1799 = vmatpush.msra.mxu1 %v3389_v47  ;;  %1819 = vmatpush.msra.mxu0 %v3395_v48 }
 0xdac   :  { %v1299_v16 = vpop.f32.mrf.mxu1  ;;  %v1319_v18 = vpop.f32.mrf.mxu0 }
 0xdad   :  { %v1322_v19 = vadd.f32 %v1299_v16, %v1274_v15  ;;  %v1323_v21 = vadd.f32 %v1319_v18, %v1275_v17 }
 0xdaf   :  { %v2500_v22 = vmul.f32 -1.442695, %v1322_v19  ;;  %v1325_v23 = vmul.f32 %v1323_v21, %v3167_v46 }
 0xdb1   :  { %2634 = vpow2.f32 %v2500_v22  ;;  %v2501_v24 = vmul.f32 -1.442695, %v1325_v23 }
 0xdb3   :  { %2636 = vpow2.f32 %v2501_v24 }
 0xdb7   :  { %v2635_v25 = vpop.eup %2634 }
 0xdb8   :  { %v1332_v26 = vadd.f32 1.0, %v2635_v25 }
 0xdb9   :  { %v2637_v28 = vpop.eup %2636 }
 0xdba   :  { %2638 = vrcp.f32 %v1332_v26  ;;  %v1333_v29 = vadd.f32 1.0, %v2637_v28  ;;  %v1345_v49 = vand.u32 2147483648, %v1332_v26  ;;  %v1343_v53 = vand.u32 2147483647, %v1332_v26  ;;  %v1397_v28 = vld [vmem:[#allocation2 + $0x20] sm:$0xc] }
 0xdbb   :  { %vm1339_vm9 = vweird.f32 %v1332_v26 }
 0xdbc   :  { %2640 = vrcp.f32 %v1333_v29  ;;  %v1360_v54 = vand.u32 2147483648, %v1333_v29  ;;  %v1358_v50 = vand.u32 2147483647, %v1333_v29  ;;  %v1346_v0 = vor.u32 1.1754944e-38, %v1345_v49 }
 0xdbd   :  { %vm1344_vm13 = vcmp.eq.f32.partialorder %v1343_v53, 8.507059e+37  ;;  %vm1354_vm14 = vweird.f32 %v1333_v29 }
 0xdbe   :  { %v1361_v9 = vor.u32 1.1754944e-38, %v1360_v54  ;;  %vm1359_vm0 = vcmp.eq.f32.partialorder %v1358_v50, 8.507059e+37 }
 0xdc0   :  { %v2639_v30 = vpop.eup %2638 }
 0xdc1   :  { %v1335_v31 = vmul.f32 %v2639_v30, %v1332_v26  ;;  %vm1340_vm8 = vweird.f32 %v2639_v30  ;;  %v1396_v26 = vld [vmem:[#allocation2 + $0x8] sm:$0xc] }
 0xdc2   :  { %v2641_v32 = vpop.eup %2640  ;;  %vm1341_vm11 = vmor %vm1339_vm9, %vm1340_vm8 }
 0xdc3   :  { %v1350_v34 = vmul.f32 %v2641_v32, %v1333_v29  ;;  %v1336_v36 = vsub.f32 1.0, %v1335_v31  ;;  %vm1355_vm10 = vweird.f32 %v2641_v32 }
 0xdc4   :  { %vm1356_vm15 = vmor %vm1354_vm14, %vm1355_vm10 }
 0xdc5   :  { %v1351_v33 = vsub.f32 1.0, %v1350_v34  ;;  %v1337_v51 = vmul.f32 %v2639_v30, %v1336_v36 }
 0xdc7   :  { %v1338_v55 = vadd.f32 %v2639_v30, %v1337_v51  ;;  %v1352_v58 = vmul.f32 %v2641_v32, %v1351_v33 }
 0xdc9   :  { %v1342_v62 = vsel %vm1341_vm11, %v2639_v30, %v1338_v55  ;;  %v1353_v2 = vadd.f32 %v2641_v32, %v1352_v58 }
 0xdca   :  { %v1347_v8 = vsel %vm1344_vm13, %v1346_v0, %v1342_v62 }
 0xdcb   :  { %v1357_v59 = vsel %vm1356_vm15, %v2641_v32, %v1353_v2  ;;  %v1371_v11 = vmul.f32 %v1369_v61, %v1347_v8 }
 0xdcc   :  { %v1362_v13 = vsel %vm1359_vm0, %v1361_v9, %v1357_v59 }
 0xdcd   :  { %v1365_v14 = vmul.f32 %v1362_v13, %v3167_v46 }
 0xdcf   :  { %v1367_v15 = vadd.f32 %v1365_v14, %v3172_v27 }
 0xdd1   :  { %v1372_v16 = vmul.f32 %v1367_v15, %v1347_v8 }
 0xdd3   :  { %1374 = vrot.lane.b32.xlu2 %v1372_v16, %s2788_s12 }
 0xe2d   :  { %v1375_v10 = vpop.permute.xlu2 %1374 }
 0xe2e   :  { %v3493_v17 = vadd.f32 %v1375_v10, %v1371_v11 }
 0xe30   :  { %2642 = vtanh.f32 %v3493_v17  ;;  %v1496_v13 = vrot.slane %v3493_v17, 6 }
 0xe36   :  { %v2643_v18 = vpop.eup %2642 }
 0xe37   :  { %v3496_v19 = vmul.f32 %v2643_v18, %v1367_v15 }
 0xe39   :  { %1399 = vrot.lane.b32.xlu0 %v3496_v19, %s2788_s12 }
 0xeab   :  { %v1400_v21 = vpop.permute.xlu0 %1399 }
 0xeac   :  { %2503 = vmatmul.msk.f32.vlgmr.msra.gmra.mxu2 %vm278_vm12, %v1400_v21  ;;  %2504 = vmatmul.msk.f32.vlgmr.msra.gmra.mxu3 %vm278_vm12, %v1400_v21 }
 0xead   :  { %1913 = vmatpush.msra.mxu2 %v3305_v38  ;;  %1933 = vmatpush.msra.mxu3 %v3311_v39 }
 0xeaf   :  { %1914 = vmatpush.msra.mxu2 %v3317_v40  ;;  %1934 = vmatpush.msra.mxu3 %v3323_v41 }
 0xeb1   :  { %1915 = vmatpush.msra.mxu2 %v3329_v42  ;;  %1935 = vmatpush.msra.mxu3 %v3335_v44 }
 0xeb3   :  { %1916 = vmatpush.msra.mxu2 %v3341_v43  ;;  %1936 = vmatpush.msra.mxu3 %v3347_v57 }
 0xeb5   :  { %1917 = vmatpush.msra.mxu2 %v3353_v1  ;;  %1937 = vmatpush.msra.mxu3 %v3359_v56 }
 0xeb7   :  { %1918 = vmatpush.msra.mxu2 %v3365_v3  ;;  %1938 = vmatpush.msra.mxu3 %v3371_v4 }
 0xeb9   :  { %1919 = vmatpush.msra.mxu2 %v3377_v6  ;;  %1939 = vmatpush.msra.mxu3 %v3383_v7 }
 0xebb   :  { %1920 = vmatpush.msra.mxu2 %v3389_v47  ;;  %1940 = vmatpush.msra.mxu3 %v3395_v48 }
 0xf2f   :  { %v1420_v22 = vpop.f32.mrf.mxu2  ;;  %v1440_v23 = vpop.f32.mrf.mxu3 }
 0xf30   :  { %v1445_v24 = vrot.slane %v1420_v22, 6  ;;  %v1446_v25 = vrot.slane %v1440_v23, 6 }
 0xf32   :  { %v1449_v29 = vadd.f32 %v1445_v24, %v1396_v26  ;;  %v1450_v30 = vadd.f32 %v1446_v25, %v1397_v28 }
 0xf34   :  { %v2505_v31 = vmul.f32 -1.442695, %v1449_v29  ;;  %v1452_v32 = vmul.f32 %v1450_v30, %v3167_v46 }
 0xf36   :  { %2644 = vpow2.f32 %v2505_v31  ;;  %v2506_v34 = vmul.f32 -1.442695, %v1452_v32 }
 0xf38   :  { %2646 = vpow2.f32 %v2506_v34 }
 0xf3c   :  { %v2645_v36 = vpop.eup %2644 }
 0xf3d   :  { %v1459_v49 = vadd.f32 1.0, %v2645_v36 }
 0xf3e   :  { %v2647_v33 = vpop.eup %2646 }
 0xf3f   :  { %2648 = vrcp.f32 %v1459_v49  ;;  %v1460_v51 = vadd.f32 1.0, %v2647_v33  ;;  %v1472_v61 = vand.u32 2147483648, %v1459_v49  ;;  %v1470_v62 = vand.u32 2147483647, %v1459_v49 }
 0xf40   :  { %vm1466_vm2 = vweird.f32 %v1459_v49 }
 0xf41   :  { %2650 = vrcp.f32 %v1460_v51  ;;  %v1487_v8 = vand.u32 2147483648, %v1460_v51  ;;  %v1485_v11 = vand.u32 2147483647, %v1460_v51  ;;  %v1473_v14 = vor.u32 1.1754944e-38, %v1472_v61 }
 0xf42   :  { %vm1471_vm5 = vcmp.eq.f32.partialorder %v1470_v62, 8.507059e+37  ;;  %vm1481_vm6 = vweird.f32 %v1460_v51 }
 0xf43   :  { %v1488_v18 = vor.u32 1.1754944e-38, %v1487_v8  ;;  %vm1486_vm8 = vcmp.eq.f32.partialorder %v1485_v11, 8.507059e+37 }
 0xf45   :  { %v2649_v53 = vpop.eup %2648 }
 0xf46   :  { %v1462_v54 = vmul.f32 %v2649_v53, %v1459_v49  ;;  %vm1467_vm1 = vweird.f32 %v2649_v53 }
 0xf47   :  { %v2651_v55 = vpop.eup %2650  ;;  %vm1468_vm4 = vmor %vm1466_vm2, %vm1467_vm1 }
 0xf48   :  { %v1477_v58 = vmul.f32 %v2651_v55, %v1460_v51  ;;  %v1463_v50 = vsub.f32 1.0, %v1462_v54  ;;  %vm1482_vm3 = vweird.f32 %v2651_v55  ;;  %v1520_v51 = vld [vmem:[#allocation2 + $0x8] sm:$0x30] }
 0xf49   :  { %vm1483_vm7 = vmor %vm1481_vm6, %vm1482_vm3 }
 0xf4a   :  { %v1464_v0 = vmul.f32 %v2649_v53, %v1463_v50  ;;  %v1478_v2 = vsub.f32 1.0, %v1477_v58 }
 0xf4c   :  { %v1465_v9 = vadd.f32 %v2649_v53, %v1464_v0  ;;  %v1479_v59 = vmul.f32 %v2651_v55, %v1478_v2 }
 0xf4e   :  { %v1469_v15 = vsel %vm1468_vm4, %v2649_v53, %v1465_v9  ;;  %v1480_v16 = vadd.f32 %v2651_v55, %v1479_v59  ;;  %v1521_v53 = vld [vmem:[#allocation2 + $0x20] sm:$0x30] }
 0xf4f   :  { %v1474_v10 = vsel %vm1471_vm5, %v1473_v14, %v1469_v15 }
 0xf50   :  { %v1484_v21 = vsel %vm1483_vm7, %v2651_v55, %v1480_v16  ;;  %v1498_v22 = vmul.f32 %v1496_v13, %v1474_v10 }
 0xf51   :  { %v1489_v23 = vsel %vm1486_vm8, %v1488_v18, %v1484_v21 }
 0xf52   :  { %v1492_v24 = vmul.f32 %v1489_v23, %v3167_v46 }
 0xf54   :  { %v1494_v25 = vadd.f32 %v1492_v24, %v3172_v27 }
 0xf56   :  { %v1499_v26 = vmul.f32 %v1494_v25, %v1474_v10 }
 0xf58   :  { %1501 = vrot.lane.b32.xlu1 %v1499_v26, %s2788_s12 }
 0xfca   :  { %v1502_v17 = vpop.permute.xlu1 %1501 }
 0xfcb   :  { %v3523_v28 = vadd.f32 %v1502_v17, %v1498_v22 }
 0xfcd   :  { %2652 = vtanh.f32 %v3523_v28 }
 0xfd3   :  { %v2653_v29 = vpop.eup %2652 }
 0xfd4   :  { %v3526_v30 = vmul.f32 %v2653_v29, %v1494_v25  ;;  %v1621_v25 = vrot.slane %v3523_v28, 6 }
 0xfd6   :  { %v1523_v31 = vrot.slane %v3526_v30, 2 }
 0xfd8   :  { %1524 = vrot.lane.b32.xlu2 %v1523_v31, %s2788_s12 }
0x1032   :  { %v1525_v32 = vpop.permute.xlu2 %1524 }
0x1033   :  { %2508 = vmatmul.msk.f32.vlgmr.msrb.gmra.mxu1 %vm278_vm12, %v1525_v32  ;;  %2509 = vmatmul.msk.f32.vlgmr.msrb.gmra.mxu0 %vm278_vm12, %v1525_v32 }
0x1034   :  { %2038 = vmatpush.msrb.mxu1 %v3305_v38  ;;  %2058 = vmatpush.msrb.mxu0 %v3311_v39 }
0x1036   :  { %2039 = vmatpush.msrb.mxu1 %v3317_v40  ;;  %2059 = vmatpush.msrb.mxu0 %v3323_v41 }
0x1038   :  { %2040 = vmatpush.msrb.mxu1 %v3329_v42  ;;  %2060 = vmatpush.msrb.mxu0 %v3335_v44 }
0x103a   :  { %2041 = vmatpush.msrb.mxu1 %v3341_v43  ;;  %2061 = vmatpush.msrb.mxu0 %v3347_v57 }
0x103c   :  { %2042 = vmatpush.msrb.mxu1 %v3353_v1  ;;  %2062 = vmatpush.msrb.mxu0 %v3359_v56 }
0x103e   :  { %2043 = vmatpush.msrb.mxu1 %v3365_v3  ;;  %2063 = vmatpush.msrb.mxu0 %v3371_v4 }
0x1040   :  { %2044 = vmatpush.msrb.mxu1 %v3377_v6  ;;  %2064 = vmatpush.msrb.mxu0 %v3383_v7 }
0x1042   :  { %2045 = vmatpush.msrb.mxu1 %v3389_v47  ;;  %2065 = vmatpush.msrb.mxu0 %v3395_v48 }
0x10b0   :  { %v1545_v34 = vpop.f32.mrf.mxu1  ;;  %v1565_v36 = vpop.f32.mrf.mxu0 }
0x10b1   :  { %v1570_v49 = vrot.slane %v1545_v34, 4  ;;  %v1571_v33 = vrot.slane %v1565_v36, 4 }
0x10b3   :  { %v1574_v54 = vadd.f32 %v1570_v49, %v1520_v51  ;;  %v1575_v55 = vadd.f32 %v1571_v33, %v1521_v53 }
0x10b5   :  { %v2510_v58 = vmul.f32 -1.442695, %v1574_v54  ;;  %v1577_v50 = vmul.f32 %v1575_v55, %v3167_v46 }
0x10b7   :  { %2654 = vpow2.f32 %v2510_v58  ;;  %v2511_v61 = vmul.f32 -1.442695, %v1577_v50 }
0x10b9   :  { %2656 = vpow2.f32 %v2511_v61 }
0x10bd   :  { %v2655_v0 = vpop.eup %2654 }
0x10be   :  { %v1584_v62 = vadd.f32 1.0, %v2655_v0 }
0x10bf   :  { %v2657_v2 = vpop.eup %2656 }
0x10c0   :  { %2658 = vrcp.f32 %v1584_v62  ;;  %v1585_v8 = vadd.f32 1.0, %v2657_v2  ;;  %v1597_v15 = vand.u32 2147483648, %v1584_v62  ;;  %v1595_v10 = vand.u32 2147483647, %v1584_v62 }
0x10c1   :  { %vm1591_vm10 = vweird.f32 %v1584_v62 }
0x10c2   :  { %2660 = vrcp.f32 %v1585_v8  ;;  %v1612_v21 = vand.u32 2147483648, %v1585_v8  ;;  %v1610_v24 = vand.u32 2147483647, %v1585_v8  ;;  %v1598_v26 = vor.u32 1.1754944e-38, %v1597_v15 }
0x10c3   :  { %vm1596_vm14 = vcmp.eq.f32.partialorder %v1595_v10, 8.507059e+37  ;;  %vm1606_vm15 = vweird.f32 %v1585_v8 }
0x10c4   :  { %v1613_v32 = vor.u32 1.1754944e-38, %v1612_v21  ;;  %vm1611_vm1 = vcmp.eq.f32.partialorder %v1610_v24, 8.507059e+37 }
0x10c6   :  { %v2659_v9 = vpop.eup %2658 }
0x10c7   :  { %v1587_v59 = vmul.f32 %v2659_v9, %v1584_v62  ;;  %vm1592_vm9 = vweird.f32 %v2659_v9 }
0x10c8   :  { %v2661_v11 = vpop.eup %2660  ;;  %vm1593_vm13 = vmor %vm1591_vm10, %vm1592_vm9 }
0x10c9   :  { %v1602_v13 = vmul.f32 %v2661_v11, %v1585_v8  ;;  %v1588_v14 = vsub.f32 1.0, %v1587_v59  ;;  %vm1607_vm11 = vweird.f32 %v2661_v11 }
0x10ca   :  { %vm1608_vm0 = vmor %vm1606_vm15, %vm1607_vm11 }
0x10cb   :  { %v1589_v16 = vmul.f32 %v2659_v9, %v1588_v14  ;;  %v1603_v18 = vsub.f32 1.0, %v1602_v13 }
0x10cd   :  { %v1590_v22 = vadd.f32 %v2659_v9, %v1589_v16  ;;  %v1604_v23 = vmul.f32 %v2661_v11, %v1603_v18 }
0x10cf   :  { %v1594_v17 = vsel %vm1593_vm13, %v2659_v9, %v1590_v22  ;;  %v1605_v29 = vadd.f32 %v2661_v11, %v1604_v23 }
0x10d0   :  { %v1599_v31 = vsel %vm1596_vm14, %v1598_v26, %v1594_v17 }
0x10d1   :  { %v1609_v34 = vsel %vm1608_vm0, %v2661_v11, %v1605_v29  ;;  %v1623_v36 = vmul.f32 %v1621_v25, %v1599_v31 }
0x10d2   :  { %v1614_v49 = vsel %vm1611_vm1, %v1613_v32, %v1609_v34 }
0x10d3   :  { %v1617_v33 = vmul.f32 %v1614_v49, %v3167_v46 }
0x10d5   :  { %v1619_v51 = vadd.f32 %v1617_v33, %v3172_v27 }
0x10d7   :  { %v1624_v53 = vmul.f32 %v1619_v51, %v1599_v31 }
0x10d9   :  { %1626 = vrot.lane.b32.xlu0 %v1624_v53, %s2788_s12 }
0x114b   :  { %v1627_v28 = vpop.permute.xlu0 %1626 }
0x114c   :  { %v3553_v54 = vadd.f32 %v1627_v28, %v1623_v36 }
0x114e   :  { %2662 = vtanh.f32 %v3553_v54  ;;  %v1749_v18 = vrot.slane %v3553_v54, 6  ;;  %v2744_v54 = vld [vmem:[%s3811_s5 + $0x70] sm:$0xff] }
0x1154   :  { %v2663_v55 = vpop.eup %2662 }
0x1155   :  { %v3556_v58 = vmul.f32 %v2663_v55, %v1619_v51  ;;  %v2745_v55 = vld [vmem:[%s3811_s5 + $0x78] sm:$0xff] }
0x1157   :  { %v1651_v50 = vrot.slane %v3556_v58, 4 }
0x1159   :  { %1652 = vrot.lane.b32.xlu1 %v1651_v50, %s2788_s12  ;;  %v2746_v50 = vld [vmem:[%s3811_s5 + $0x60] sm:$0xff] }
0x11cb   :  { %v1653_v61 = vpop.permute.xlu1 %1652 }
0x11cc   :  { %2513 = vmatmul.msk.f32.vlgmr.msrb.gmra.mxu2 %vm278_vm12, %v1653_v61  ;;  %2514 = vmatmul.msk.f32.vlgmr.msrb.gmra.mxu3 %vm278_vm12, %v1653_v61  ;;  %v2747_v61 = vld [vmem:[%s3811_s5 + $0x68] sm:$0xff] }
0x11cd   :  { %2166 = vmatpush.msrb.mxu2 %v3305_v38  ;;  %2186 = vmatpush.msrb.mxu3 %v3311_v39 }
0x11cf   :  { %2167 = vmatpush.msrb.mxu2 %v3317_v40  ;;  %2187 = vmatpush.msrb.mxu3 %v3323_v41 }
0x11d1   :  { %2168 = vmatpush.msrb.mxu2 %v3329_v42  ;;  %2188 = vmatpush.msrb.mxu3 %v3335_v44  ;;  %v1648_v42 = vld [vmem:[#allocation2 + $0x8] sm:$0xc0]  ;;  %v1649_v44 = vld [vmem:[#allocation2 + $0x20] sm:$0xc0] }
0x11d3   :  { %2169 = vmatpush.msrb.mxu2 %v3341_v43  ;;  %2189 = vmatpush.msrb.mxu3 %v3347_v57 }
0x11d5   :  { %2170 = vmatpush.msrb.mxu2 %v3353_v1  ;;  %2190 = vmatpush.msrb.mxu3 %v3359_v56 }
0x11d7   :  { %2171 = vmatpush.msrb.mxu2 %v3365_v3  ;;  %2191 = vmatpush.msrb.mxu3 %v3371_v4 }
0x11d9   :  { %2172 = vmatpush.msrb.mxu2 %v3377_v6  ;;  %2192 = vmatpush.msrb.mxu3 %v3383_v7 }
0x11db   :  { %2173 = vmatpush.msrb.mxu2 %v3389_v47  ;;  %2193 = vmatpush.msrb.mxu3 %v3395_v48 }
0x124f   :  { %v1673_v38 = vpop.f32.mrf.mxu2  ;;  %v1693_v39 = vpop.f32.mrf.mxu3 }
0x1250   :  { %v1698_v40 = vrot.slane %v1673_v38, 2  ;;  %v1699_v41 = vrot.slane %v1693_v39, 2  ;;  %v2748_v38 = vld [vmem:[%s3811_s5 + $0x50] sm:$0xff]  ;;  %v2749_v39 = vld [vmem:[%s3811_s5 + $0x58] sm:$0xff] }
0x1252   :  { %v1702_v43 = vadd.f32 %v1698_v40, %v1648_v42  ;;  %v1703_v57 = vadd.f32 %v1699_v41, %v1649_v44  ;;  %v2750_v40 = vld [vmem:[%s3811_s5 + $0x40] sm:$0xff]  ;;  %v2751_v41 = vld [vmem:[%s3811_s5 + $0x48] sm:$0xff]  ;;  %v2752_v42 = vld [vmem:[%s3811_s5 + $0x30] sm:$0xff] }
0x1253   :  { %v2753_v44 = vld [vmem:[%s3811_s5 + $0x38] sm:$0xff] }
0x1254   :  { %v2515_v1 = vmul.f32 -1.442695, %v1702_v43  ;;  %v1705_v56 = vmul.f32 %v1703_v57, %v3167_v46  ;;  %v2754_v43 = vld [vmem:[%s3811_s5 + $0x20] sm:$0xff]  ;;  %v2755_v57 = vld [vmem:[%s3811_s5 + $0x28] sm:$0xff] }
0x1256   :  { %2664 = vpow2.f32 %v2515_v1  ;;  %v2516_v3 = vmul.f32 -1.442695, %v1705_v56  ;;  %v2756_v1 = vld [vmem:[%s3811_s5 + $0x10] sm:$0xff]  ;;  %v2757_v56 = vld [vmem:[%s3811_s5 + $0x18] sm:$0xff] }
0x1258   :  { %2666 = vpow2.f32 %v2516_v3  ;;  %v2758_v3 = vld [vmem:[%s3811_s5] sm:$0xff] }
0x125c   :  { %v2665_v4 = vpop.eup %2664 }
0x125d   :  { %v1712_v6 = vadd.f32 1.0, %v2665_v4  ;;  %v2759_v4 = vld [vmem:[%s3811_s5 + $0x8] sm:$0xff] }
0x125e   :  { %v2667_v7 = vpop.eup %2666 }
0x125f   :  { %2668 = vrcp.f32 %v1712_v6  ;;  %v1713_v47 = vadd.f32 1.0, %v2667_v7  ;;  %v1725_v9 = vand.u32 2147483648, %v1712_v6  ;;  %v1723_v11 = vand.u32 2147483647, %v1712_v6 }
0x1260   :  { %vm1719_vm3 = vweird.f32 %v1712_v6 }
0x1261   :  { %2670 = vrcp.f32 %v1713_v47  ;;  %v1740_v14 = vand.u32 2147483648, %v1713_v47  ;;  %v1738_v10 = vand.u32 2147483647, %v1713_v47  ;;  %v1726_v21 = vor.u32 1.1754944e-38, %v1725_v9 }
0x1262   :  { %vm1724_vm6 = vcmp.eq.f32.partialorder %v1723_v11, 8.507059e+37  ;;  %vm1734_vm7 = vweird.f32 %v1713_v47 }
0x1263   :  { %v1741_v25 = vor.u32 1.1754944e-38, %v1740_v14  ;;  %vm1739_vm9 = vcmp.eq.f32.partialorder %v1738_v10, 8.507059e+37 }
0x1265   :  { %v2669_v48 = vpop.eup %2668 }
0x1266   :  { %v1715_v0 = vmul.f32 %v2669_v48, %v1712_v6  ;;  %vm1720_vm2 = vweird.f32 %v2669_v48  ;;  %v1776_v6 = vld [vmem:[#allocation2 + $0x28] sm:$0x3] }
0x1267   :  { %v2671_v62 = vpop.eup %2670  ;;  %vm1721_vm5 = vmor %vm1719_vm3, %vm1720_vm2 }
0x1268   :  { %v1730_v2 = vmul.f32 %v2671_v62, %v1713_v47  ;;  %v1716_v8 = vsub.f32 1.0, %v1715_v0  ;;  %vm1735_vm4 = vweird.f32 %v2671_v62  ;;  %v1777_v47 = vld [vmem:[#allocation2 + $0x38] sm:$0x3] }
0x1269   :  { %vm1736_vm8 = vmor %vm1734_vm7, %vm1735_vm4 }
0x126a   :  { %v1717_v59 = vmul.f32 %v2669_v48, %v1716_v8  ;;  %v1731_v13 = vsub.f32 1.0, %v1730_v2 }
0x126c   :  { %v1718_v15 = vadd.f32 %v2669_v48, %v1717_v59  ;;  %v1732_v16 = vmul.f32 %v2671_v62, %v1731_v13 }
0x126e   :  { %v1722_v22 = vsel %vm1721_vm5, %v2669_v48, %v1718_v15  ;;  %v1733_v23 = vadd.f32 %v2671_v62, %v1732_v16 }
0x126f   :  { %v1727_v24 = vsel %vm1724_vm6, %v1726_v21, %v1722_v22 }
0x1270   :  { %v1737_v26 = vsel %vm1736_vm8, %v2671_v62, %v1733_v23  ;;  %v1751_v17 = vmul.f32 %v1749_v18, %v1727_v24 }
0x1271   :  { %v1742_v29 = vsel %vm1739_vm9, %v1741_v25, %v1737_v26 }
0x1272   :  { %v1745_v31 = vmul.f32 %v1742_v29, %v3167_v46 }
0x1274   :  { %v1747_v32 = vadd.f32 %v1745_v31, %v3172_v27 }
0x1276   :  { %v1752_v34 = vmul.f32 %v1747_v32, %v1727_v24 }
0x1278   :  { %1754 = vrot.lane.b32.xlu2 %v1752_v34, %s2788_s12 }
0x12d2   :  { %v1755_v36 = vpop.permute.xlu2 %1754 }
0x12d3   :  { %v3583_v49 = vadd.f32 %v1755_v36, %v1751_v17 }
0x12d5   :  { %2672 = vtanh.f32 %v3583_v49 }
0x12db   :  { %v2673_v33 = vpop.eup %2672 }
0x12dc   :  { %v3586_v51 = vmul.f32 %v2673_v33, %v1747_v32  ;;  %v1871_v32 = vrot.slane %v3583_v49, 6 }
0x12de   :  { %v1779_v53 = vrot.slane %v3586_v51, 6 }
0x12e0   :  { %1780 = vrot.lane.b32.xlu0 %v1779_v53, %s2788_s12 }
0x1352   :  { %v1781_v28 = vpop.permute.xlu0 %1780 }
0x1353   :  { %2518 = vmatmul.msk.f32.vlgmr.msra.gmra.mxu1 %vm278_vm12, %v1781_v28  ;;  %2519 = vmatmul.msk.f32.vlgmr.msra.gmra.mxu0 %vm278_vm12, %v1781_v28 }
0x1354   :  { %2292 = vmatpush.msra.mxu1 %v2744_v54  ;;  %2312 = vmatpush.msra.mxu0 %v2745_v55 }
0x1356   :  { %2293 = vmatpush.msra.mxu1 %v2746_v50  ;;  %2313 = vmatpush.msra.mxu0 %v2747_v61 }
0x1358   :  { %2294 = vmatpush.msra.mxu1 %v2748_v38  ;;  %2314 = vmatpush.msra.mxu0 %v2749_v39 }
0x135a   :  { %2295 = vmatpush.msra.mxu1 %v2750_v40  ;;  %2315 = vmatpush.msra.mxu0 %v2751_v41 }
0x135c   :  { %2296 = vmatpush.msra.mxu1 %v2752_v42  ;;  %2316 = vmatpush.msra.mxu0 %v2753_v44 }
0x135e   :  { %2297 = vmatpush.msra.mxu1 %v2754_v43  ;;  %2317 = vmatpush.msra.mxu0 %v2755_v57 }
0x1360   :  { %2298 = vmatpush.msra.mxu1 %v2756_v1  ;;  %2318 = vmatpush.msra.mxu0 %v2757_v56 }
0x1362   :  { %2299 = vmatpush.msra.mxu1 %v2758_v3  ;;  %2319 = vmatpush.msra.mxu0 %v2759_v4  ;;  %v1898_v3 = vld [vmem:[#allocation2 + $0x28] sm:$0xc]  ;;  %v1899_v4 = vld [vmem:[#allocation2 + $0x38] sm:$0xc] }
0x13d0   :  { %v1801_v7 = vpop.f32.mrf.mxu1  ;;  %v1821_v48 = vpop.f32.mrf.mxu0 }
0x13d1   :  { %v1824_v0 = vadd.f32 %v1801_v7, %v1776_v6  ;;  %v1825_v62 = vadd.f32 %v1821_v48, %v1777_v47 }
0x13d3   :  { %v2520_v2 = vmul.f32 -1.442695, %v1824_v0  ;;  %v1827_v8 = vmul.f32 %v1825_v62, %v3167_v46 }
0x13d5   :  { %2674 = vpow2.f32 %v2520_v2  ;;  %v2521_v9 = vmul.f32 -1.442695, %v1827_v8 }
0x13d7   :  { %2676 = vpow2.f32 %v2521_v9 }
0x13db   :  { %v2675_v59 = vpop.eup %2674 }
0x13dc   :  { %v1834_v11 = vadd.f32 1.0, %v2675_v59 }
0x13dd   :  { %v2677_v13 = vpop.eup %2676 }
0x13de   :  { %2678 = vrcp.f32 %v1834_v11  ;;  %v1835_v14 = vadd.f32 1.0, %v2677_v13  ;;  %v1847_v22 = vand.u32 2147483648, %v1834_v11  ;;  %v1845_v25 = vand.u32 2147483647, %v1834_v11 }
0x13df   :  { %vm1841_vm11 = vweird.f32 %v1834_v11 }
0x13e0   :  { %2680 = vrcp.f32 %v1835_v14  ;;  %v1862_v26 = vand.u32 2147483648, %v1835_v14  ;;  %v1860_v31 = vand.u32 2147483647, %v1835_v14  ;;  %v1848_v34 = vor.u32 1.1754944e-38, %v1847_v22 }
0x13e1   :  { %vm1846_vm15 = vcmp.eq.f32.partialorder %v1845_v25, 8.507059e+37  ;;  %vm1856_vm0 = vweird.f32 %v1835_v14 }
0x13e2   :  { %v1863_v28 = vor.u32 1.1754944e-38, %v1862_v26  ;;  %vm1861_vm2 = vcmp.eq.f32.partialorder %v1860_v31, 8.507059e+37 }
0x13e4   :  { %v2679_v15 = vpop.eup %2678 }
0x13e5   :  { %v1837_v16 = vmul.f32 %v2679_v15, %v1834_v11  ;;  %vm1842_vm10 = vweird.f32 %v2679_v15 }
0x13e6   :  { %v2681_v10 = vpop.eup %2680  ;;  %vm1843_vm14 = vmor %vm1841_vm11, %vm1842_vm10 }
0x13e7   :  { %v1852_v18 = vmul.f32 %v2681_v10, %v1835_v14  ;;  %v1838_v21 = vsub.f32 1.0, %v1837_v16  ;;  %vm1857_vm13 = vweird.f32 %v2681_v10 }
0x13e8   :  { %vm1858_vm1 = vmor %vm1856_vm0, %vm1857_vm13 }
0x13e9   :  { %v1853_v23 = vsub.f32 1.0, %v1852_v18  ;;  %v1839_v24 = vmul.f32 %v2679_v15, %v1838_v21 }
0x13eb   :  { %v1840_v17 = vadd.f32 %v2679_v15, %v1839_v24  ;;  %v1854_v29 = vmul.f32 %v2681_v10, %v1853_v23 }
0x13ed   :  { %v1844_v36 = vsel %vm1843_vm14, %v2679_v15, %v1840_v17  ;;  %v1855_v33 = vadd.f32 %v2681_v10, %v1854_v29 }
0x13ee   :  { %v1849_v53 = vsel %vm1846_vm15, %v1848_v34, %v1844_v36 }
0x13ef   :  { %v1859_v54 = vsel %vm1858_vm1, %v2681_v10, %v1855_v33  ;;  %v1873_v55 = vmul.f32 %v1871_v32, %v1849_v53 }
0x13f0   :  { %v1864_v50 = vsel %vm1861_vm2, %v1863_v28, %v1859_v54 }
0x13f1   :  { %v1867_v61 = vmul.f32 %v1864_v50, %v3167_v46 }
0x13f3   :  { %v1869_v38 = vadd.f32 %v1867_v61, %v3172_v27 }
0x13f5   :  { %v1874_v39 = vmul.f32 %v1869_v38, %v1849_v53 }
0x13f7   :  { %1876 = vrot.lane.b32.xlu1 %v1874_v39, %s2788_s12 }
0x1469   :  { %v1877_v49 = vpop.permute.xlu1 %1876 }
0x146a   :  { %v1879_v40 = vadd.f32 %v1877_v49, %v1873_v55 }
0x146c   :  { %2682 = vtanh.f32 %v1879_v40  ;;  %v1998_v26 = vrot.slane %v1879_v40, 6 }
0x1472   :  { %v2683_v41 = vpop.eup %2682 }
0x1473   :  { %v3645_v42 = vmul.f32 %v2683_v41, %v1869_v38 }
0x1475   :  { %1901 = vrot.lane.b32.xlu2 %v3645_v42, %s2788_s12 }
0x14cf   :  { %v1902_v44 = vpop.permute.xlu2 %1901 }
0x14d0   :  { %2523 = vmatmul.msk.f32.vlgmr.msra.gmra.mxu2 %vm278_vm12, %v1902_v44  ;;  %2524 = vmatmul.msk.f32.vlgmr.msra.gmra.mxu3 %vm278_vm12, %v1902_v44 }
0x1553   :  { %v1922_v43 = vpop.f32.mrf.mxu2  ;;  %v1942_v57 = vpop.f32.mrf.mxu3 }
0x1554   :  { %v1947_v1 = vrot.slane %v1922_v43, 6  ;;  %v1948_v56 = vrot.slane %v1942_v57, 6 }
0x1556   :  { %v1951_v6 = vadd.f32 %v1947_v1, %v1898_v3  ;;  %v1952_v7 = vadd.f32 %v1948_v56, %v1899_v4  ;;  %v2022_v1 = vld [vmem:[#allocation2 + $0x28] sm:$0x30]  ;;  %v2023_v56 = vld [vmem:[#allocation2 + $0x38] sm:$0x30] }
0x1558   :  { %v2525_v47 = vmul.f32 -1.442695, %v1951_v6  ;;  %v1954_v48 = vmul.f32 %v1952_v7, %v3167_v46 }
0x155a   :  { %2684 = vpow2.f32 %v2525_v47  ;;  %v2526_v0 = vmul.f32 -1.442695, %v1954_v48 }
0x155c   :  { %2686 = vpow2.f32 %v2526_v0 }
0x1560   :  { %v2685_v62 = vpop.eup %2684 }
0x1561   :  { %v1961_v2 = vadd.f32 1.0, %v2685_v62 }
0x1562   :  { %v2687_v8 = vpop.eup %2686 }
0x1563   :  { %2688 = vrcp.f32 %v1961_v2  ;;  %v1962_v9 = vadd.f32 1.0, %v2687_v8  ;;  %v1974_v16 = vand.u32 2147483648, %v1961_v2  ;;  %v1972_v18 = vand.u32 2147483647, %v1961_v2 }
0x1564   :  { %vm1968_vm4 = vweird.f32 %v1961_v2 }
0x1565   :  { %2690 = vrcp.f32 %v1962_v9  ;;  %v1989_v22 = vand.u32 2147483648, %v1962_v9  ;;  %v1987_v25 = vand.u32 2147483647, %v1962_v9  ;;  %v1975_v17 = vor.u32 1.1754944e-38, %v1974_v16 }
0x1566   :  { %vm1973_vm7 = vcmp.eq.f32.partialorder %v1972_v18, 8.507059e+37  ;;  %vm1983_vm8 = vweird.f32 %v1962_v9 }
0x1567   :  { %v1990_v34 = vor.u32 1.1754944e-38, %v1989_v22  ;;  %vm1988_vm10 = vcmp.eq.f32.partialorder %v1987_v25, 8.507059e+37 }
0x1569   :  { %v2689_v59 = vpop.eup %2688 }
0x156a   :  { %v1964_v11 = vmul.f32 %v2689_v59, %v1961_v2  ;;  %vm1969_vm3 = vweird.f32 %v2689_v59 }
0x156b   :  { %v2691_v13 = vpop.eup %2690  ;;  %vm1970_vm6 = vmor %vm1968_vm4, %vm1969_vm3  ;;  %vm759_vm4 = vcmask 523270  }
0x156c   :  { %v1979_v14 = vmul.f32 %v2691_v13, %v1962_v9  ;;  %v1965_v15 = vsub.f32 1.0, %v1964_v11  ;;  %vm1984_vm5 = vweird.f32 %v2691_v13 }
0x156d   :  { %vm1985_vm9 = vmor %vm1983_vm8, %vm1984_vm5 }
0x156e   :  { %v1966_v10 = vmul.f32 %v2689_v59, %v1965_v15  ;;  %v1980_v21 = vsub.f32 1.0, %v1979_v14 }
0x1570   :  { %v1967_v23 = vadd.f32 %v2689_v59, %v1966_v10  ;;  %v1981_v24 = vmul.f32 %v2691_v13, %v1980_v21 }
0x1572   :  { %v1971_v29 = vsel %vm1970_vm6, %v2689_v59, %v1967_v23  ;;  %v1982_v31 = vadd.f32 %v2691_v13, %v1981_v24 }
0x1573   :  { %v1976_v32 = vsel %vm1973_vm7, %v1975_v17, %v1971_v29 }
0x1574   :  { %v1986_v36 = vsel %vm1985_vm9, %v2691_v13, %v1982_v31  ;;  %v2000_v33 = vmul.f32 %v1998_v26, %v1976_v32 }
0x1575   :  { %v1991_v53 = vsel %vm1988_vm10, %v1990_v34, %v1986_v36 }
0x1576   :  { %v1994_v28 = vmul.f32 %v1991_v53, %v3167_v46 }
0x1578   :  { %v1996_v54 = vadd.f32 %v1994_v28, %v3172_v27 }
0x157a   :  { %v2001_v55 = vmul.f32 %v1996_v54, %v1976_v32 }
0x157c   :  { %2003 = vrot.lane.b32.xlu0 %v2001_v55, %s2788_s12 }
0x15ee   :  { %v2004_v50 = vpop.permute.xlu0 %2003 }
0x15ef   :  { %v2006_v61 = vadd.f32 %v2004_v50, %v2000_v33 }
0x15f1   :  { %2692 = vtanh.f32 %v2006_v61  ;;  %v2123_v24 = vrot.slane %v2006_v61, 6 }
0x15f7   :  { %v2693_v38 = vpop.eup %2692 }
0x15f8   :  { %v3655_v39 = vmul.f32 %v2693_v38, %v1996_v54 }
0x15fa   :  { %v2025_v49 = vrot.slane %v3655_v39, 2 }
0x15fc   :  { %2026 = vrot.lane.b32.xlu1 %v2025_v49, %s2788_s12  ;;  %v2552_v49 = vld [vmem:[%s3812_s6] ss:$0 sm:$0xff] }
0x166e   :  { %v2027_v40 = vpop.permute.xlu1 %2026 }
0x166f   :  { %2528 = vmatmul.msk.f32.vlgmr.msrb.gmra.mxu1 %vm278_vm12, %v2027_v40  ;;  %2529 = vmatmul.msk.f32.vlgmr.msrb.gmra.mxu0 %vm278_vm12, %v2027_v40 }
0x16ec   :  { %v2047_v41 = vpop.f32.mrf.mxu1  ;;  %v2067_v44 = vpop.f32.mrf.mxu0 }
0x16ed   :  { %v2072_v43 = vrot.slane %v2047_v41, 4  ;;  %v2073_v57 = vrot.slane %v2067_v44, 4 }
0x16ef   :  { %v2076_v3 = vadd.f32 %v2072_v43, %v2022_v1  ;;  %v2077_v4 = vadd.f32 %v2073_v57, %v2023_v56 }
0x16f1   :  { %v2530_v6 = vmul.f32 -1.442695, %v2076_v3  ;;  %v2079_v7 = vmul.f32 %v2077_v4, %v3167_v46 }
0x16f3   :  { %2694 = vpow2.f32 %v2530_v6  ;;  %v2531_v47 = vmul.f32 -1.442695, %v2079_v7  ;;  %v2150_v7 = vld [vmem:[#allocation2 + $0x28] sm:$0xc0] }
0x16f5   :  { %2696 = vpow2.f32 %v2531_v47  ;;  %v2151_v47 = vld [vmem:[#allocation2 + $0x38] sm:$0xc0] }
0x16f9   :  { %v2695_v48 = vpop.eup %2694 }
0x16fa   :  { %v2086_v0 = vadd.f32 1.0, %v2695_v48 }
0x16fb   :  { %v2697_v62 = vpop.eup %2696 }
0x16fc   :  { %2698 = vrcp.f32 %v2086_v0  ;;  %v2087_v2 = vadd.f32 1.0, %v2697_v62  ;;  %v2099_v14 = vand.u32 2147483648, %v2086_v0  ;;  %v2097_v16 = vand.u32 2147483647, %v2086_v0 }
0x16fd   :  { %vm2093_vm13 = vweird.f32 %v2086_v0 }
0x16fe   :  { %2700 = vrcp.f32 %v2087_v2  ;;  %v2114_v18 = vand.u32 2147483648, %v2087_v2  ;;  %v2112_v23 = vand.u32 2147483647, %v2087_v2  ;;  %v2100_v25 = vor.u32 1.1754944e-38, %v2099_v14 }
0x16ff   :  { %vm2098_vm0 = vcmp.eq.f32.partialorder %v2097_v16, 8.507059e+37  ;;  %vm2108_vm1 = vweird.f32 %v2087_v2 }
0x1700   :  { %v2115_v31 = vor.u32 1.1754944e-38, %v2114_v18  ;;  %vm2113_vm3 = vcmp.eq.f32.partialorder %v2112_v23, 8.507059e+37 }
0x1702   :  { %v2699_v8 = vpop.eup %2698 }
0x1703   :  { %v2089_v9 = vmul.f32 %v2699_v8, %v2086_v0  ;;  %vm2094_vm11 = vweird.f32 %v2699_v8 }
0x1704   :  { %v2701_v59 = vpop.eup %2700  ;;  %vm2095_vm15 = vmor %vm2093_vm13, %vm2094_vm11 }
0x1705   :  { %v2104_v11 = vmul.f32 %v2701_v59, %v2087_v2  ;;  %v2090_v13 = vsub.f32 1.0, %v2089_v9  ;;  %vm2109_vm14 = vweird.f32 %v2701_v59 }
0x1706   :  { %vm2110_vm2 = vmor %vm2108_vm1, %vm2109_vm14  ;;  %vm630_vm14 = vcmask 521220   ;;  %vm763_vm1 = vcmp.eq.s32.totalorder %v3163_v37, 2 }
0x1707   :  { %v2091_v15 = vmul.f32 %v2699_v8, %v2090_v13  ;;  %v2105_v10 = vsub.f32 1.0, %v2104_v11 }
0x1709   :  { %v2092_v21 = vadd.f32 %v2699_v8, %v2091_v15  ;;  %v2106_v22 = vmul.f32 %v2701_v59, %v2105_v10 }
0x170b   :  { %v2096_v26 = vsel %vm2095_vm15, %v2699_v8, %v2092_v21  ;;  %v2107_v17 = vadd.f32 %v2701_v59, %v2106_v22  ;;  %vm504_vm15 = vcmask 519170  }
0x170c   :  { %v2101_v29 = vsel %vm2098_vm0, %v2100_v25, %v2096_v26  ;;  %vm634_vm0 = vcmp.eq.s32.totalorder %v3163_v37, 1 }
0x170d   :  { %v2111_v32 = vsel %vm2110_vm2, %v2701_v59, %v2107_v17  ;;  %v2125_v34 = vmul.f32 %v2123_v24, %v2101_v29  ;;  %vm508_vm2 = vcmp.eq.s32.totalorder %v3163_v37, 0 }
0x170e   :  { %v2116_v36 = vsel %vm2113_vm3, %v2115_v31, %v2111_v32 }
0x170f   :  { %v2119_v33 = vmul.f32 %v2116_v36, %v3167_v46 }
0x1711   :  { %v2121_v53 = vadd.f32 %v2119_v33, %v3172_v27 }
0x1713   :  { %v2126_v28 = vmul.f32 %v2121_v53, %v2101_v29 }
0x1715   :  { %2128 = vrot.lane.b32.xlu2 %v2126_v28, %s2788_s12 }
0x176f   :  { %v2129_v54 = vpop.permute.xlu2 %2128 }
0x1770   :  { %v3665_v55 = vadd.f32 %v2129_v54, %v2125_v34 }
0x1772   :  { %2702 = vtanh.f32 %v3665_v55  ;;  %v2251_v31 = vrot.slane %v3665_v55, 6 }
0x1778   :  { %v2703_v50 = vpop.eup %2702 }
0x1779   :  { %v3668_v61 = vmul.f32 %v2703_v50, %v2121_v53 }
0x177b   :  { %v2153_v38 = vrot.slane %v3668_v61, 4 }
0x177d   :  { %2154 = vrot.lane.b32.xlu0 %v2153_v38, %s2788_s12 }
0x1785   :  { %496 = vrot.lane.b32.xlu0 %v2552_v49, %s2788_s12 }
0x17ef   :  { %v2155_v40 = vpop.permute.xlu0 %2154 }
0x17f0   :  { %2533 = vmatmul.msk.f32.vlgmr.msrb.gmra.mxu2 %vm278_vm12, %v2155_v40  ;;  %2534 = vmatmul.msk.f32.vlgmr.msrb.gmra.mxu3 %vm278_vm12, %v2155_v40 }
0x17f7   :  { %v3678_v41 = vpop.permute.xlu0 %496 }
0x17f8   :  { %v625_v44 = vmul.f32 %v3236_v63, %v3678_v41  ;;  %v754_v43 = vmul.f32 %v3266_v5, %v3678_v41  ;;  %v1130_v13 = vmul.f32 %v3436_v60, %v3678_v41  ;;  %v1258_v25 = vmul.f32 %v3466_v12, %v3678_v41 }
0x17f9   :  { %v499_v49 = vmul.f32 %v3678_v41, %v3206_v45 }
0x17fa   :  { %627 = vrot.lane.b32.xlu0 %v625_v44, %s2788_s12 }
0x1802   :  { %756 = vrot.lane.b32.xlu0 %v754_v43, %s2788_s12 }
0x186c   :  { %v3686_v57 = vpop.permute.xlu0 %627 }
0x186d   :  { %v631_v40 = vsel %vm630_vm14, %v3686_v57, 0.0 }
0x1873   :  { %v2175_v1 = vpop.f32.mrf.mxu2  ;;  %v2195_v56 = vpop.f32.mrf.mxu3 }
0x1874   :  { %v2200_v3 = vrot.slane %v2175_v1, 2  ;;  %v2201_v4 = vrot.slane %v2195_v56, 2  ;;  %v757_v6 = vpop.permute.xlu0 %756 }
0x1875   :  { %v760_v48 = vsel %vm759_vm4, %v757_v6, 0.0 }
0x1876   :  { %v2204_v63 = vadd.f32 %v2200_v3, %v2150_v7  ;;  %v2205_v0 = vadd.f32 %v2201_v4, %v2151_v47  ;;  %761 = vadd.xlane.f32.xlu0 %v760_v48  ;;  %v877_v48 = vmul.f32 %v3296_v35, %v3678_v41  ;;  %v2467_v35 = vsel %vm508_vm2, 1.0, %v2786_v20 }
0x1877   :  { %vm1515_vm2 = vcmp.eq.s32.totalorder %v3163_v37, 8 }
0x1878   :  { %v2535_v62 = vmul.f32 -1.442695, %v2204_v63  ;;  %v2207_v5 = vmul.f32 %v2205_v0, %v3167_v46  ;;  %v2472_v0 = vsel %vm634_vm0, 1.0, %v2786_v20  ;;  %vm1013_vm0 = vcmp.eq.s32.totalorder %v3163_v37, 4 }
0x187a   :  { %2704 = vpow2.f32 %v2535_v62  ;;  %v2536_v2 = vmul.f32 -1.442695, %v2207_v5  ;;  %v2477_v5 = vsel %vm763_vm1, 1.0, %v2786_v20  ;;  %vm1266_vm1 = vcmp.eq.s32.totalorder %v3163_v37, 6 }
0x187c   :  { %2706 = vpow2.f32 %v2536_v2 }
0x1880   :  { %v2705_v8 = vpop.eup %2704 }
0x1881   :  { %v2214_v9 = vadd.f32 1.0, %v2705_v8 }
0x1882   :  { %v2707_v59 = vpop.eup %2706 }
0x1883   :  { %2708 = vrcp.f32 %v2214_v9  ;;  %v2215_v11 = vadd.f32 1.0, %v2707_v59  ;;  %v2227_v21 = vand.u32 2147483648, %v2214_v9  ;;  %v2225_v24 = vand.u32 2147483647, %v2214_v9 }
0x1884   :  { %vm2221_vm6 = vweird.f32 %v2214_v9 }
0x1885   :  { %2710 = vrcp.f32 %v2215_v11  ;;  %v2242_v26 = vand.u32 2147483648, %v2215_v11  ;;  %v2240_v60 = vand.u32 2147483647, %v2215_v11  ;;  %v2228_v32 = vor.u32 1.1754944e-38, %v2227_v21  ;;  %v258_v21 = vld [vmem:[%s3810_s4] sm:$0x3] }
0x1886   :  { %vm2226_vm9 = vcmp.eq.f32.partialorder %v2225_v24, 8.507059e+37  ;;  %vm2236_vm10 = vweird.f32 %v2215_v11  ;;  %s2790_s4 = smov [#allocation4]  }
0x1887   :  { %v2243_v53 = vor.u32 1.1754944e-38, %v2242_v26  ;;  %vm2241_vm13 = vcmp.eq.f32.partialorder %v2240_v60, 8.507059e+37 }
0x1889   :  { %v2709_v14 = vpop.eup %2708 }
0x188a   :  { %1132 = vrot.lane.b32.xlu0 %v1130_v13, %s2788_s12  ;;  %v2217_v15 = vmul.f32 %v2709_v14, %v2214_v9  ;;  %vm2222_vm5 = vweird.f32 %v2709_v14 }
0x188b   :  { %v2711_v16 = vpop.eup %2710  ;;  %vm2223_vm8 = vmor %vm2221_vm6, %vm2222_vm5 }
0x188c   :  { %v2232_v10 = vmul.f32 %v2711_v16, %v2215_v11  ;;  %v2218_v18 = vsub.f32 1.0, %v2217_v15  ;;  %vm2237_vm7 = vweird.f32 %v2711_v16 }
0x188d   :  { %vm2238_vm11 = vmor %vm2236_vm10, %vm2237_vm7 }
0x188e   :  { %v2233_v22 = vsub.f32 1.0, %v2232_v10  ;;  %v2219_v23 = vmul.f32 %v2709_v14, %v2218_v18  ;;  %v1005_v18 = vmul.f32 %v3406_v52, %v3678_v41 }
0x1890   :  { %v2220_v17 = vadd.f32 %v2709_v14, %v2219_v23  ;;  %v2234_v29 = vmul.f32 %v2711_v16, %v2233_v22  ;;  %v2325_v22 = vperm.slane %v258_v21, 0  ;;  %v2326_v23 = vperm.slane %v258_v21, 1 }
0x1892   :  { %1260 = vrot.lane.b32.xlu0 %v1258_v25, %s2788_s12  ;;  %v2224_v34 = vsel %vm2223_vm8, %v2709_v14, %v2220_v17  ;;  %v2235_v36 = vadd.f32 %v2711_v16, %v2234_v29 }
0x1893   :  { %v2229_v33 = vsel %vm2226_vm9, %v2228_v32, %v2224_v34 }
0x1894   :  { %v2239_v12 = vsel %vm2238_vm11, %v2711_v16, %v2235_v36  ;;  %v2253_v28 = vmul.f32 %v2251_v31, %v2229_v33 }
0x1895   :  { %v2244_v54 = vsel %vm2241_vm13, %v2243_v53, %v2239_v12  ;;  %vm886_vm13 = vcmp.eq.s32.totalorder %v3163_v37, 3 }
0x1896   :  { %v2247_v50 = vmul.f32 %v2244_v54, %v3167_v46 }
0x1898   :  { %v2249_v38 = vadd.f32 %v2247_v50, %v3172_v27 }
0x189a   :  { %v2254_v55 = vmul.f32 %v2249_v38, %v2229_v33 }
0x189c   :  { %2256 = vrot.lane.b32.xlu1 %v2254_v55, %s2788_s12 }
0x18a4   :  { %501 = vrot.lane.b32.xlu1 %v499_v49, %s2788_s12 }
0x18ce   :  { %632 = vadd.xlane.f32.xlu1 %v631_v40 }
0x18e9   :  { %v762_v44 = vpop.xlane.xlu0 %761 }
0x18ea   :  { %v766_v8 = vmul.f32 %v2477_v5, %v762_v44 }
0x18ec   :  { %v768_v13 = vrot.slane %v766_v8, 4  ;;  %v2482_v8 = vsel %vm886_vm13, 1.0, %v2786_v20  ;;  %vm2430_vm13 = vcmask 125954  }
0x18fc   :  { %v1133_v43 = vpop.permute.xlu0 %1132 }
0x18fd   :  { %v1135_v33 = vsel %vm630_vm14, %v1133_v43, 0.0 }
0x1904   :  { %v1261_v1 = vpop.permute.xlu0 %1260 }
0x1905   :  { %v1263_v56 = vsel %vm759_vm4, %v1261_v1, 0.0 }
0x1906   :  { %1264 = vadd.xlane.f32.xlu0 %v1263_v56 }
0x190e   :  { %v2257_v3 = vpop.permute.xlu1 %2256 }
0x190f   :  { %v3706_v4 = vadd.f32 %v2257_v3, %v2253_v28 }
0x1911   :  { %2712 = vtanh.f32 %v3706_v4 }
0x1916   :  { %v502_v57 = vpop.permute.xlu1 %501 }
0x1917   :  { %v2713_v6 = vpop.eup %2712  ;;  %v505_v47 = vsel %vm504_vm15, %v502_v57, 0.0 }
0x1918   :  { %v3709_v45 = vmul.f32 %v2713_v6, %v2249_v38  ;;  %v2376_v6 = vrot.slane %v3706_v4, 6  ;;  %v2009_v4 = vmul.f32 %v3655_v39, %v3678_v41  ;;  %v1507_v39 = vmul.f32 %v3526_v30, %v3678_v41 }
0x191a   :  { %v2279_v7 = vrot.slane %v3709_v45, 6  ;;  %v2262_v30 = vmul.f32 %v3709_v45, %v3678_v41 }
0x191c   :  { %2280 = vrot.lane.b32.xlu2 %v2279_v7, %s2788_s12 }
0x1941   :  { %v633_v62 = vpop.xlane.xlu1 %632 }
0x1942   :  { %v637_v2 = vmul.f32 %v2472_v0, %v633_v62 }
0x1944   :  { %v639_v59 = vrot.slane %v637_v2, 2 }
0x1945   :  { %506 = vadd.xlane.f32.xlu2 %v505_v47 }
0x195d   :  { %879 = vrot.lane.b32.xlu2 %v877_v48, %s2788_s12 }
0x1976   :  { %v2281_v63 = vpop.permute.xlu2 %2280 }
0x1977   :  { %2538 = vmatmul.msk.f32.vlgmr.msra.gmra.mxu1 %vm278_vm12, %v2281_v63  ;;  %2539 = vmatmul.msk.f32.vlgmr.msra.gmra.mxu0 %vm278_vm12, %v2281_v63  ;;  %vm882_vm12 = vcmask 517120  }
0x19b8   :  { %v507_v9 = vpop.xlane.xlu2 %506 }
0x19b9   :  { %v511_v11 = vmul.f32 %v2467_v35, %v507_v9 }
0x19bb   :  { %v641_v14 = vadd.f32 %v639_v59, %v511_v11 }
0x19bd   :  { %v3725_v15 = vadd.f32 %v768_v13, %v641_v14  ;;  %v1380_v14 = vmul.f32 %v3496_v19, %v3678_v41  ;;  %v1882_v19 = vmul.f32 %v3645_v42, %v3678_v41  ;;  %v2487_v42 = vsel %vm1013_vm0, 1.0, %v2786_v20 }
0x19c0   :  { %v880_v16 = vpop.permute.xlu2 %879 }
0x19c1   :  { %v883_v10 = vsel %vm882_vm12, %v880_v16, 0.0  ;;  %v1632_v16 = vmul.f32 %v3556_v58, %v3678_v41 }
0x19c2   :  { %884 = vadd.xlane.f32.xlu1 %v883_v10  ;;  %v1265_v10 = vpop.xlane.xlu0 %1264 }
0x19db   :  { %1007 = vrot.lane.b32.xlu1 %v1005_v18, %s2788_s12 }
0x19f4   :  { %v2301_v24 = vpop.f32.mrf.mxu1  ;;  %v2321_v25 = vpop.f32.mrf.mxu0 }
0x19f5   :  { %v2329_v26 = vadd.f32 %v2325_v22, %v2301_v24  ;;  %v2330_v17 = vadd.f32 %v2326_v23, %v2321_v25 }
0x19f7   :  { %v2540_v29 = vmul.f32 -1.442695, %v2329_v26  ;;  %v2332_v60 = vmul.f32 %v2330_v17, %v3167_v46 }
0x19f9   :  { %2714 = vpow2.f32 %v2540_v29  ;;  %v2541_v31 = vmul.f32 -1.442695, %v2332_v60 }
0x19fb   :  { %2716 = vpow2.f32 %v2541_v31 }
0x19ff   :  { %v2715_v32 = vpop.eup %2714 }
0x1a00   :  { %v2339_v52 = vadd.f32 1.0, %v2715_v32 }
0x1a01   :  { %v2717_v34 = vpop.eup %2716 }
0x1a02   :  { %2718 = vrcp.f32 %v2339_v52  ;;  %v2340_v36 = vadd.f32 1.0, %v2717_v34  ;;  %v2352_v38 = vand.u32 2147483648, %v2339_v52  ;;  %v2350_v40 = vand.u32 2147483647, %v2339_v52 }
0x1a03   :  { %vm2346_vm5 = vweird.f32 %v2339_v52 }
0x1a04   :  { %2720 = vrcp.f32 %v2340_v36  ;;  %v2367_v44 = vand.u32 2147483648, %v2340_v36  ;;  %v2365_v3 = vand.u32 2147483647, %v2340_v36  ;;  %v2353_v43 = vor.u32 1.1754944e-38, %v2352_v38 }
0x1a05   :  { %1136 = vadd.xlane.f32.xlu1 %v1135_v33  ;;  %vm2351_vm8 = vcmp.eq.f32.partialorder %v2350_v40, 8.507059e+37  ;;  %vm2361_vm9 = vweird.f32 %v2340_v36 }
0x1a06   :  { %v2368_v48 = vor.u32 1.1754944e-38, %v2367_v44  ;;  %vm2366_vm11 = vcmp.eq.f32.partialorder %v2365_v3, 8.507059e+37  ;;  %v2497_v44 = vsel %vm1266_vm1, 1.0, %v2786_v20 }
0x1a08   :  { %v2719_v53 = vpop.eup %2718 }
0x1a09   :  { %v2342_v12 = vmul.f32 %v2719_v53, %v2339_v52  ;;  %vm2347_vm3 = vweird.f32 %v2719_v53 }
0x1a0a   :  { %v2721_v28 = vpop.eup %2720  ;;  %vm2348_vm7 = vmor %vm2346_vm5, %vm2347_vm3  ;;  %vm1768_vm3 = vcmp.eq.s32.totalorder %v3163_v37, 10  ;;  %vm1890_vm5 = vcmp.eq.s32.totalorder %v3163_v37, 11 }
0x1a0b   :  { %v2357_v54 = vmul.f32 %v2721_v28, %v2340_v36  ;;  %v2343_v50 = vsub.f32 1.0, %v2342_v12  ;;  %vm2362_vm6 = vweird.f32 %v2721_v28 }
0x1a0c   :  { %vm2363_vm10 = vmor %vm2361_vm9, %vm2362_vm6  ;;  %vm2017_vm6 = vcmp.eq.s32.totalorder %v3163_v37, 12  ;;  %vm2395_vm9 = vcmp.eq.s32.totalorder %v3163_v37, 15 }
0x1a0d   :  { %v2358_v55 = vsub.f32 1.0, %v2357_v54  ;;  %v2344_v49 = vmul.f32 %v2719_v53, %v2343_v50  ;;  %v2134_v54 = vmul.f32 %v3668_v61, %v3678_v41 }
0x1a0f   :  { %v2345_v1 = vadd.f32 %v2719_v53, %v2344_v49  ;;  %v2359_v56 = vmul.f32 %v2721_v28, %v2358_v55 }
0x1a11   :  { %v2349_v7 = vsel %vm2348_vm7, %v2719_v53, %v2345_v1  ;;  %v2360_v57 = vadd.f32 %v2721_v28, %v2359_v56  ;;  %v1269_v1 = vmul.f32 %v2497_v44, %v1265_v10  ;;  %vm2270_vm7 = vcmp.eq.s32.totalorder %v3163_v37, 14 }
0x1a12   :  { %v2354_v47 = vsel %vm2351_vm8, %v2353_v43, %v2349_v7  ;;  %vm2142_vm8 = vcmp.eq.s32.totalorder %v3163_v37, 13 }
0x1a13   :  { %v2364_v63 = vsel %vm2363_vm10, %v2721_v28, %v2360_v57  ;;  %v2378_v0 = vmul.f32 %v2376_v6, %v2354_v47  ;;  %v1271_v6 = vrot.slane %v1269_v1, 4 }
0x1a14   :  { %v2369_v62 = vsel %vm2366_vm11, %v2368_v48, %v2364_v63  ;;  %v2507_v48 = vsel %vm1515_vm2, 1.0, %v2786_v20 }
0x1a15   :  { %v2372_v5 = vmul.f32 %v2369_v62, %v3167_v46 }
0x1a17   :  { %v2374_v2 = vadd.f32 %v2372_v5, %v3172_v27 }
0x1a19   :  { %v2379_v35 = vmul.f32 %v2374_v2, %v2354_v47 }
0x1a1b   :  { %2381 = vrot.lane.b32.xlu0 %v2379_v35, %s2788_s12 }
0x1a23   :  { %2011 = vrot.lane.b32.xlu0 %v2009_v4, %s2788_s12 }
0x1a35   :  { %v885_v9 = vpop.xlane.xlu1 %884 }
0x1a36   :  { %v889_v59 = vmul.f32 %v2482_v8, %v885_v9  ;;  %v2517_v9 = vsel %vm1768_vm3, 1.0, %v2786_v20 }
0x1a38   :  { %v891_v11 = vrot.slane %v889_v59, 6 }
0x1a3a   :  { %v893_v13 = vadd.f32 %v891_v11, %v3725_v15  ;;  %v1760_v15 = vmul.f32 %v3586_v51, %v3678_v41 }
0x1a4d   :  { %v1008_v46 = vpop.permute.xlu1 %1007 }
0x1a4e   :  { %v1010_v27 = vsel %vm504_vm15, %v1008_v46, 0.0 }
0x1a4f   :  { %1011 = vadd.xlane.f32.xlu2 %v1010_v27  ;;  %v2553_v27 = vld [vmem:[#allocation3] ss:$0 sm:$0xff] }
0x1a67   :  { %1382 = vrot.lane.b32.xlu2 %v1380_v14, %s2788_s12  ;;  %v2789_v14 = vmov 0  }
0x1a68   :  { %2549 = vset.pattern.permute.xlu2 %v2789_v14  ;;  %2550 = vset.pattern.permute.xlu0 %v2789_v14 }
0x1a6f   :  { %1509 = vrot.lane.b32.xlu2 %v1507_v39, %s2788_s12 }
0x1a77   :  { %1634 = vrot.lane.b32.xlu2 %v1632_v16, %s2788_s12 }
0x1a78   :  { %v1137_v49 = vpop.xlane.xlu1 %1136 }
0x1a7f   :  { %1762 = vrot.lane.b32.xlu2 %v1760_v15, %s2788_s12  ;;  %v2522_v15 = vsel %vm1890_vm5, 1.0, %v2786_v20 }
0x1a87   :  { %1884 = vrot.lane.b32.xlu2 %v1882_v19, %s2788_s12 }
0x1a8d   :  { %v2382_v18 = vpop.permute.xlu0 %2381 }
0x1a8e   :  { %v2384_v21 = vadd.f32 %v2382_v18, %v2378_v0 }
0x1a8f   :  { %2264 = vrot.lane.b32.xlu2 %v2262_v30, %s2788_s12 }
0x1a90   :  { %2722 = vtanh.f32 %v2384_v21  ;;  %v2527_v21 = vsel %vm2017_vm6, 1.0, %v2786_v20 }
0x1a95   :  { %v2012_v23 = vpop.permute.xlu0 %2011 }
0x1a96   :  { %v2723_v58 = vpop.eup %2722  ;;  %v2014_v26 = vsel %vm504_vm15, %v2012_v23, 0.0  ;;  %v2542_v23 = vsel %vm2395_vm9, 1.0, %v2786_v20 }
0x1a97   :  { %v2386_v22 = vmul.f32 %v2723_v58, %v2374_v2  ;;  %v2537_v58 = vsel %vm2270_vm7, 1.0, %v2786_v20 }
0x1a99   :  { %v2387_v51 = vmul.f32 %v2386_v22, %v3678_v41 }
0x1a9b   :  { %2389 = vrot.lane.b32.xlu0 %v2387_v51, %s2788_s12  ;;  %v2532_v51 = vsel %vm2142_vm8, 1.0, %v2786_v20 }
0x1ac2   :  { %v1012_v24 = vpop.xlane.xlu2 %1011 }
0x1ac3   :  { %v1016_v25 = vmul.f32 %v2487_v42, %v1012_v24 }
0x1ac5   :  { %v1017_v45 = vadd.f32 %v1016_v25, %v893_v13  ;;  %2015 = vadd.xlane.f32.xlu0 %v2014_v26 }
0x1aca   :  { %v1383_v17 = vpop.permute.xlu2 %1382 }
0x1acb   :  { %v1385_v29 = vsel %vm882_vm12, %v1383_v17, 0.0 }
0x1acc   :  { %1386 = vadd.xlane.f32.xlu1 %v1385_v29 }
0x1ad2   :  { %v1510_v60 = vpop.permute.xlu2 %1509 }
0x1ad3   :  { %v1512_v31 = vsel %vm504_vm15, %v1510_v60, 0.0  ;;  %vm1138_vm15 = vcmp.eq.s32.totalorder %v3163_v37, 5 }
0x1ad4   :  { %1513 = vadd.xlane.f32.xlu1 %v1512_v31  ;;  %v2492_v55 = vsel %vm1138_vm15, 1.0, %v2786_v20 }
0x1ad5   :  { %v1141_v40 = vmul.f32 %v2492_v55, %v1137_v49 }
0x1ad7   :  { %v1143_v61 = vrot.slane %v1141_v40, 2 }
0x1ad9   :  { %v1145_v56 = vadd.f32 %v1143_v61, %v1017_v45 }
0x1ada   :  { %v1635_v32 = vpop.permute.xlu2 %1634 }
0x1adb   :  { %v1637_v52 = vsel %vm630_vm14, %v1635_v32, 0.0  ;;  %v1273_v7 = vadd.f32 %v1271_v6, %v1145_v56 }
0x1adc   :  { %1638 = vadd.xlane.f32.xlu1 %v1637_v52 }
0x1ae2   :  { %v1763_v34 = vpop.permute.xlu2 %1762 }
0x1ae3   :  { %v1765_v36 = vsel %vm759_vm4, %v1763_v34, 0.0 }
0x1ae4   :  { %1766 = vadd.xlane.f32.xlu1 %v1765_v36 }
0x1aea   :  { %v1885_v33 = vpop.permute.xlu2 %1884 }
0x1aeb   :  { %v1887_v53 = vsel %vm882_vm12, %v1885_v33, 0.0 }
0x1aec   :  { %1888 = vadd.xlane.f32.xlu2 %v1887_v53 }
0x1af2   :  { %v2265_v12 = vpop.permute.xlu2 %2264 }
0x1af3   :  { %v2267_v28 = vsel %vm759_vm4, %v2265_v12, 0.0  ;;  %vm1388_vm4 = vcmp.eq.s32.totalorder %v3163_v37, 7 }
0x1af4   :  { %2268 = vadd.xlane.f32.xlu2 %v2267_v28  ;;  %v2502_v41 = vsel %vm1388_vm4, 1.0, %v2786_v20 }
0x1afd   :  { %2136 = vrot.lane.b32.xlu1 %v2134_v54, %s2788_s12  ;;  %s2437_s12 = sshll.u32 %s2790_s4, 4  ;;  %s2438_s12 = int_to_ptr.vmem [resolvable:$true] %s2437_s12 }
0x1b0c   :  { %2407 = vperm.xlu2 %2549, %v2553_v27  }
0x1b0d   :  { %v2390_v50 = vpop.permute.xlu0 %2389 }
0x1b0e   :  { %v2392_v38 = vsel %vm882_vm12, %v2390_v50, 0.0  ;;  %vm1640_vm12 = vcmp.eq.s32.totalorder %v3163_v37, 9 }
0x1b0f   :  { %2393 = vadd.xlane.f32.xlu0 %v2392_v38  ;;  %v2512_v5 = vsel %vm1640_vm12, 1.0, %v2786_v20 }
0x1b38   :  { %v2016_v18 = vpop.xlane.xlu0 %2015 }
0x1b39   :  { %v2020_v26 = vmul.f32 %v2527_v21, %v2016_v18 }
0x1b3f   :  { %v1387_v3 = vpop.xlane.xlu1 %1386 }
0x1b40   :  { %v1391_v43 = vmul.f32 %v2502_v41, %v1387_v3 }
0x1b42   :  { %v1393_v57 = vrot.slane %v1391_v43, 6 }
0x1b44   :  { %v1395_v47 = vadd.f32 %v1393_v57, %v1273_v7 }
0x1b47   :  { %v1514_v63 = vpop.xlane.xlu1 %1513 }
0x1b48   :  { %v1518_v0 = vmul.f32 %v2507_v48, %v1514_v63 }
0x1b4a   :  { %v1519_v62 = vadd.f32 %v1518_v0, %v1395_v47 }
0x1b4f   :  { %v1639_v2 = vpop.xlane.xlu1 %1638 }
0x1b50   :  { %v1643_v35 = vmul.f32 %v2512_v5, %v1639_v2 }
0x1b52   :  { %v1645_v4 = vrot.slane %v1643_v35, 2 }
0x1b54   :  { %v1647_v8 = vadd.f32 %v1645_v4, %v1519_v62 }
0x1b57   :  { %v1767_v59 = vpop.xlane.xlu1 %1766 }
0x1b58   :  { %v1771_v11 = vmul.f32 %v2517_v9, %v1767_v59 }
0x1b5a   :  { %v1773_v13 = vrot.slane %v1771_v11, 4 }
0x1b5c   :  { %v1775_v46 = vadd.f32 %v1773_v13, %v1647_v8 }
0x1b5f   :  { %v1889_v10 = vpop.xlane.xlu2 %1888 }
0x1b60   :  { %v1893_v19 = vmul.f32 %v2522_v15, %v1889_v10 }
0x1b62   :  { %v1895_v30 = vrot.slane %v1893_v19, 6 }
0x1b64   :  { %v1897_v42 = vadd.f32 %v1895_v30, %v1775_v46 }
0x1b66   :  { %v2021_v60 = vadd.f32 %v2020_v26, %v1897_v42 }
0x1b67   :  { %v2269_v22 = vpop.xlane.xlu2 %2268 }
0x1b68   :  { %v2273_v45 = vmul.f32 %v2537_v58, %v2269_v22 }
0x1b6a   :  { %v2275_v32 = vrot.slane %v2273_v45, 4 }
0x1b6f   :  { %v2137_v39 = vpop.permute.xlu1 %2136  ;;  %v2408_v36 = vpop.permute.xlu2 %2407 }
0x1b70   :  { %v2139_v16 = vsel %vm630_vm14, %v2137_v39, 0.0 }
0x1b71   :  { %2140 = vadd.xlane.f32.xlu1 %v2139_v16 }
0x1b82   :  { %v2394_v24 = vpop.xlane.xlu0 %2393 }
0x1b83   :  { %v2398_v29 = vmul.f32 %v2542_v23, %v2394_v24 }
0x1b85   :  { %v2400_v52 = vrot.slane %v2398_v29, 6 }
0x1be4   :  { %v2141_v25 = vpop.xlane.xlu1 %2140 }
0x1be5   :  { %v2145_v17 = vmul.f32 %v2532_v51, %v2141_v25 }
0x1be7   :  { %v2147_v31 = vrot.slane %v2145_v17, 2 }
0x1be9   :  { %v2149_v37 = vadd.f32 %v2147_v31, %v2021_v60 }
0x1beb   :  { %v2277_v34 = vadd.f32 %v2275_v32, %v2149_v37 }
0x1bed   :  { %v2402_v33 = vadd.f32 %v2400_v52, %v2277_v34 }
0x1bef   :  { %v2410_v53 = vadd.f32 %v2408_v36, %v2402_v33 }
0x1bf1   :  { %v2543_v12 = vmul.f32 -1.442695, %v2410_v53 }
0x1bf3   :  { %2724 = vpow2.f32 %v2543_v12 }
0x1bf9   :  { %v2725_v28 = vpop.eup %2724 }
0x1bfa   :  { %v2414_v54 = vadd.f32 1.0, %v2725_v28 }
0x1bfc   :  { %2726 = vrcp.f32 %v2414_v54  ;;  %v2426_v55 = vand.u32 2147483648, %v2414_v54  ;;  %v2424_v40 = vand.u32 2147483647, %v2414_v54  ;;  %vm2420_vm10 = vweird.f32 %v2414_v54 }
0x1bfe   :  { %v2427_v1 = vor.u32 1.1754944e-38, %v2426_v55  ;;  %vm2425_vm0 = vcmp.eq.f32.partialorder %v2424_v40, 8.507059e+37 }
0x1c02   :  { %v2727_v20 = vpop.eup %2726 }
0x1c03   :  { %v2416_v50 = vmul.f32 %v2727_v20, %v2414_v54  ;;  %vm2421_vm14 = vweird.f32 %v2727_v20 }
0x1c04   :  { %vm2422_vm11 = vmor %vm2420_vm10, %vm2421_vm14 }
0x1c05   :  { %v2417_v38 = vsub.f32 1.0, %v2416_v50 }
0x1c07   :  { %v2418_v49 = vmul.f32 %v2727_v20, %v2417_v38 }
0x1c09   :  { %v2419_v44 = vadd.f32 %v2727_v20, %v2418_v49 }
0x1c0b   :  { %v2423_v61 = vsel %vm2422_vm11, %v2727_v20, %v2419_v44 }
0x1c0c   :  { %v2428_v41 = vsel %vm2425_vm0, %v2427_v1, %v2423_v61 }
0x1c0d   :  { %2431 = vst.msk [vmem:[#allocation4 - $0x2] sm:$0xc] %vm2430_vm13, %v2428_v41 }
0x1c0e   :  { %2442 = dma.vmem_to_hbm [thread:$0]  %s2438_s12, 32, %s2440_s2, [#allocation5]  }
0x1c0f   :  { %2784 = dma.done.wait [#allocation5], 32  }
0x1c10   :  { %2785 = vsyncadd [#allocation5], 4294967264 }
0x1c11   :  { %2447 = vsyncpa [#allocation5], 1 }

</bundles_post_ra>
